<compile_context>
chip_gen: v6e
topology: v6e:2x2x1
jax: 0.10.0
libtpu: 0.0.40
codegen_flags: <defaults>
</compile_context>

<pallas_src>
import functools

import jax
import jax.numpy as jnp
from jax.experimental import pallas as pl
from jax.experimental.pallas import tpu as pltpu

N_CHANNELS = 80          # logical channel count (torch model)
CP = 128                 # lane-padded channel count used inside the kernel
# block 0: kernel_size=1, padding=0; blocks 1..6: kernel_size=2, dilation=padding=d
DILATIONS = (1, 1, 2, 4, 8, 16, 32)
KERNEL_SIZES = (1, 2, 2, 2, 2, 2, 2)

_ROLL_MODE = None        # resolved once at runtime: "jnp" | "neg" | "concat"


# --------------------------- roll-direction probe --------------------------- #

def _roll_probe_kernel(x_ref, o_ref):
    o_ref[...] = pltpu.roll(x_ref[...], 4, 0)


def _probe_roll_mode():
    """pltpu.roll is documented to match jnp.roll; probe once to pin down the
    sublane-rotate direction on this toolchain, falling back to a copy-based
    shift if the rotate is unavailable.  (Do not call under jit.)"""
    global _ROLL_MODE
    if _ROLL_MODE is not None:
        return _ROLL_MODE
    try:
        x = jnp.arange(128 * 128, dtype=jnp.float32).reshape(128, 128)
        y = pl.pallas_call(
            _roll_probe_kernel,
            out_shape=jax.ShapeDtypeStruct((128, 128), jnp.float32))(x)
        if bool(jnp.all(y[4] == x[0])):
            _ROLL_MODE = "jnp"        # y[i] = x[i - shift]  (jnp.roll semantics)
        elif bool(jnp.all(y[0] == x[4])):
            _ROLL_MODE = "neg"        # y[i] = x[i + shift]
        else:
            _ROLL_MODE = "concat"
    except Exception:                  # pragma: no cover - rotate not available
        _ROLL_MODE = "concat"
    return _ROLL_MODE


# ------------------------------ fused TCN kernel ---------------------------- #

def _fused_tcn_kernel(x_ref, w10_ref, b10_ref, w20_ref, b20_ref, rw0_ref, rb0_ref,
                      w1c_ref, b1s_ref, w2c_ref, b2s_ref, wf_ref, bf_ref, y_ref,
                      *, tb, l, roll_mode):
    r = tb * l
    # Within-sample time index, hoisted once; used for causal masking.
    t_pos = jax.lax.broadcasted_iota(jnp.int32, (tb, l, CP), 1).reshape(r, CP)

    def mm(a_f32, w_bf16):
        # bf16 MXU matmul with f32 accumulation.
        return jax.lax.dot_general(
            a_f32.astype(jnp.bfloat16), w_bf16,
            (((1,), (0,)), ((), ())), preferred_element_type=jnp.float32)

    def causal_conv2(a, wcat, brow, d):
        # y[t] = a[t - d] @ w0 + a[t] @ w1 + b  (zeros outside the sequence).
        y = mm(a, wcat)                        # (r, 2*CP): [tap0 | tap1]
        a1 = y[:, CP:]
        if d >= l:                             # shifted tap never sees valid data
            return a1 + brow
        a0 = y[:, :CP]
        if roll_mode == "concat":
            a0s = jnp.concatenate(
                [jnp.zeros((d, CP), jnp.float32), a0[:r - d, :]], axis=0)
        else:
            shift = d if roll_mode == "jnp" else r - d
            a0s = pltpu.roll(a0, shift, 0)     # cyclic shift on the XLU
        a0s = jnp.where(t_pos >= d, a0s, 0.0)  # per-sample causal zero padding
        return a0s + a1 + brow

    # ---- block 0: kernel_size=1, Cin=1 (broadcast path kept in f32) ----
    xcol = x_ref[...].reshape(r, 1)
    h = jnp.maximum(xcol * w10_ref[...] + b10_ref[...], 0.0)
    out = jnp.maximum(mm(h, w20_ref[...]) + b20_ref[...], 0.0)
    res = xcol * rw0_ref[...] + rb0_ref[...]      # 1x1 residual conv (Cin != Cout)
    skip = out
    x = jnp.maximum(out + res, 0.0)

    # ---- blocks 1..6: kernel_size=2, dilation d, identity residual ----
    # TODO(synk): nn.Dropout is treated as identity (eval-mode semantics).
    for i, d in enumerate(DILATIONS[1:]):
        h = jnp.maximum(causal_conv2(x, w1c_ref[i], b1s_ref[i], d), 0.0)
        out = jnp.maximum(causal_conv2(h, w2c_ref[i], b2s_ref[i], d), 0.0)
        skip = skip + out                         # running sum(skip_layers)
        x = jnp.maximum(out + x, 0.0)             # relu(out + residual)

    # ---- fused final 1x1 conv: y = final_conv(x + sum(skips)) ----
    s = (x + skip).reshape(tb, l, CP)
    y_ref[...] = jnp.sum(s * wf_ref[...], axis=-1) + bf_ref[0, 0]


def _head_kernel(y_ref, wlin_ref, blin_ref, z_ref):
    # Linear(seq_len, 1) applied to y.T (reduction over batch) as a (1,N)@(N,L)
    # MXU dot, then sigmoid.
    z = jax.lax.dot_general(wlin_ref[...], y_ref[...],
                            (((1,), (0,)), ((), ())),
                            preferred_element_type=jnp.float32)
    z = z + blin_ref[0, 0]
    z_ref[...] = 1.0 / (1.0 + jnp.exp(-z))


# ------------------------------- forward pass ------------------------------- #

def _pick_tb(n, l):
    """Largest multiple-of-8 batch tile dividing N that keeps ~8 live f32
    (TB*L, 128) buffers under ~12 MiB and leaves >= 2 grid steps when possible
    (so the DMA pipeline / megacore actually engage)."""
    max_rows = max(8, (12 << 20) // (8 * CP * 4))
    cap = max(8, min(n, max_rows // max(l, 1)))
    if n >= 16:
        cap = min(cap, n // 2)
    best = None
    for tb in range(8, n + 1, 8):
        if n % tb == 0 and tb <= cap:
            best = tb
    return best if best is not None else n


def discriminator_forward(x_ncl, packed, seq_len):
    x3 = jnp.transpose(x_ncl, (0, 2, 1)).astype(jnp.float32)   # (N, L, 1) channels-last
    n, l, cin = x3.shape
    assert cin == 1
    # TODO(synk): the original's `x.size(0) != seq_len` zero-pad branch only
    # type-checks when L == 1; here we require N == seq_len (the only case where
    # Linear(seq_len, 1) applied to x.T is well-defined).
    assert n == seq_len and l == seq_len
    tb = _pick_tb(n, l)
    roll_mode = _probe_roll_mode()

    def wspec(shape):
        return pl.BlockSpec(shape, lambda b: (0,) * len(shape))

    kern = functools.partial(_fused_tcn_kernel, tb=tb, l=l, roll_mode=roll_mode)
    y = pl.pallas_call(
        kern,
        out_shape=jax.ShapeDtypeStruct((n, l), jnp.float32),
        grid=(n // tb,),
        in_specs=[
            pl.BlockSpec((tb, l, 1), lambda b: (b, 0, 0)),      # x (batch-tiled)
            wspec((1, CP)),                                      # block0 conv1 w
            wspec((1, CP)),                                      # block0 conv1 b
            wspec((CP, CP)),                                     # block0 conv2 w (bf16)
            wspec((1, CP)),                                      # block0 conv2 b
            wspec((1, CP)),                                      # block0 residual w
            wspec((1, CP)),                                      # block0 residual b
            wspec((6, CP, 2 * CP)),                              # conv1 taps, blocks 1..6 (bf16)
            wspec((6, 1, CP)),                                   # conv1 biases
            wspec((6, CP, 2 * CP)),                              # conv2 taps, blocks 1..6 (bf16)
            wspec((6, 1, CP)),                                   # conv2 biases
            wspec((1, 1, CP)),                                   # final_conv weight
            pl.BlockSpec((1, 1), lambda b: (0, 0),
                         memory_space=pltpu.MemorySpace.SMEM),   # final_conv bias (scalar)
        ],
        out_specs=pl.BlockSpec((tb, l), lambda b: (b, 0)),
        compiler_params=pltpu.CompilerParams(
            dimension_semantics=("parallel",),
            vmem_limit_bytes=32 * 1024 * 1024),
    )(x3, packed["w10"], packed["b10"], packed["w20"], packed["b20"],
      packed["rw0"], packed["rb0"], packed["w1cat"], packed["b1s"],
      packed["w2cat"], packed["b2s"], packed["wf"], packed["bf"])

    z = pl.pallas_call(
        _head_kernel,
        out_shape=jax.ShapeDtypeStruct((1, l), jnp.float32),
        in_specs=[pl.BlockSpec(memory_space=pltpu.MemorySpace.VMEM),
                  pl.BlockSpec(memory_space=pltpu.MemorySpace.VMEM),
                  pl.BlockSpec(memory_space=pltpu.MemorySpace.SMEM)],
        out_specs=pl.BlockSpec(memory_space=pltpu.MemorySpace.VMEM),
    )(y, packed["wlin_t"], packed["blin"])
    return z[0]                                                  # .squeeze() -> (seq_len,)


# ---------------------------- parameter creation ---------------------------- #

def _weight_norm_conv(key, cin, cout, k, std=0.1):
    kv, kg, kb = jax.random.split(key, 3)
    v = std * jax.random.normal(kv, (cout, cin, k), jnp.float32)
    g = jax.random.uniform(kg, (cout, 1, 1), jnp.float32, minval=0.5, maxval=1.5)
    norm = jnp.sqrt(jnp.sum(v * v, axis=(1, 2), keepdims=True))
    w = g * v / norm                     # weight_norm: w = g * v / ||v||
    b = std * jax.random.normal(kb, (cout,), jnp.float32)
    return jnp.transpose(w, (2, 1, 0)), b.reshape(1, 1, cout)   # (K,Cin,Cout), (1,1,Cout)


def init_params(key, seq_len):
    block_params = []
    cin = 1
    for i in range(7):
        key, k1, k2, k3, k4 = jax.random.split(key, 5)
        ksz = KERNEL_SIZES[i]
        w1, b1 = _weight_norm_conv(k1, cin, N_CHANNELS, ksz)
        w2, b2 = _weight_norm_conv(k2, N_CHANNELS, N_CHANNELS, ksz)
        p = {"w1": w1, "b1": b1, "w2": w2, "b2": b2}
        if cin != N_CHANNELS:            # residual 1x1 conv only on the first block
            p["rw"] = 0.1 * jax.random.normal(k3, (cin, N_CHANNELS), jnp.float32)
            p["rb"] = 0.1 * jax.random.normal(k4, (1, 1, N_CHANNELS), jnp.float32)
        block_params.append(p)
        cin = N_CHANNELS
    key, kf, kfb, kl, klb = jax.random.split(key, 5)
    head_params = {
        "wf": 0.1 * jax.random.normal(kf, (1, 1, N_CHANNELS), jnp.float32),   # Conv1d(80,1,1)
        "bf": 0.1 * jax.random.normal(kfb, (1, 1), jnp.float32),
        "wlin": 0.1 * jax.random.normal(kl, (seq_len, 1), jnp.float32),       # Linear(seq_len,1)
        "blin": 0.1 * jax.random.normal(klb, (1, 1), jnp.float32),
    }
    return block_params, head_params


def pack_params(block_params, head_params):
    """Pad channels 80 -> 128, concatenate the two conv taps along the output
    axis, and pre-cast MXU weights to bf16 (accumulation stays f32).  Padded
    channels are exactly zero, so results are unchanged."""
    def padc(a, axis):
        pad = [(0, 0)] * a.ndim
        pad[axis] = (0, CP - a.shape[axis])
        return jnp.pad(a, pad)

    p0 = block_params[0]
    packed = {
        "w10": padc(p0["w1"][0], 1),                                # (1, CP) f32
        "b10": padc(p0["b1"][0], 1),
        "w20": padc(padc(p0["w2"][0], 0), 1).astype(jnp.bfloat16),  # (CP, CP)
        "b20": padc(p0["b2"][0], 1),
        "rw0": padc(p0["rw"], 1),
        "rb0": padc(p0["rb"][0], 1),
    }
    w1c, b1s, w2c, b2s = [], [], [], []
    for p in block_params[1:]:
        w1 = padc(padc(p["w1"], 1), 2)          # (2, CP, CP)
        w2 = padc(padc(p["w2"], 1), 2)
        w1c.append(jnp.concatenate([w1[0], w1[1]], axis=1))   # (CP, 2*CP)
        w2c.append(jnp.concatenate([w2[0], w2[1]], axis=1))
        b1s.append(padc(p["b1"][0], 1))
        b2s.append(padc(p["b2"][0], 1))
    packed["w1cat"] = jnp.stack(w1c).astype(jnp.bfloat16)     # (6, CP, 2*CP)
    packed["w2cat"] = jnp.stack(w2c).astype(jnp.bfloat16)
    packed["b1s"] = jnp.stack(b1s)                            # (6, 1, CP) f32
    packed["b2s"] = jnp.stack(b2s)
    packed["wf"] = padc(head_params["wf"], 2)                 # (1, 1, CP) f32
    packed["bf"] = head_params["bf"]                          # (1, 1)
    packed["wlin_t"] = head_params["wlin"].T                  # (1, seq_len)
    packed["blin"] = head_params["blin"]                      # (1, 1)
    return packed


# ------------------------------ pure-JAX reference -------------------------- #

def reference_forward(x_ncl, block_params, head_params):
    """Pure-JAX reference with the same numeric choices as the kernel
    (bf16 MXU inputs, f32 accumulation/elementwise, eval-mode dropout)."""
    x = jnp.transpose(x_ncl, (0, 2, 1)).astype(jnp.float32)   # (N, L, 1)
    n, l, _ = x.shape

    def mm(a, w):
        return jnp.einsum("nlc,cd->nld", a.astype(jnp.bfloat16),
                          w.astype(jnp.bfloat16),
                          preferred_element_type=jnp.float32)

    def conv(a, w, b, d):
        k, cin, _ = w.shape
        if k == 1:
            if cin == 1:
                return a * w[0].reshape(1, 1, -1) + b
            return mm(a, w[0]) + b
        a0, a1 = mm(a, w[0]), mm(a, w[1])
        if d >= l:
            a0s = jnp.zeros_like(a0)
        else:
            a0s = jnp.concatenate(
                [jnp.zeros_like(a0[:, :d]), a0[:, :l - d]], axis=1)
        return a0s + a1 + b

    skip = jnp.zeros((n, l, N_CHANNELS), jnp.float32)
    for p, d in zip(block_params, DILATIONS):
        h = jnp.maximum(conv(x, p["w1"], p["b1"], d), 0.0)
        out = jnp.maximum(conv(h, p["w2"], p["b2"], d), 0.0)
        res = x * p["rw"].reshape(1, 1, -1) + p["rb"] if "rw" in p else x
        skip = skip + out
        x = jnp.maximum(out + res, 0.0)
    s = x + skip
    y = jnp.sum(s * head_params["wf"], axis=-1) + head_params["bf"][0, 0]     # (N, L)
    z = jnp.sum(y * head_params["wlin"], axis=0) + head_params["blin"][0, 0]  # (L,)
    return 1.0 / (1.0 + jnp.exp(-z))


if __name__ == "__main__":
    seq_len = 16
    batch = seq_len  # the head (Linear(seq_len) over x.T) requires batch == seq_len
    key = jax.random.PRNGKey(0)
    key, kx, kp = jax.random.split(key, 3)
    x = jax.random.normal(kx, (batch, 1, seq_len), jnp.float32)   # torch NCL input
    block_params, head_params = init_params(kp, seq_len)
    packed = pack_params(block_params, head_params)

    out = discriminator_forward(x, packed, seq_len)
    out = jax.block_until_ready(out)
    assert out.shape == (seq_len,), out.shape

    ref = reference_forward(x, block_params, head_params)
    assert jnp.allclose(out, ref, rtol=1e-3, atol=1e-3), (out, ref)
    print("KERNEL_OK")
</pallas_src>

<mosaic_0001>
module attributes {stable_mosaic.version = 11 : i64} {
  func.func @_roll_probe_kernel(%arg0: memref<128x128xf32, #tpu.memory_space<vmem>>, %arg1: memref<128x128xf32, #tpu.memory_space<vmem>>) attributes {dimension_semantics = [], scalar_prefetch = 0 : i64, scratch_operands = 0 : i64, tpu.core_type = #tpu.core_type<tc>} {
    %c0 = arith.constant 0 : index
    %c0_0 = arith.constant 0 : index
    %0 = vector.load %arg0[%c0, %c0_0] : memref<128x128xf32, #tpu.memory_space<vmem>>, vector<128x128xf32>
    %c4_i32 = arith.constant 4 : i32
    %1 = tpu.dynamic_rotate %0 by %c4_i32 dim 0 : vector<128x128xf32>, i32 -> vector<128x128xf32>
    %c0_1 = arith.constant 0 : index
    %c0_2 = arith.constant 0 : index
    %2 = vector.load %arg1[%c0_1, %c0_2] : memref<128x128xf32, #tpu.memory_space<vmem>>, vector<128x128xf32>
    tpu.vector_store %arg1[%c0_1, %c0_2], %1 {strides = array<i32>} : memref<128x128xf32, #tpu.memory_space<vmem>>, vector<128x128xf32>,
    return
  }
}

module attributes {stable_mosaic.version = 11 : i64} {
  func.func @_fused_tcn_kernel(%arg0: i32, %arg1: memref<8x16x1xf32, #tpu.memory_space<vmem>>, %arg2: memref<1x128xf32, #tpu.memory_space<vmem>>, %arg3: memref<1x128xf32, #tpu.memory_space<vmem>>, %arg4: memref<128x128xbf16, #tpu.memory_space<vmem>>, %arg5: memref<1x128xf32, #tpu.memory_space<vmem>>, %arg6: memref<1x128xf32, #tpu.memory_space<vmem>>, %arg7: memref<1x128xf32, #tpu.memory_space<vmem>>, %arg8: memref<6x128x256xbf16, #tpu.memory_space<vmem>>, %arg9: memref<6x1x128xf32, #tpu.memory_space<vmem>>, %arg10: memref<6x128x256xbf16, #tpu.memory_space<vmem>>, %arg11: memref<6x1x128xf32, #tpu.memory_space<vmem>>, %arg12: memref<1x1x128xf32, #tpu.memory_space<vmem>>, %arg13: memref<1x1xf32, #tpu.memory_space<smem>>, %arg14: memref<8x16xf32, #tpu.memory_space<vmem>>) attributes {dimension_semantics = [#tpu.dimension_semantics<parallel>], iteration_bounds = array<i64: 2>, scalar_prefetch = 0 : i64, scratch_operands = 0 : i64, tpu.core_type = #tpu.core_type<tc>, window_params = [{transform_indices = @transform_0, window_bounds = array<i64: 8, 16, 1>}, {pipeline_mode = #tpu.pipeline_mode<synchronous>, transform_indices = @transform_1, window_bounds = array<i64: 1, 128>}, {pipeline_mode = #tpu.pipeline_mode<synchronous>, transform_indices = @transform_2, window_bounds = array<i64: 1, 128>}, {pipeline_mode = #tpu.pipeline_mode<synchronous>, transform_indices = @transform_3, window_bounds = array<i64: 128, 128>}, {pipeline_mode = #tpu.pipeline_mode<synchronous>, transform_indices = @transform_4, window_bounds = array<i64: 1, 128>}, {pipeline_mode = #tpu.pipeline_mode<synchronous>, transform_indices = @transform_5, window_bounds = array<i64: 1, 128>}, {pipeline_mode = #tpu.pipeline_mode<synchronous>, transform_indices = @transform_6, window_bounds = array<i64: 1, 128>}, {pipeline_mode = #tpu.pipeline_mode<synchronous>, transform_indices = @transform_7, window_bounds = array<i64: 6, 128, 256>}, {pipeline_mode = #tpu.pipeline_mode<synchronous>, transform_indices = @transform_8, window_bounds = array<i64: 6, 1, 128>}, {pipeline_mode = #tpu.pipeline_mode<synchronous>, transform_indices = @transform_9, window_bounds = array<i64: 6, 128, 256>}, {pipeline_mode = #tpu.pipeline_mode<synchronous>, transform_indices = @transform_10, window_bounds = array<i64: 6, 1, 128>}, {pipeline_mode = #tpu.pipeline_mode<synchronous>, transform_indices = @transform_11, window_bounds = array<i64: 1, 1, 128>}, {transform_indices = @transform_12, window_bounds = array<i64: 1, 1>}, {transform_indices = @transform_13, window_bounds = array<i64: 8, 16>}]} {
    %0 = tpu.iota {dimensions = array<i32: 1>} : vector<8x16x128xi32>
    %1 = vector.shape_cast %0 : vector<8x16x128xi32> to vector<128x128xi32>
    %c0 = arith.constant 0 : index
    %c0_0 = arith.constant 0 : index
    %c0_1 = arith.constant 0 : index
    %2 = vector.load %arg1[%c0, %c0_0, %c0_1] : memref<8x16x1xf32, #tpu.memory_space<vmem>>, vector<8x16x1xf32>
    %3 = vector.shape_cast %2 : vector<8x16x1xf32> to vector<128x1xf32>
    %c0_2 = arith.constant 0 : index
    %c0_3 = arith.constant 0 : index
    %4 = vector.load %arg2[%c0_2, %c0_3] : memref<1x128xf32, #tpu.memory_space<vmem>>, vector<1x128xf32>
    %5 = vector.broadcast %3 : vector<128x1xf32> to vector<128x128xf32>
    %6 = vector.broadcast %4 : vector<1x128xf32> to vector<128x128xf32>
    %7 = arith.mulf %5, %6 : vector<128x128xf32>
    %c0_4 = arith.constant 0 : index
    %c0_5 = arith.constant 0 : index
    %8 = vector.load %arg3[%c0_4, %c0_5] : memref<1x128xf32, #tpu.memory_space<vmem>>, vector<1x128xf32>
    %9 = vector.broadcast %8 : vector<1x128xf32> to vector<128x128xf32>
    %10 = arith.addf %7, %9 : vector<128x128xf32>
    %cst = arith.constant 0.000000e+00 : f32
    %11 = vector.broadcast %cst : f32 to vector<128x128xf32>
    %12 = arith.maximumf %10, %11 : vector<128x128xf32>
    %c0_6 = arith.constant 0 : index
    %c0_7 = arith.constant 0 : index
    %13 = vector.load %arg4[%c0_6, %c0_7] : memref<128x128xbf16, #tpu.memory_space<vmem>>, vector<128x128xbf16>
    %14 = arith.truncf %12 : vector<128x128xf32> to vector<128x128xbf16>
    %cst_8 = arith.constant dense<0.000000e+00> : vector<128x128xf32>
    %15 = tpu.matmul %14, %13, %cst_8 {dimension_numbers = #tpu.dot_dimension_numbers<[1], [0], [0], [1], [0, 0, 1, 1], [], []>} : vector<128x128xbf16>, vector<128x128xbf16>, vector<128x128xf32> -> vector<128x128xf32>
    %c0_9 = arith.constant 0 : index
    %c0_10 = arith.constant 0 : index
    %16 = vector.load %arg5[%c0_9, %c0_10] : memref<1x128xf32, #tpu.memory_space<vmem>>, vector<1x128xf32>
    %17 = vector.broadcast %16 : vector<1x128xf32> to vector<128x128xf32>
    %18 = arith.addf %15, %17 : vector<128x128xf32>
    %cst_11 = arith.constant 0.000000e+00 : f32
    %19 = vector.broadcast %cst_11 : f32 to vector<128x128xf32>
    %20 = arith.maximumf %18, %19 : vector<128x128xf32>
    %c0_12 = arith.constant 0 : index
    %c0_13 = arith.constant 0 : index
    %21 = vector.load %arg6[%c0_12, %c0_13] : memref<1x128xf32, #tpu.memory_space<vmem>>, vector<1x128xf32>
    %22 = vector.broadcast %3 : vector<128x1xf32> to vector<128x128xf32>
    %23 = vector.broadcast %21 : vector<1x128xf32> to vector<128x128xf32>
    %24 = arith.mulf %22, %23 : vector<128x128xf32>
    %c0_14 = arith.constant 0 : index
    %c0_15 = arith.constant 0 : index
    %25 = vector.load %arg7[%c0_14, %c0_15] : memref<1x128xf32, #tpu.memory_space<vmem>>, vector<1x128xf32>
    %26 = vector.broadcast %25 : vector<1x128xf32> to vector<128x128xf32>
    %27 = arith.addf %24, %26 : vector<128x128xf32>
    %28 = arith.addf %20, %27 : vector<128x128xf32>
    %cst_16 = arith.constant 0.000000e+00 : f32
    %29 = vector.broadcast %cst_16 : f32 to vector<128x128xf32>
    %30 = arith.maximumf %28, %29 : vector<128x128xf32>
    %c0_17 = arith.constant 0 : index
    %c0_18 = arith.constant 0 : index
    %c0_19 = arith.constant 0 : index
    %31 = vector.load %arg8[%c0_17, %c0_18, %c0_19] : memref<6x128x256xbf16, #tpu.memory_space<vmem>>, vector<1x128x256xbf16>
    %32 = vector.shape_cast %31 : vector<1x128x256xbf16> to vector<128x256xbf16>
    %c0_20 = arith.constant 0 : index
    %c0_21 = arith.constant 0 : index
    %c0_22 = arith.constant 0 : index
    %33 = vector.load %arg9[%c0_20, %c0_21, %c0_22] : memref<6x1x128xf32, #tpu.memory_space<vmem>>, vector<1x1x128xf32>
    %34 = vector.shape_cast %33 : vector<1x1x128xf32> to vector<1x128xf32>
    %35 = arith.truncf %30 : vector<128x128xf32> to vector<128x128xbf16>
    %cst_23 = arith.constant dense<0.000000e+00> : vector<128x256xf32>
    %36 = tpu.matmul %35, %32, %cst_23 {dimension_numbers = #tpu.dot_dimension_numbers<[1], [0], [0], [1], [0, 0, 1, 1], [], []>} : vector<128x128xbf16>, vector<128x256xbf16>, vector<128x256xf32> -> vector<128x256xf32>
    %37 = vector.extract_strided_slice %36 {offsets = [0, 128], sizes = [128, 128], strides = [1, 1]} : vector<128x256xf32> to vector<128x128xf32>
    %38 = vector.extract_strided_slice %36 {offsets = [0, 0], sizes = [128, 128], strides = [1, 1]} : vector<128x256xf32> to vector<128x128xf32>
    %cst_24 = arith.constant 0.000000e+00 : f32
    %39 = vector.broadcast %cst_24 : f32 to vector<1x128xf32>
    %40 = vector.extract_strided_slice %38 {offsets = [0, 0], sizes = [127, 128], strides = [1, 1]} : vector<128x128xf32> to vector<127x128xf32>
    %41 = tpu.concatenate %39, %40 in 0 : vector<1x128xf32>, vector<127x128xf32> -> vector<128x128xf32>
    %c1_i32 = arith.constant 1 : i32
    %42 = vector.broadcast %c1_i32 : i32 to vector<128x128xi32>
    %43 = arith.cmpi sge, %1, %42 : vector<128x128xi32>
    %cst_25 = arith.constant 0.000000e+00 : f32
    %44 = vector.broadcast %cst_25 : f32 to vector<128x128xf32>
    %45 = arith.select %43, %41, %44 : vector<128x128xi1>, vector<128x128xf32>
    %46 = arith.addf %45, %37 : vector<128x128xf32>
    %47 = vector.broadcast %34 : vector<1x128xf32> to vector<128x128xf32>
    %48 = arith.addf %46, %47 : vector<128x128xf32>
    %cst_26 = arith.constant 0.000000e+00 : f32
    %49 = vector.broadcast %cst_26 : f32 to vector<128x128xf32>
    %50 = arith.maximumf %48, %49 : vector<128x128xf32>
    %c0_27 = arith.constant 0 : index
    %c0_28 = arith.constant 0 : index
    %c0_29 = arith.constant 0 : index
    %51 = vector.load %arg10[%c0_27, %c0_28, %c0_29] : memref<6x128x256xbf16, #tpu.memory_space<vmem>>, vector<1x128x256xbf16>
    %52 = vector.shape_cast %51 : vector<1x128x256xbf16> to vector<128x256xbf16>
    %c0_30 = arith.constant 0 : index
    %c0_31 = arith.constant 0 : index
    %c0_32 = arith.constant 0 : index
    %53 = vector.load %arg11[%c0_30, %c0_31, %c0_32] : memref<6x1x128xf32, #tpu.memory_space<vmem>>, vector<1x1x128xf32>
    %54 = vector.shape_cast %53 : vector<1x1x128xf32> to vector<1x128xf32>
    %55 = arith.truncf %50 : vector<128x128xf32> to vector<128x128xbf16>
    %cst_33 = arith.constant dense<0.000000e+00> : vector<128x256xf32>
    %56 = tpu.matmul %55, %52, %cst_33 {dimension_numbers = #tpu.dot_dimension_numbers<[1], [0], [0], [1], [0, 0, 1, 1], [], []>} : vector<128x128xbf16>, vector<128x256xbf16>, vector<128x256xf32> -> vector<128x256xf32>
    %57 = vector.extract_strided_slice %56 {offsets = [0, 128], sizes = [128, 128], strides = [1, 1]} : vector<128x256xf32> to vector<128x128xf32>
    %58 = vector.extract_strided_slice %56 {offsets = [0, 0], sizes = [128, 128], strides = [1, 1]} : vector<128x256xf32> to vector<128x128xf32>
    %cst_34 = arith.constant 0.000000e+00 : f32
    %59 = vector.broadcast %cst_34 : f32 to vector<1x128xf32>
    %60 = vector.extract_strided_slice %58 {offsets = [0, 0], sizes = [127, 128], strides = [1, 1]} : vector<128x128xf32> to vector<127x128xf32>
    %61 = tpu.concatenate %59, %60 in 0 : vector<1x128xf32>, vector<127x128xf32> -> vector<128x128xf32>
    %c1_i32_35 = arith.constant 1 : i32
    %62 = vector.broadcast %c1_i32_35 : i32 to vector<128x128xi32>
    %63 = arith.cmpi sge, %1, %62 : vector<128x128xi32>
    %cst_36 = arith.constant 0.000000e+00 : f32
    %64 = vector.broadcast %cst_36 : f32 to vector<128x128xf32>
    %65 = arith.select %63, %61, %64 : vector<128x128xi1>, vector<128x128xf32>
    %66 = arith.addf %65, %57 : vector<128x128xf32>
    %67 = vector.broadcast %54 : vector<1x128xf32> to vector<128x128xf32>
    %68 = arith.addf %66, %67 : vector<128x128xf32>
    %cst_37 = arith.constant 0.000000e+00 : f32
    %69 = vector.broadcast %cst_37 : f32 to vector<128x128xf32>
    %70 = arith.maximumf %68, %69 : vector<128x128xf32>
    %71 = arith.addf %20, %70 : vector<128x128xf32>
    %72 = arith.addf %70, %30 : vector<128x128xf32>
    %cst_38 = arith.constant 0.000000e+00 : f32
    %73 = vector.broadcast %cst_38 : f32 to vector<128x128xf32>
    %74 = arith.maximumf %72, %73 : vector<128x128xf32>
    %c1 = arith.constant 1 : index
    %c0_39 = arith.constant 0 : index
    %c0_40 = arith.constant 0 : index
    %75 = vector.load %arg8[%c1, %c0_39, %c0_40] : memref<6x128x256xbf16, #tpu.memory_space<vmem>>, vector<1x128x256xbf16>
    %76 = vector.shape_cast %75 : vector<1x128x256xbf16> to vector<128x256xbf16>
    %c1_41 = arith.constant 1 : index
    %c0_42 = arith.constant 0 : index
    %c0_43 = arith.constant 0 : index
    %77 = vector.load %arg9[%c1_41, %c0_42, %c0_43] : memref<6x1x128xf32, #tpu.memory_space<vmem>>, vector<1x1x128xf32>
    %78 = vector.shape_cast %77 : vector<1x1x128xf32> to vector<1x128xf32>
    %79 = arith.truncf %74 : vector<128x128xf32> to vector<128x128xbf16>
    %cst_44 = arith.constant dense<0.000000e+00> : vector<128x256xf32>
    %80 = tpu.matmul %79, %76, %cst_44 {dimension_numbers = #tpu.dot_dimension_numbers<[1], [0], [0], [1], [0, 0, 1, 1], [], []>} : vector<128x128xbf16>, vector<128x256xbf16>, vector<128x256xf32> -> vector<128x256xf32>
    %81 = vector.extract_strided_slice %80 {offsets = [0, 128], sizes = [128, 128], strides = [1, 1]} : vector<128x256xf32> to vector<128x128xf32>
    %82 = vector.extract_strided_slice %80 {offsets = [0, 0], sizes = [128, 128], strides = [1, 1]} : vector<128x256xf32> to vector<128x128xf32>
    %cst_45 = arith.constant 0.000000e+00 : f32
    %83 = vector.broadcast %cst_45 : f32 to vector<2x128xf32>
    %84 = vector.extract_strided_slice %82 {offsets = [0, 0], sizes = [126, 128], strides = [1, 1]} : vector<128x128xf32> to vector<126x128xf32>
    %85 = tpu.concatenate %83, %84 in 0 : vector<2x128xf32>, vector<126x128xf32> -> vector<128x128xf32>
    %c2_i32 = arith.constant 2 : i32
    %86 = vector.broadcast %c2_i32 : i32 to vector<128x128xi32>
    %87 = arith.cmpi sge, %1, %86 : vector<128x128xi32>
    %cst_46 = arith.constant 0.000000e+00 : f32
    %88 = vector.broadcast %cst_46 : f32 to vector<128x128xf32>
    %89 = arith.select %87, %85, %88 : vector<128x128xi1>, vector<128x128xf32>
    %90 = arith.addf %89, %81 : vector<128x128xf32>
    %91 = vector.broadcast %78 : vector<1x128xf32> to vector<128x128xf32>
    %92 = arith.addf %90, %91 : vector<128x128xf32>
    %cst_47 = arith.constant 0.000000e+00 : f32
    %93 = vector.broadcast %cst_47 : f32 to vector<128x128xf32>
    %94 = arith.maximumf %92, %93 : vector<128x128xf32>
    %c1_48 = arith.constant 1 : index
    %c0_49 = arith.constant 0 : index
    %c0_50 = arith.constant 0 : index
    %95 = vector.load %arg10[%c1_48, %c0_49, %c0_50] : memref<6x128x256xbf16, #tpu.memory_space<vmem>>, vector<1x128x256xbf16>
    %96 = vector.shape_cast %95 : vector<1x128x256xbf16> to vector<128x256xbf16>
    %c1_51 = arith.constant 1 : index
    %c0_52 = arith.constant 0 : index
    %c0_53 = arith.constant 0 : index
    %97 = vector.load %arg11[%c1_51, %c0_52, %c0_53] : memref<6x1x128xf32, #tpu.memory_space<vmem>>, vector<1x1x128xf32>
    %98 = vector.shape_cast %97 : vector<1x1x128xf32> to vector<1x128xf32>
    %99 = arith.truncf %94 : vector<128x128xf32> to vector<128x128xbf16>
    %cst_54 = arith.constant dense<0.000000e+00> : vector<128x256xf32>
    %100 = tpu.matmul %99, %96, %cst_54 {dimension_numbers = #tpu.dot_dimension_numbers<[1], [0], [0], [1], [0, 0, 1, 1], [], []>} : vector<128x128xbf16>, vector<128x256xbf16>, vector<128x256xf32> -> vector<128x256xf32>
    %101 = vector.extract_strided_slice %100 {offsets = [0, 128], sizes = [128, 128], strides = [1, 1]} : vector<128x256xf32> to vector<128x128xf32>
    %102 = vector.extract_strided_slice %100 {offsets = [0, 0], sizes = [128, 128], strides = [1, 1]} : vector<128x256xf32> to vector<128x128xf32>
    %cst_55 = arith.constant 0.000000e+00 : f32
    %103 = vector.broadcast %cst_55 : f32 to vector<2x128xf32>
    %104 = vector.extract_strided_slice %102 {offsets = [0, 0], sizes = [126, 128], strides = [1, 1]} : vector<128x128xf32> to vector<126x128xf32>
    %105 = tpu.concatenate %103, %104 in 0 : vector<2x128xf32>, vector<126x128xf32> -> vector<128x128xf32>
    %c2_i32_56 = arith.constant 2 : i32
    %106 = vector.broadcast %c2_i32_56 : i32 to vector<128x128xi32>
    %107 = arith.cmpi sge, %1, %106 : vector<128x128xi32>
    %cst_57 = arith.constant 0.000000e+00 : f32
    %108 = vector.broadcast %cst_57 : f32 to vector<128x128xf32>
    %109 = arith.select %107, %105, %108 : vector<128x128xi1>, vector<128x128xf32>
    %110 = arith.addf %109, %101 : vector<128x128xf32>
    %111 = vector.broadcast %98 : vector<1x128xf32> to vector<128x128xf32>
    %112 = arith.addf %110, %111 : vector<128x128xf32>
    %cst_58 = arith.constant 0.000000e+00 : f32
    %113 = vector.broadcast %cst_58 : f32 to vector<128x128xf32>
    %114 = arith.maximumf %112, %113 : vector<128x128xf32>
    %115 = arith.addf %71, %114 : vector<128x128xf32>
    %116 = arith.addf %114, %74 : vector<128x128xf32>
    %cst_59 = arith.constant 0.000000e+00 : f32
    %117 = vector.broadcast %cst_59 : f32 to vector<128x128xf32>
    %118 = arith.maximumf %116, %117 : vector<128x128xf32>
    %c2 = arith.constant 2 : index
    %c0_60 = arith.constant 0 : index
    %c0_61 = arith.constant 0 : index
    %119 = vector.load %arg8[%c2, %c0_60, %c0_61] : memref<6x128x256xbf16, #tpu.memory_space<vmem>>, vector<1x128x256xbf16>
    %120 = vector.shape_cast %119 : vector<1x128x256xbf16> to vector<128x256xbf16>
    %c2_62 = arith.constant 2 : index
    %c0_63 = arith.constant 0 : index
    %c0_64 = arith.constant 0 : index
    %121 = vector.load %arg9[%c2_62, %c0_63, %c0_64] : memref<6x1x128xf32, #tpu.memory_space<vmem>>, vector<1x1x128xf32>
    %122 = vector.shape_cast %121 : vector<1x1x128xf32> to vector<1x128xf32>
    %123 = arith.truncf %118 : vector<128x128xf32> to vector<128x128xbf16>
    %cst_65 = arith.constant dense<0.000000e+00> : vector<128x256xf32>
    %124 = tpu.matmul %123, %120, %cst_65 {dimension_numbers = #tpu.dot_dimension_numbers<[1], [0], [0], [1], [0, 0, 1, 1], [], []>} : vector<128x128xbf16>, vector<128x256xbf16>, vector<128x256xf32> -> vector<128x256xf32>
    %125 = vector.extract_strided_slice %124 {offsets = [0, 128], sizes = [128, 128], strides = [1, 1]} : vector<128x256xf32> to vector<128x128xf32>
    %126 = vector.extract_strided_slice %124 {offsets = [0, 0], sizes = [128, 128], strides = [1, 1]} : vector<128x256xf32> to vector<128x128xf32>
    %cst_66 = arith.constant 0.000000e+00 : f32
    %127 = vector.broadcast %cst_66 : f32 to vector<4x128xf32>
    %128 = vector.extract_strided_slice %126 {offsets = [0, 0], sizes = [124, 128], strides = [1, 1]} : vector<128x128xf32> to vector<124x128xf32>
    %129 = tpu.concatenate %127, %128 in 0 : vector<4x128xf32>, vector<124x128xf32> -> vector<128x128xf32>
    %c4_i32 = arith.constant 4 : i32
    %130 = vector.broadcast %c4_i32 : i32 to vector<128x128xi32>
    %131 = arith.cmpi sge, %1, %130 : vector<128x128xi32>
    %cst_67 = arith.constant 0.000000e+00 : f32
    %132 = vector.broadcast %cst_67 : f32 to vector<128x128xf32>
    %133 = arith.select %131, %129, %132 : vector<128x128xi1>, vector<128x128xf32>
    %134 = arith.addf %133, %125 : vector<128x128xf32>
    %135 = vector.broadcast %122 : vector<1x128xf32> to vector<128x128xf32>
    %136 = arith.addf %134, %135 : vector<128x128xf32>
    %cst_68 = arith.constant 0.000000e+00 : f32
    %137 = vector.broadcast %cst_68 : f32 to vector<128x128xf32>
    %138 = arith.maximumf %136, %137 : vector<128x128xf32>
    %c2_69 = arith.constant 2 : index
    %c0_70 = arith.constant 0 : index
    %c0_71 = arith.constant 0 : index
    %139 = vector.load %arg10[%c2_69, %c0_70, %c0_71] : memref<6x128x256xbf16, #tpu.memory_space<vmem>>, vector<1x128x256xbf16>
    %140 = vector.shape_cast %139 : vector<1x128x256xbf16> to vector<128x256xbf16>
    %c2_72 = arith.constant 2 : index
    %c0_73 = arith.constant 0 : index
    %c0_74 = arith.constant 0 : index
    %141 = vector.load %arg11[%c2_72, %c0_73, %c0_74] : memref<6x1x128xf32, #tpu.memory_space<vmem>>, vector<1x1x128xf32>
    %142 = vector.shape_cast %141 : vector<1x1x128xf32> to vector<1x128xf32>
    %143 = arith.truncf %138 : vector<128x128xf32> to vector<128x128xbf16>
    %cst_75 = arith.constant dense<0.000000e+00> : vector<128x256xf32>
    %144 = tpu.matmul %143, %140, %cst_75 {dimension_numbers = #tpu.dot_dimension_numbers<[1], [0], [0], [1], [0, 0, 1, 1], [], []>} : vector<128x128xbf16>, vector<128x256xbf16>, vector<128x256xf32> -> vector<128x256xf32>
    %145 = vector.extract_strided_slice %144 {offsets = [0, 128], sizes = [128, 128], strides = [1, 1]} : vector<128x256xf32> to vector<128x128xf32>
    %146 = vector.extract_strided_slice %144 {offsets = [0, 0], sizes = [128, 128], strides = [1, 1]} : vector<128x256xf32> to vector<128x128xf32>
    %cst_76 = arith.constant 0.000000e+00 : f32
    %147 = vector.broadcast %cst_76 : f32 to vector<4x128xf32>
    %148 = vector.extract_strided_slice %146 {offsets = [0, 0], sizes = [124, 128], strides = [1, 1]} : vector<128x128xf32> to vector<124x128xf32>
    %149 = tpu.concatenate %147, %148 in 0 : vector<4x128xf32>, vector<124x128xf32> -> vector<128x128xf32>
    %c4_i32_77 = arith.constant 4 : i32
    %150 = vector.broadcast %c4_i32_77 : i32 to vector<128x128xi32>
    %151 = arith.cmpi sge, %1, %150 : vector<128x128xi32>
    %cst_78 = arith.constant 0.000000e+00 : f32
    %152 = vector.broadcast %cst_78 : f32 to vector<128x128xf32>
    %153 = arith.select %151, %149, %152 : vector<128x128xi1>, vector<128x128xf32>
    %154 = arith.addf %153, %145 : vector<128x128xf32>
    %155 = vector.broadcast %142 : vector<1x128xf32> to vector<128x128xf32>
    %156 = arith.addf %154, %155 : vector<128x128xf32>
    %cst_79 = arith.constant 0.000000e+00 : f32
    %157 = vector.broadcast %cst_79 : f32 to vector<128x128xf32>
    %158 = arith.maximumf %156, %157 : vector<128x128xf32>
    %159 = arith.addf %115, %158 : vector<128x128xf32>
    %160 = arith.addf %158, %118 : vector<128x128xf32>
    %cst_80 = arith.constant 0.000000e+00 : f32
    %161 = vector.broadcast %cst_80 : f32 to vector<128x128xf32>
    %162 = arith.maximumf %160, %161 : vector<128x128xf32>
    %c3 = arith.constant 3 : index
    %c0_81 = arith.constant 0 : index
    %c0_82 = arith.constant 0 : index
    %163 = vector.load %arg8[%c3, %c0_81, %c0_82] : memref<6x128x256xbf16, #tpu.memory_space<vmem>>, vector<1x128x256xbf16>
    %164 = vector.shape_cast %163 : vector<1x128x256xbf16> to vector<128x256xbf16>
    %c3_83 = arith.constant 3 : index
    %c0_84 = arith.constant 0 : index
    %c0_85 = arith.constant 0 : index
    %165 = vector.load %arg9[%c3_83, %c0_84, %c0_85] : memref<6x1x128xf32, #tpu.memory_space<vmem>>, vector<1x1x128xf32>
    %166 = vector.shape_cast %165 : vector<1x1x128xf32> to vector<1x128xf32>
    %167 = arith.truncf %162 : vector<128x128xf32> to vector<128x128xbf16>
    %cst_86 = arith.constant dense<0.000000e+00> : vector<128x256xf32>
    %168 = tpu.matmul %167, %164, %cst_86 {dimension_numbers = #tpu.dot_dimension_numbers<[1], [0], [0], [1], [0, 0, 1, 1], [], []>} : vector<128x128xbf16>, vector<128x256xbf16>, vector<128x256xf32> -> vector<128x256xf32>
    %169 = vector.extract_strided_slice %168 {offsets = [0, 128], sizes = [128, 128], strides = [1, 1]} : vector<128x256xf32> to vector<128x128xf32>
    %170 = vector.extract_strided_slice %168 {offsets = [0, 0], sizes = [128, 128], strides = [1, 1]} : vector<128x256xf32> to vector<128x128xf32>
    %cst_87 = arith.constant 0.000000e+00 : f32
    %171 = vector.broadcast %cst_87 : f32 to vector<8x128xf32>
    %172 = vector.extract_strided_slice %170 {offsets = [0, 0], sizes = [120, 128], strides = [1, 1]} : vector<128x128xf32> to vector<120x128xf32>
    %173 = tpu.concatenate %171, %172 in 0 : vector<8x128xf32>, vector<120x128xf32> -> vector<128x128xf32>
    %c8_i32 = arith.constant 8 : i32
    %174 = vector.broadcast %c8_i32 : i32 to vector<128x128xi32>
    %175 = arith.cmpi sge, %1, %174 : vector<128x128xi32>
    %cst_88 = arith.constant 0.000000e+00 : f32
    %176 = vector.broadcast %cst_88 : f32 to vector<128x128xf32>
    %177 = arith.select %175, %173, %176 : vector<128x128xi1>, vector<128x128xf32>
    %178 = arith.addf %177, %169 : vector<128x128xf32>
    %179 = vector.broadcast %166 : vector<1x128xf32> to vector<128x128xf32>
    %180 = arith.addf %178, %179 : vector<128x128xf32>
    %cst_89 = arith.constant 0.000000e+00 : f32
    %181 = vector.broadcast %cst_89 : f32 to vector<128x128xf32>
    %182 = arith.maximumf %180, %181 : vector<128x128xf32>
    %c3_90 = arith.constant 3 : index
    %c0_91 = arith.constant 0 : index
    %c0_92 = arith.constant 0 : index
    %183 = vector.load %arg10[%c3_90, %c0_91, %c0_92] : memref<6x128x256xbf16, #tpu.memory_space<vmem>>, vector<1x128x256xbf16>
    %184 = vector.shape_cast %183 : vector<1x128x256xbf16> to vector<128x256xbf16>
    %c3_93 = arith.constant 3 : index
    %c0_94 = arith.constant 0 : index
    %c0_95 = arith.constant 0 : index
    %185 = vector.load %arg11[%c3_93, %c0_94, %c0_95] : memref<6x1x128xf32, #tpu.memory_space<vmem>>, vector<1x1x128xf32>
    %186 = vector.shape_cast %185 : vector<1x1x128xf32> to vector<1x128xf32>
    %187 = arith.truncf %182 : vector<128x128xf32> to vector<128x128xbf16>
    %cst_96 = arith.constant dense<0.000000e+00> : vector<128x256xf32>
    %188 = tpu.matmul %187, %184, %cst_96 {dimension_numbers = #tpu.dot_dimension_numbers<[1], [0], [0], [1], [0, 0, 1, 1], [], []>} : vector<128x128xbf16>, vector<128x256xbf16>, vector<128x256xf32> -> vector<128x256xf32>
    %189 = vector.extract_strided_slice %188 {offsets = [0, 128], sizes = [128, 128], strides = [1, 1]} : vector<128x256xf32> to vector<128x128xf32>
    %190 = vector.extract_strided_slice %188 {offsets = [0, 0], sizes = [128, 128], strides = [1, 1]} : vector<128x256xf32> to vector<128x128xf32>
    %cst_97 = arith.constant 0.000000e+00 : f32
    %191 = vector.broadcast %cst_97 : f32 to vector<8x128xf32>
    %192 = vector.extract_strided_slice %190 {offsets = [0, 0], sizes = [120, 128], strides = [1, 1]} : vector<128x128xf32> to vector<120x128xf32>
    %193 = tpu.concatenate %191, %192 in 0 : vector<8x128xf32>, vector<120x128xf32> -> vector<128x128xf32>
    %c8_i32_98 = arith.constant 8 : i32
    %194 = vector.broadcast %c8_i32_98 : i32 to vector<128x128xi32>
    %195 = arith.cmpi sge, %1, %194 : vector<128x128xi32>
    %cst_99 = arith.constant 0.000000e+00 : f32
    %196 = vector.broadcast %cst_99 : f32 to vector<128x128xf32>
    %197 = arith.select %195, %193, %196 : vector<128x128xi1>, vector<128x128xf32>
    %198 = arith.addf %197, %189 : vector<128x128xf32>
    %199 = vector.broadcast %186 : vector<1x128xf32> to vector<128x128xf32>
    %200 = arith.addf %198, %199 : vector<128x128xf32>
    %cst_100 = arith.constant 0.000000e+00 : f32
    %201 = vector.broadcast %cst_100 : f32 to vector<128x128xf32>
    %202 = arith.maximumf %200, %201 : vector<128x128xf32>
    %203 = arith.addf %159, %202 : vector<128x128xf32>
    %204 = arith.addf %202, %162 : vector<128x128xf32>
    %cst_101 = arith.constant 0.000000e+00 : f32
    %205 = vector.broadcast %cst_101 : f32 to vector<128x128xf32>
    %206 = arith.maximumf %204, %205 : vector<128x128xf32>
    %c4 = arith.constant 4 : index
    %c0_102 = arith.constant 0 : index
    %c0_103 = arith.constant 0 : index
    %207 = vector.load %arg8[%c4, %c0_102, %c0_103] : memref<6x128x256xbf16, #tpu.memory_space<vmem>>, vector<1x128x256xbf16>
    %208 = vector.shape_cast %207 : vector<1x128x256xbf16> to vector<128x256xbf16>
    %c4_104 = arith.constant 4 : index
    %c0_105 = arith.constant 0 : index
    %c0_106 = arith.constant 0 : index
    %209 = vector.load %arg9[%c4_104, %c0_105, %c0_106] : memref<6x1x128xf32, #tpu.memory_space<vmem>>, vector<1x1x128xf32>
    %210 = vector.shape_cast %209 : vector<1x1x128xf32> to vector<1x128xf32>
    %211 = arith.truncf %206 : vector<128x128xf32> to vector<128x128xbf16>
    %cst_107 = arith.constant dense<0.000000e+00> : vector<128x256xf32>
    %212 = tpu.matmul %211, %208, %cst_107 {dimension_numbers = #tpu.dot_dimension_numbers<[1], [0], [0], [1], [0, 0, 1, 1], [], []>} : vector<128x128xbf16>, vector<128x256xbf16>, vector<128x256xf32> -> vector<128x256xf32>
    %213 = vector.extract_strided_slice %212 {offsets = [0, 128], sizes = [128, 128], strides = [1, 1]} : vector<128x256xf32> to vector<128x128xf32>
    %214 = vector.broadcast %210 : vector<1x128xf32> to vector<128x128xf32>
    %215 = arith.addf %213, %214 : vector<128x128xf32>
    %cst_108 = arith.constant 0.000000e+00 : f32
    %216 = vector.broadcast %cst_108 : f32 to vector<128x128xf32>
    %217 = arith.maximumf %215, %216 : vector<128x128xf32>
    %c4_109 = arith.constant 4 : index
    %c0_110 = arith.constant 0 : index
    %c0_111 = arith.constant 0 : index
    %218 = vector.load %arg10[%c4_109, %c0_110, %c0_111] : memref<6x128x256xbf16, #tpu.memory_space<vmem>>, vector<1x128x256xbf16>
    %219 = vector.shape_cast %218 : vector<1x128x256xbf16> to vector<128x256xbf16>
    %c4_112 = arith.constant 4 : index
    %c0_113 = arith.constant 0 : index
    %c0_114 = arith.constant 0 : index
    %220 = vector.load %arg11[%c4_112, %c0_113, %c0_114] : memref<6x1x128xf32, #tpu.memory_space<vmem>>, vector<1x1x128xf32>
    %221 = vector.shape_cast %220 : vector<1x1x128xf32> to vector<1x128xf32>
    %222 = arith.truncf %217 : vector<128x128xf32> to vector<128x128xbf16>
    %cst_115 = arith.constant dense<0.000000e+00> : vector<128x256xf32>
    %223 = tpu.matmul %222, %219, %cst_115 {dimension_numbers = #tpu.dot_dimension_numbers<[1], [0], [0], [1], [0, 0, 1, 1], [], []>} : vector<128x128xbf16>, vector<128x256xbf16>, vector<128x256xf32> -> vector<128x256xf32>
    %224 = vector.extract_strided_slice %223 {offsets = [0, 128], sizes = [128, 128], strides = [1, 1]} : vector<128x256xf32> to vector<128x128xf32>
    %225 = vector.broadcast %221 : vector<1x128xf32> to vector<128x128xf32>
    %226 = arith.addf %224, %225 : vector<128x128xf32>
    %cst_116 = arith.constant 0.000000e+00 : f32
    %227 = vector.broadcast %cst_116 : f32 to vector<128x128xf32>
    %228 = arith.maximumf %226, %227 : vector<128x128xf32>
    %229 = arith.addf %203, %228 : vector<128x128xf32>
    %230 = arith.addf %228, %206 : vector<128x128xf32>
    %cst_117 = arith.constant 0.000000e+00 : f32
    %231 = vector.broadcast %cst_117 : f32 to vector<128x128xf32>
    %232 = arith.maximumf %230, %231 : vector<128x128xf32>
    %c5 = arith.constant 5 : index
    %c0_118 = arith.constant 0 : index
    %c0_119 = arith.constant 0 : index
    %233 = vector.load %arg8[%c5, %c0_118, %c0_119] : memref<6x128x256xbf16, #tpu.memory_space<vmem>>, vector<1x128x256xbf16>
    %234 = vector.shape_cast %233 : vector<1x128x256xbf16> to vector<128x256xbf16>
    %c5_120 = arith.constant 5 : index
    %c0_121 = arith.constant 0 : index
    %c0_122 = arith.constant 0 : index
    %235 = vector.load %arg9[%c5_120, %c0_121, %c0_122] : memref<6x1x128xf32, #tpu.memory_space<vmem>>, vector<1x1x128xf32>
    %236 = vector.shape_cast %235 : vector<1x1x128xf32> to vector<1x128xf32>
    %237 = arith.truncf %232 : vector<128x128xf32> to vector<128x128xbf16>
    %cst_123 = arith.constant dense<0.000000e+00> : vector<128x256xf32>
    %238 = tpu.matmul %237, %234, %cst_123 {dimension_numbers = #tpu.dot_dimension_numbers<[1], [0], [0], [1], [0, 0, 1, 1], [], []>} : vector<128x128xbf16>, vector<128x256xbf16>, vector<128x256xf32> -> vector<128x256xf32>
    %239 = vector.extract_strided_slice %238 {offsets = [0, 128], sizes = [128, 128], strides = [1, 1]} : vector<128x256xf32> to vector<128x128xf32>
    %240 = vector.broadcast %236 : vector<1x128xf32> to vector<128x128xf32>
    %241 = arith.addf %239, %240 : vector<128x128xf32>
    %cst_124 = arith.constant 0.000000e+00 : f32
    %242 = vector.broadcast %cst_124 : f32 to vector<128x128xf32>
    %243 = arith.maximumf %241, %242 : vector<128x128xf32>
    %c5_125 = arith.constant 5 : index
    %c0_126 = arith.constant 0 : index
    %c0_127 = arith.constant 0 : index
    %244 = vector.load %arg10[%c5_125, %c0_126, %c0_127] : memref<6x128x256xbf16, #tpu.memory_space<vmem>>, vector<1x128x256xbf16>
    %245 = vector.shape_cast %244 : vector<1x128x256xbf16> to vector<128x256xbf16>
    %c5_128 = arith.constant 5 : index
    %c0_129 = arith.constant 0 : index
    %c0_130 = arith.constant 0 : index
    %246 = vector.load %arg11[%c5_128, %c0_129, %c0_130] : memref<6x1x128xf32, #tpu.memory_space<vmem>>, vector<1x1x128xf32>
    %247 = vector.shape_cast %246 : vector<1x1x128xf32> to vector<1x128xf32>
    %248 = arith.truncf %243 : vector<128x128xf32> to vector<128x128xbf16>
    %cst_131 = arith.constant dense<0.000000e+00> : vector<128x256xf32>
    %249 = tpu.matmul %248, %245, %cst_131 {dimension_numbers = #tpu.dot_dimension_numbers<[1], [0], [0], [1], [0, 0, 1, 1], [], []>} : vector<128x128xbf16>, vector<128x256xbf16>, vector<128x256xf32> -> vector<128x256xf32>
    %250 = vector.extract_strided_slice %249 {offsets = [0, 128], sizes = [128, 128], strides = [1, 1]} : vector<128x256xf32> to vector<128x128xf32>
    %251 = vector.broadcast %247 : vector<1x128xf32> to vector<128x128xf32>
    %252 = arith.addf %250, %251 : vector<128x128xf32>
    %cst_132 = arith.constant 0.000000e+00 : f32
    %253 = vector.broadcast %cst_132 : f32 to vector<128x128xf32>
    %254 = arith.maximumf %252, %253 : vector<128x128xf32>
    %255 = arith.addf %229, %254 : vector<128x128xf32>
    %256 = arith.addf %254, %232 : vector<128x128xf32>
    %cst_133 = arith.constant 0.000000e+00 : f32
    %257 = vector.broadcast %cst_133 : f32 to vector<128x128xf32>
    %258 = arith.maximumf %256, %257 : vector<128x128xf32>
    %259 = arith.addf %258, %255 : vector<128x128xf32>
    %260 = vector.shape_cast %259 : vector<128x128xf32> to vector<8x16x128xf32>
    %c0_134 = arith.constant 0 : index
    %c0_135 = arith.constant 0 : index
    %c0_136 = arith.constant 0 : index
    %261 = vector.load %arg12[%c0_134, %c0_135, %c0_136] : memref<1x1x128xf32, #tpu.memory_space<vmem>>, vector<1x1x128xf32>
    %262 = vector.broadcast %261 : vector<1x1x128xf32> to vector<8x16x128xf32>
    %263 = arith.mulf %260, %262 : vector<8x16x128xf32>
    %cst_137 = arith.constant dense<0.000000e+00> : vector<8x16xf32>
    %264 = vector.multi_reduction <add>, %263, %cst_137 [2] : vector<8x16x128xf32> to vector<8x16xf32>
    %c0_138 = arith.constant 0 : index
    %c0_139 = arith.constant 0 : index
    %265 = memref.load %arg13[%c0_138, %c0_139] : memref<1x1xf32, #tpu.memory_space<smem>>
    %266 = vector.broadcast %265 : f32 to vector<8x16xf32>
    %267 = arith.addf %264, %266 : vector<8x16xf32>
    %c0_140 = arith.constant 0 : index
    %c0_141 = arith.constant 0 : index
    %268 = vector.load %arg14[%c0_140, %c0_141] : memref<8x16xf32, #tpu.memory_space<vmem>>, vector<8x16xf32>
    tpu.vector_store %arg14[%c0_140, %c0_141], %267 {strides = array<i32>} : memref<8x16xf32, #tpu.memory_space<vmem>>, vector<8x16xf32>,
    return
  }
  func.func @transform_0(%arg0: i32) -> (i32, i32, i32) {
    %c0_i32 = arith.constant 0 : i32
    %c0_i32_0 = arith.constant 0 : i32
    %c0_i32_1 = arith.constant 0 : i32
    return %arg0, %c0_i32, %c0_i32_0 : i32, i32, i32
  }
  func.func @transform_1(%arg0: i32) -> (i32, i32) {
    %c0_i32 = arith.constant 0 : i32
    %c0_i32_0 = arith.constant 0 : i32
    %c0_i32_1 = arith.constant 0 : i32
    return %c0_i32, %c0_i32_0 : i32, i32
  }
  func.func @transform_2(%arg0: i32) -> (i32, i32) {
    %c0_i32 = arith.constant 0 : i32
    %c0_i32_0 = arith.constant 0 : i32
    %c0_i32_1 = arith.constant 0 : i32
    return %c0_i32, %c0_i32_0 : i32, i32
  }
  func.func @transform_3(%arg0: i32) -> (i32, i32) {
    %c0_i32 = arith.constant 0 : i32
    %c0_i32_0 = arith.constant 0 : i32
    %c0_i32_1 = arith.constant 0 : i32
    return %c0_i32, %c0_i32_0 : i32, i32
  }
  func.func @transform_4(%arg0: i32) -> (i32, i32) {
    %c0_i32 = arith.constant 0 : i32
    %c0_i32_0 = arith.constant 0 : i32
    %c0_i32_1 = arith.constant 0 : i32
    return %c0_i32, %c0_i32_0 : i32, i32
  }
  func.func @transform_5(%arg0: i32) -> (i32, i32) {
    %c0_i32 = arith.constant 0 : i32
    %c0_i32_0 = arith.constant 0 : i32
    %c0_i32_1 = arith.constant 0 : i32
    return %c0_i32, %c0_i32_0 : i32, i32
  }
  func.func @transform_6(%arg0: i32) -> (i32, i32) {
    %c0_i32 = arith.constant 0 : i32
    %c0_i32_0 = arith.constant 0 : i32
    %c0_i32_1 = arith.constant 0 : i32
    return %c0_i32, %c0_i32_0 : i32, i32
  }
  func.func @transform_7(%arg0: i32) -> (i32, i32, i32) {
    %c0_i32 = arith.constant 0 : i32
    %c0_i32_0 = arith.constant 0 : i32
    %c0_i32_1 = arith.constant 0 : i32
    %c0_i32_2 = arith.constant 0 : i32
    return %c0_i32, %c0_i32_0, %c0_i32_1 : i32, i32, i32
  }
  func.func @transform_8(%arg0: i32) -> (i32, i32, i32) {
    %c0_i32 = arith.constant 0 : i32
    %c0_i32_0 = arith.constant 0 : i32
    %c0_i32_1 = arith.constant 0 : i32
    %c0_i32_2 = arith.constant 0 : i32
    return %c0_i32, %c0_i32_0, %c0_i32_1 : i32, i32, i32
  }
  func.func @transform_9(%arg0: i32) -> (i32, i32, i32) {
    %c0_i32 = arith.constant 0 : i32
    %c0_i32_0 = arith.constant 0 : i32
    %c0_i32_1 = arith.constant 0 : i32
    %c0_i32_2 = arith.constant 0 : i32
    return %c0_i32, %c0_i32_0, %c0_i32_1 : i32, i32, i32
  }
  func.func @transform_10(%arg0: i32) -> (i32, i32, i32) {
    %c0_i32 = arith.constant 0 : i32
    %c0_i32_0 = arith.constant 0 : i32
    %c0_i32_1 = arith.constant 0 : i32
    %c0_i32_2 = arith.constant 0 : i32
    return %c0_i32, %c0_i32_0, %c0_i32_1 : i32, i32, i32
  }
  func.func @transform_11(%arg0: i32) -> (i32, i32, i32) {
    %c0_i32 = arith.constant 0 : i32
    %c0_i32_0 = arith.constant 0 : i32
    %c0_i32_1 = arith.constant 0 : i32
    %c0_i32_2 = arith.constant 0 : i32
    return %c0_i32, %c0_i32_0, %c0_i32_1 : i32, i32, i32
  }
  func.func @transform_12(%arg0: i32) -> (i32, i32) {
    %c0_i32 = arith.constant 0 : i32
    %c0_i32_0 = arith.constant 0 : i32
    %c0_i32_1 = arith.constant 0 : i32
    return %c0_i32, %c0_i32_0 : i32, i32
  }
  func.func @transform_13(%arg0: i32) -> (i32, i32) {
    %c0_i32 = arith.constant 0 : i32
    %c0_i32_0 = arith.constant 0 : i32
    return %arg0, %c0_i32 : i32, i32
  }
}

</mosaic_0001>

<bundles_post_ra>
// kernel: tpu_custom_call.1
= control target key start
LH: loop header
LB: loop body
LE: loop exit
PB: predicated region body
PF: predicated region fallthrough
CT: control target
= control target key end

     0   :  { %6 = vsyncpa [#allocation3], 0  ;;  %s219_s0 = inlined_call_operand.hbm [shape: f32[128,128], index: 0, kind: input, shape index: {}]   ;;  %s220_s1 = inlined_call_operand.hbm [shape: f32[128,128], index: 1, kind: output, shape index: {}]  }
   0x1   :  { %7 = vsyncpa [#allocation4], 0  ;;  %s155_s6 = smov [#allocation2]  }
   0x2   :  { %s13_s7 = sshll.u32 %s155_s6, 4  ;;  %s14_s7 = int_to_ptr.vmem [resolvable:$true] %s13_s7 }
   0x3   :  { %s119_s8 = scalar_lea.vmem %s14_s7, 2048  ;;  %p124_p1 = scmp.lt.s32.totalorder %s14_s7, %s14_s7 }
   0x4   :  { %p120_p0 = scmp.ne.s32.totalorder %s14_s7, %s119_s8  ;;  %p125_p2 = scmp.lt.s32.totalorder %s119_s8, %s119_s8 }
   0x6   :  { %p126_p3 = por %p125_p2, %p124_p1 }
   0x8   :  { %p127_p4 = pnand %p126_p3, %p120_p0 }
   0xa   :  { %130 = shalt.err (!%p127_p4)
}
   0xb   :  { %s156_s9 = smov 128   ;;  %s157_s10 = smov 8  }
   0xc   :  { %19 = dma.hbm_to_vmem [thread:$0]  %s219_s0, 2048, %s14_s7, [#allocation3], %s156_s9, %s156_s9, %s157_s10  }
   0xd   :  { %151 = dma.done.wait [#allocation3], 2048  }
   0xe   :  { %152 = vsyncadd [#allocation3], 4294965248  ;;  %v55_v0 = vlaneseq  ;;  %v23_v2 = vld [vmem:[#allocation2] sm:$0xff]  ;;  %v177_v3 = vld [vmem:[#allocation2 + $0x78] sm:$0xff]  ;;  %s158_s0 = smov [#allocation5]  }
   0xf   :  { %v24_v4 = vld [vmem:[#allocation2 + $0x8] sm:$0xff]  ;;  %v39_v5 = vrot.slane %v23_v2, 4  ;;  %v54_v6 = vrot.slane %v177_v3, 4  ;;  %v25_v8 = vld [vmem:[#allocation2 + $0x10] sm:$0xff]  ;;  %v26_v9 = vld [vmem:[#allocation2 + $0x18] sm:$0xff]  ;;  %s95_s13 = sshll.u32 %s158_s0, 4  ;;  %s96_s13 = int_to_ptr.vmem [resolvable:$true] %s95_s13 }
  0x10   :  { %v175_v1 = vshrl.u32 %v55_v0, 7  ;;  %v40_v7 = vrot.slane %v24_v4, 4  ;;  %v27_v10 = vld [vmem:[#allocation2 + $0x20] sm:$0xff]  ;;  %v41_v11 = vrot.slane %v25_v8, 4  ;;  %v42_v12 = vrot.slane %v26_v9, 4  ;;  %v28_v14 = vld [vmem:[#allocation2 + $0x28] sm:$0xff]  ;;  %p136_p6 = scmp.lt.s32.totalorder %s96_s13, %s96_s13 }
  0x11   :  { %v43_v13 = vrot.slane %v27_v10, 4  ;;  %v29_v15 = vld [vmem:[#allocation2 + $0x30] sm:$0xff]  ;;  %v30_v16 = vld [vmem:[#allocation2 + $0x38] sm:$0xff]  ;;  %v44_v19 = vrot.slane %v28_v14, 4  ;;  %v31_v21 = vld [vmem:[#allocation2 + $0x40] sm:$0xff]  ;;  %s131_s14 = scalar_lea.vmem %s96_s13, 2048 }
  0x12   :  { %vm57_vm0 = vcmp.lt.s32.totalorder %v175_v1, 4  ;;  %v45_v20 = vrot.slane %v29_v15, 4  ;;  %v32_v22 = vld [vmem:[#allocation2 + $0x48] sm:$0xff]  ;;  %v33_v23 = vld [vmem:[#allocation2 + $0x50] sm:$0xff]  ;;  %v46_v27 = vrot.slane %v30_v16, 4  ;;  %v34_v28 = vld [vmem:[#allocation2 + $0x58] sm:$0xff]  ;;  %p132_p5 = scmp.ne.s32.totalorder %s96_s13, %s131_s14  ;;  %p137_p7 = scmp.lt.s32.totalorder %s131_s14, %s131_s14 }
  0x13   :  { %v73_v17 = vsel %vm57_vm0, %v54_v6, %v39_v5  ;;  %v72_v18 = vsel %vm57_vm0, %v39_v5, %v40_v7  ;;  %v71_v24 = vsel %vm57_vm0, %v40_v7, %v41_v11  ;;  %v70_v25 = vsel %vm57_vm0, %v41_v11, %v42_v12  ;;  %v35_v29 = vld [vmem:[#allocation2 + $0x60] sm:$0xff]  ;;  %v36_v30 = vld [vmem:[#allocation2 + $0x68] sm:$0xff]  ;;  %v37_v35 = vld [vmem:[#allocation2 + $0x70] sm:$0xff] }
  0x14   :  { %74 = vst [vmem:[#allocation5] sm:$0xff] %v73_v17  ;;  %75 = vst [vmem:[#allocation5 + $0x8] sm:$0xff] %v72_v18  ;;  %v69_v26 = vsel %vm57_vm0, %v42_v12, %v43_v13  ;;  %v68_v31 = vsel %vm57_vm0, %v43_v13, %v44_v19  ;;  %v67_v32 = vsel %vm57_vm0, %v44_v19, %v45_v20  ;;  %v47_v33 = vrot.slane %v31_v21, 4  ;;  %p138_p8 = por %p137_p7, %p136_p6 }
  0x15   :  { %76 = vst [vmem:[#allocation5 + $0x10] sm:$0xff] %v71_v24  ;;  %77 = vst [vmem:[#allocation5 + $0x18] sm:$0xff] %v70_v25  ;;  %v48_v34 = vrot.slane %v32_v22, 4  ;;  %v66_v36 = vsel %vm57_vm0, %v45_v20, %v46_v27  ;;  %v49_v37 = vrot.slane %v33_v23, 4  ;;  %v50_v38 = vrot.slane %v34_v28, 4 }
  0x16   :  { %78 = vst [vmem:[#allocation5 + $0x20] sm:$0xff] %v69_v26  ;;  %79 = vst [vmem:[#allocation5 + $0x28] sm:$0xff] %v68_v31  ;;  %v51_v39 = vrot.slane %v35_v29, 4  ;;  %v65_v40 = vsel %vm57_vm0, %v46_v27, %v47_v33  ;;  %v52_v42 = vrot.slane %v36_v30, 4  ;;  %v53_v43 = vrot.slane %v37_v35, 4  ;;  %p139_p9 = pnand %p138_p8, %p132_p5 }
  0x17   :  { %80 = vst [vmem:[#allocation5 + $0x30] sm:$0xff] %v67_v32  ;;  %81 = vst [vmem:[#allocation5 + $0x38] sm:$0xff] %v66_v36  ;;  %v64_v41 = vsel %vm57_vm0, %v47_v33, %v48_v34  ;;  %v63_v44 = vsel %vm57_vm0, %v48_v34, %v49_v37  ;;  %v62_v45 = vsel %vm57_vm0, %v49_v37, %v50_v38 }
  0x18   :  { %82 = vst [vmem:[#allocation5 + $0x40] sm:$0xff] %v65_v40  ;;  %83 = vst [vmem:[#allocation5 + $0x48] sm:$0xff] %v64_v41  ;;  %v61_v46 = vsel %vm57_vm0, %v50_v38, %v51_v39  ;;  %v60_v47 = vsel %vm57_vm0, %v51_v39, %v52_v42  ;;  %v59_v48 = vsel %vm57_vm0, %v52_v42, %v53_v43 }
  0x19   :  { %84 = vst [vmem:[#allocation5 + $0x50] sm:$0xff] %v63_v44  ;;  %85 = vst [vmem:[#allocation5 + $0x58] sm:$0xff] %v62_v45  ;;  %v58_v49 = vsel %vm57_vm0, %v53_v43, %v54_v6 }
  0x1a   :  { %86 = vst [vmem:[#allocation5 + $0x60] sm:$0xff] %v61_v46  ;;  %87 = vst [vmem:[#allocation5 + $0x68] sm:$0xff] %v60_v47 }
  0x1b   :  { %88 = vst [vmem:[#allocation5 + $0x70] sm:$0xff] %v59_v48  ;;  %89 = vst [vmem:[#allocation5 + $0x78] sm:$0xff] %v58_v49 }
  0x1c   :  { %142 = shalt.err (!%p139_p9)
}
  0x1d   :  { %101 = dma.vmem_to_hbm [thread:$0]  %s96_s13, 2048, %s220_s1, [#allocation4], %s156_s9, %s156_s9, %s157_s10  }
  0x1e   :  { %153 = dma.done.wait [#allocation4], 2048  }
  0x1f   :  { %154 = vsyncadd [#allocation4], 4294965248 }
  0x20   :  { %105 = vsyncpa [#allocation3], 1 }
  0x21   :  { %106 = vsyncpa [#allocation4], 1 }

// kernel: tpu_custom_call.1
= control target key start
LH: loop header
LB: loop body
LE: loop exit
PB: predicated region body
PF: predicated region fallthrough
CT: control target
= control target key end

     0   :  { %s8094_s0 = inlined_call_operand.vmem [shape: f32[16,16,1], index: 0, kind: input, shape index: {}]   ;;  %s8095_s1 = inlined_call_operand.vmem [shape: f32[1,128], index: 1, kind: input, shape index: {}]   ;;  %s8096_s2 = inlined_call_operand.vmem [shape: f32[1,128], index: 2, kind: input, shape index: {}]   ;;  %s8097_s3 = inlined_call_operand.vmem [shape: bf16[128,128], index: 3, kind: input, shape index: {}]   ;;  %s8098_s4 = inlined_call_operand.vmem [shape: f32[1,128], index: 4, kind: input, shape index: {}]   ;;  %s8099_s5 = inlined_call_operand.vmem [shape: f32[1,128], index: 5, kind: input, shape index: {}]   ;;  %s8100_s6 = inlined_call_operand.vmem [shape: f32[1,128], index: 6, kind: input, shape index: {}]   ;;  %s8101_s7 = inlined_call_operand.hbm [shape: bf16[6,128,256], index: 7, kind: input, shape index: {}]   ;;  %s8102_s8 = inlined_call_operand.vmem [shape: f32[6,1,128], index: 8, kind: input, shape index: {}]   ;;  %s8103_s9 = inlined_call_operand.hbm [shape: bf16[6,128,256], index: 9, kind: input, shape index: {}]   ;;  %s8104_s10 = inlined_call_operand.vmem [shape: f32[6,1,128], index: 10, kind: input, shape index: {}]   ;;  %s8105_s11 = inlined_call_operand.vmem [shape: f32[1,1,128], index: 11, kind: input, shape index: {}]   ;;  %s8106_s12 = inlined_call_operand.<no memory space> [shape: f32[1,1], index: 12, kind: input, shape index: {}]   ;;  %s8107_s13 = inlined_call_operand.hbm [shape: f32[16,16], index: 13, kind: output, shape index: {}]  }
   0x1   :  { %18 = sst [smem:[#allocation2]] %s8106_s12 }
   0x2   :  { %19 = vsyncpa [#allocation4], 0 }
   0x3   :  { %20 = vsyncpa [#allocation7], 0 }
   0x4   :  { %21 = vsyncpa [#allocation5], 0 }
   0x5   :  { %23 = vsyncpa [#allocation5 + $0x1], 0  ;;  %s6034_s27 = smov 0   ;;  %s6036_s28 = smov 0  }
   0x6   :  { %s6038_s29 = smov 0   ;;  %s6040_s30 = smov 0  }
   0x7 LB: > { %8200 = sst [smem:[#allocation12_spill]] %s5949_s29  ;;  %s6055_s12 = sadd.s32 4294967295, %s5953_s30   ;;  %s5953_s30 = sphi %s6040_s30, %s8310_s30   ;;  %s5949_s29 = sphi %s6038_s29, %s8307_s29   ;;  %s5945_s28 = sphi %s6036_s28, %s8309_s28   ;;  %s5941_s27 = sphi %s6034_s27, %s8308_s27  }
   0x8   : > { %s5163_s14 = sadd.s32 4294967294, %s5953_s30   ;;  %s6059_s15 = sadd.s32 1, %s5953_s30  }
   0x9   : > { %s314_s16 = sadd.s32 1, %s5949_s29  ;;  %s311_s17 = ssub.s32 %s5953_s30, %s6059_s15 }
   0xa   : > { %p324_p0 = scmp.ne.s32.totalorder %s5949_s29, %s5945_s28  ;;  %p312_p1 = scmp.eq.s32.totalorder %s311_s17, 0 }
   0xb   : > { %p325_p2 = scmp.eq.s32.totalorder %s6055_s12, 1  ;;  %p330_p3 = scmp.ne.s32.totalorder %s5945_s28, %s5941_s27 }
   0xc   : > { %p331_p4 = scmp.eq.s32.totalorder %s5163_s14, 1  ;;  %p5164_p7 = scmp.ge.s32.totalorder %s5953_s30, 1 }
   0xd   : > { %s6070_s18 = scalar_select %p312_p1, %s5949_s29, %s314_s16  }
   0xe   : > { %p6072_p5 = por %p325_p2, %p324_p0  ;;  %p6076_p6 = por %p331_p4, %p330_p3 }
   0xf   : > { %8201 = sst [smem:[#allocation13_spill]] %s6070_s18  ;;  %p338_p8 = scmp.lt.s32.totalorder %s5953_s30, 3 }
  0x10   : > { %s8203_s20 = scalar_select %p6076_p6, 1, 0 }
  0x11   : > { %p8108_p9 = scmp.eq.s32.totalorder %s6055_s12, 0  ;;  %p6083_p10 = pnand %p5164_p7, %p338_p8 }
  0x12   : > { %s5955_s22 = smov [#allocation3]   ;;  %s5956_s25 = smov [#allocation6]  }
  0x13   : > { %s368_s23 = sshll.u32 %s5955_s22, 4  ;;  %p5482_p11 = pneg %p6083_p10  ;;  %s369_s23 = int_to_ptr.vmem [resolvable:$true] %s368_s23 }
  0x14   : > { %s384_s26 = sshll.u32 %s5956_s25, 4  ;;  %s5844_s14 = scalar_lea.vmem %s369_s23, 12288  ;;  %s385_s26 = int_to_ptr.vmem [resolvable:$true] %s384_s26 }
  0x15   : > { %p6091_p12 = pnand %p8108_p9, %p5482_p11  ;;  %p5845_p0 = scmp.ne.s32.totalorder %s369_s23, %s5844_s14 }
  0x16   : > { %p5852_p3 = scmp.lt.s32.totalorder %s369_s23, %s369_s23  ;;  %p5853_p4 = scmp.lt.s32.totalorder %s5844_s14, %s5844_s14 }
  0x17   : > { %p5835_p13 = pneg %p6091_p12 }
  0x18   : > { %p5854_p7 = por %p5853_p4, %p5852_p3 }
  0x19   : > { %p5847_p1 = pnand %p5845_p0, %p5835_p13 }
  0x1b   : > { %p5848_p2 = pneg %p5847_p1 }
  0x1d   : > { %p5855_p8 = pnand %p5854_p7, %p5848_p2 }
  0x1f   : > { %5858 = shalt.err (!%p5855_p8)
}
  0x20   : > { %s5957_s16 = smov 128   ;;  %s5958_s17 = smov 8  }
  0x21   : > { %5485 = dma.hbm_to_vmem [thread:$0]  (!%p6091_p12), %s8101_s7, 12288, %s369_s23, [#allocation4], %s5957_s16, %s5957_s16, %s5958_s17  }
  0x22   : > { %s5870_s18 = scalar_lea.vmem %s385_s26, 12288  ;;  %p5878_p9 = scmp.lt.s32.totalorder %s385_s26, %s385_s26 }
  0x23   : > { %p5871_p11 = scmp.ne.s32.totalorder %s385_s26, %s5870_s18  ;;  %p5879_p6 = scmp.lt.s32.totalorder %s5870_s18, %s5870_s18 }
  0x25   : > { %p5873_p0 = pnand %p5871_p11, %p5835_p13  ;;  %p5880_p3 = por %p5879_p6, %p5878_p9 }
  0x27   : > { %p5874_p1 = pneg %p5873_p0 }
  0x29   : > { %p5881_p2 = pnand %p5880_p3, %p5874_p1 }
  0x2b   : > { %5884 = shalt.err (!%p5881_p2)
}
  0x2c   : > { %5488 = dma.hbm_to_vmem [thread:$0]  (!%p6091_p12), %s8103_s9, 12288, %s385_s26, [#allocation7], %s5957_s16, %s5957_s16, %s5958_s17  }
  0x2d   : > { %419 = sbr.rel (%p6083_p10) target bundleno = 3130 (0xc3a), region = 72 }
  0x32   : > { %p8206_p4 = scmp.eq.s32.totalorder %s6055_s12, 0 }
  0x34   : > { %5928 = dma.done.wait (%p8206_p4), [#allocation4], 12288   ;;  %p8207_p13 = pmov %p8206_p4 }
  0x35   : > { %p8208_p7 = pmov %p8206_p4 }
  0x36   : > { %5930 = vsyncadd (%p8207_p13), [#allocation4], 4294955008 }
  0x37   : > { %5932 = dma.done.wait (%p8208_p7), [#allocation7], 12288   ;;  %p8209_p6 = pmov %p8206_p4 }
  0x38   : > { %s5172_s18 = sshll.u32 %s6055_s12, 3  ;;  %v8165_v0 = vmov 0   ;;  %v5537_v7 = vld [vmem:[%s8097_s3 + $0x38] sm:$0xff]   ;;  %v5538_v8 = vld [vmem:[%s8097_s3 + $0x30] sm:$0xff]   ;;  %v5539_v11 = vld [vmem:[%s8097_s3 + $0x28] sm:$0xff]   ;;  %vm1141_vm0 = vcmask 1040384  }
  0x39   : > { %5934 = vsyncadd (%p8209_p6), [#allocation7], 4294955008  ;;  %5536 = vset.pattern.permute.xlu1 %v8165_v0  ;;  %5535 = vset.pattern.permute.xlu0 %v8165_v0  ;;  %p469_p9 = scmp.lt.s32.totalorder %s5172_s18, 15  ;;  %v5540_v14 = vld [vmem:[%s8097_s3 + $0x20] sm:$0xff]   ;;  %v5541_v17 = vld [vmem:[%s8097_s3 + $0x18] sm:$0xff]   ;;  %vm1898_vm2 = vcmask 1041408  }
  0x3a   : > { %1044 = vmatprep.mubr.bf16.mxu1 %v8165_v0  ;;  %5424 = vmatprep.subr.bf16.mxu0 %v5537_v7  ;;  %v5542_v20 = vld [vmem:[%s8097_s3 + $0x10] sm:$0xff]   ;;  %v5543_v23 = vld [vmem:[%s8097_s3 + $0x8] sm:$0xff]   ;;  %v5544_v24 = vld [vmem:[%s8097_s3] sm:$0xff]   ;;  %vm2657_vm4 = vcmask 1043456   ;;  %s4941_s21 = sld [smem:[#allocation2]]  ;;  %vm4986_vm6 = vcmask 130112  }
  0x3b   : > { %s8312_s18 = smov (!%p469_p9, %s5172_s18), 15  ;;  %5425 = vmatpush3.bf16.msra.mxu0 %v5537_v7  ;;  %v5545_v25 = vld [vmem:[#allocation3 + $0x74] ss:$8 sps:$4 sm:$0xff]   ;;  %v5547_v26 = vld [vmem:[#allocation3 + $0x70] ss:$8 sps:$4 sm:$0xff]   ;;  %s465_s23 = sand.u32 1, %s5945_s28  }
  0x3c   : > { %s5407_s29 = sshll.u32 %s8312_s18, 4  ;;  %5426 = vmatprep.subr.bf16.mxu0 %v5538_v8  ;;  %v5548_v27 = vld [vmem:[#allocation3 + $0x64] ss:$8 sps:$4 sm:$0xff]   ;;  %1012 = vmatprep.subr.bf16.mxu1 %v5545_v25  ;;  %v5550_v28 = vld [vmem:[#allocation3 + $0x60] ss:$8 sps:$4 sm:$0xff]   ;;  %vm5051_vm7 = vcmask 1041409  }
  0x3d   : > { %s6130_s24 = scalar_lea.vmem %s8094_s0, %s5407_s29  ;;  %v5551_v29 = vld [vmem:[#allocation3 + $0x54] ss:$8 sps:$4 sm:$0xff]   ;;  %1013 = vmatpush1.bf16.msra.mxu1 %v5547_v26  ;;  %v5553_v30 = vld [vmem:[#allocation3 + $0x50] ss:$8 sps:$4 sm:$0xff]   ;;  %v5554_v31 = vld [vmem:[#allocation3 + $0x44] ss:$8 sps:$4 sm:$0xff]  }
  0x3e   : > { %v481_v1 = vld [vmem:[%s6130_s24 + $0x10] sm:$0xff]  ;;  %v479_v2 = vld [vmem:[%s6130_s24] sm:$0xff]  ;;  %v482_v3 = vld [vmem:[%s6130_s24 + $0x18] sm:$0xff]  ;;  %1014 = vmatprep.subr.bf16.mxu1 %v5548_v27  ;;  %vm5053_vm8 = vcmask 1042434   ;;  %s8036_s26 = sshll.u32 %s465_s23, 3  ;;  %vm5055_vm9 = vcmask 1043459  }
  0x3f   : > { %508 = vperm.xlu1 %5536, %v481_v1   ;;  %498 = vperm.xlu0 %5535, %v479_v2   ;;  %v480_v4 = vld [vmem:[%s6130_s24 + $0x8] sm:$0xff]  ;;  %v483_v6 = vld [vmem:[%s6130_s24 + $0x20] sm:$0xff]  ;;  %v486_v9 = vld [vmem:[%s6130_s24 + $0x38] sm:$0xff]  ;;  %vm5057_vm10 = vcmask 1044484   ;;  %vm5059_vm11 = vcmask 1045509   ;;  %vm5061_vm12 = vcmask 1046534  }
  0x40   : > { %v484_v5 = vld [vmem:[%s6130_s24 + $0x28] sm:$0xff]  ;;  %v485_v10 = vld [vmem:[%s6130_s24 + $0x30] sm:$0xff]  ;;  %v487_v13 = vld [vmem:[%s6130_s24 + $0x40] sm:$0xff]  ;;  %5427 = vmatpush3.bf16.msra.mxu0 %v5538_v8  ;;  %s5404_s16 = sshll.u32 %s6055_s12, 7  ;;  %s467_s17 = scalar_lea.vmem [#allocation8], %s8036_s26  ;;  %vm5063_vm13 = vcmask 1047559  }
  0x41   : > { %v488_v12 = vld [vmem:[%s6130_s24 + $0x48] sm:$0xff]  ;;  %5428 = vmatprep.subr.bf16.mxu0 %v5539_v11  ;;  %v490_v15 = vld [vmem:[%s6130_s24 + $0x58] sm:$0xff]  ;;  %v489_v16 = vld [vmem:[%s6130_s24 + $0x50] sm:$0xff]  ;;  %1015 = vmatpush1.bf16.msra.mxu1 %v5550_v28  ;;  %s5082_s22 = sshll.u32 %s467_s17, 4  ;;  %vm5066_vm14 = vcmask 130048   ;;  %s5069_s12 = scalar_lea.sflag [#allocation5], %s465_s23  ;;  %s5083_s22 = int_to_ptr.vmem [resolvable:$true] %s5082_s22 }
  0x42   : > { %v492_v18 = vld [vmem:[%s6130_s24 + $0x68] sm:$0xff]  ;;  %v491_v19 = vld [vmem:[%s6130_s24 + $0x60] sm:$0xff]  ;;  %v494_v21 = vld [vmem:[%s6130_s24 + $0x78] sm:$0xff]  ;;  %1016 = vmatprep.subr.bf16.mxu1 %v5551_v29  ;;  %s5885_s18 = scalar_lea.vmem %s5083_s22, 128  ;;  %s5960_s29 = smov [#allocation8]  }
  0x43   : > { %513 = vperm.xlu1 %5536, %v482_v3   ;;  %503 = vperm.xlu0 %5535, %v480_v4   ;;  %v493_v22 = vld [vmem:[%s6130_s24 + $0x70] sm:$0xff]  ;;  %v5556_v32 = vld [vmem:[#allocation3 + $0x40] ss:$8 sps:$4 sm:$0xff]   ;;  %s8057_s24 = scalar_lea.hbm %s8107_s13, %s5404_s16  ;;  %p5886_p10 = scmp.ne.s32.totalorder %s5083_s22, %s5885_s18 }
  0x44   : > { %5429 = vmatpush3.bf16.msra.mxu0 %v5539_v11  ;;  %v6175_v33 = vld [vmem:[%s8095_s1] ss:$0 sm:$0xff] }
  0x45   : > { %5430 = vmatprep.subr.bf16.mxu0 %v5540_v14  ;;  %1017 = vmatpush1.bf16.msra.mxu1 %v5553_v30  ;;  %v6186_v37 = vld [vmem:[%s8096_s2] ss:$0 sm:$0xff]  ;;  %p5887_p12 = pnand %p5886_p10, %p6072_p5 }
  0x46   : > { %1018 = vmatprep.subr.bf16.mxu1 %v5554_v31 }
  0x47   : > { %523 = vperm.xlu1 %5536, %v484_v5   ;;  %518 = vperm.xlu0 %5535, %v483_v6   ;;  %p5888_p8 = pneg %p5887_p12 }
  0x48   : > { %5431 = vmatpush3.bf16.msra.mxu0 %v5540_v14 }
  0x49   : > { %5432 = vmatprep.subr.bf16.mxu0 %v5541_v17  ;;  %1019 = vmatpush1.bf16.msra.mxu1 %v5556_v32 }
  0x4b   : > { %533 = vperm.xlu1 %5536, %v486_v9   ;;  %528 = vperm.xlu0 %5535, %v485_v10  }
  0x4c   : > { %5433 = vmatpush3.bf16.msra.mxu0 %v5541_v17 }
  0x4d   : > { %5434 = vmatprep.subr.bf16.mxu0 %v5542_v20 }
  0x4f   : > { %543 = vperm.xlu1 %5536, %v488_v12   ;;  %538 = vperm.xlu0 %5535, %v487_v13  }
  0x50   : > { %5435 = vmatpush3.bf16.msra.mxu0 %v5542_v20 }
  0x51   : > { %5436 = vmatprep.subr.bf16.mxu0 %v5543_v23 }
  0x53   : > { %553 = vperm.xlu1 %5536, %v490_v15   ;;  %548 = vperm.xlu0 %5535, %v489_v16  }
  0x54   : > { %5437 = vmatpush3.bf16.msra.mxu0 %v5543_v23 }
  0x55   : > { %5438 = vmatprep.subr.bf16.mxu0 %v5544_v24 }
  0x57   : > { %563 = vperm.xlu1 %5536, %v492_v18   ;;  %558 = vperm.xlu0 %5535, %v491_v19  }
  0x58   : > { %5439 = vmatpush3.bf16.msra.mxu0 %v5544_v24 }
  0x5b   : > { %573 = vperm.xlu1 %5536, %v494_v21   ;;  %568 = vperm.xlu0 %5535, %v493_v22  }
  0xba   : > { %v6177_v34 = vpop.permute.xlu1 %508  ;;  %v6179_v35 = vpop.permute.xlu0 %498 }
  0xbb   : > { %v584_v36 = vmul.f32 %v6175_v33, %v6177_v34  ;;  %v582_v38 = vmul.f32 %v6175_v33, %v6179_v35 }
  0xbd   : > { %v607_v41 = vadd.f32 %v6186_v37, %v584_v36  ;;  %v605_v44 = vadd.f32 %v6186_v37, %v582_v38 }
  0xbe   : > { %v6190_v39 = vpop.permute.xlu1 %513  ;;  %v6192_v40 = vpop.permute.xlu0 %503 }
  0xbf   : > { %v585_v42 = vmul.f32 %v6175_v33, %v6190_v39  ;;  %v583_v43 = vmul.f32 %v6175_v33, %v6192_v40  ;;  %v623_v49 = vmax.f32 %v607_v41, 0.0  ;;  %v621_v53 = vmax.f32 %v605_v44, 0.0 }
  0xc1   : > { %v608_v45 = vadd.f32 %v6186_v37, %v585_v42  ;;  %v606_v46 = vadd.f32 %v6186_v37, %v583_v43 }
  0xc2   : > { %v6202_v47 = vpop.permute.xlu1 %523  ;;  %v6204_v48 = vpop.permute.xlu0 %518 }
  0xc3   : > { %v624_v50 = vmax.f32 %v608_v45, 0.0  ;;  %v587_v51 = vmul.f32 %v6175_v33, %v6202_v47  ;;  %v586_v52 = vmul.f32 %v6175_v33, %v6204_v48  ;;  %v622_v54 = vmax.f32 %v606_v46, 0.0 }
  0xc5   : > { %v610_v55 = vadd.f32 %v6186_v37, %v587_v51  ;;  %v609_v56 = vadd.f32 %v6186_v37, %v586_v52  ;;  %v654_v57 = vpack.c.bf16 %v624_v50, %v623_v49  ;;  %v653_v60 = vpack.c.bf16 %v622_v54, %v621_v53  ;;  %v5557_v52 = vld [vmem:[#allocation3 + $0x34] ss:$8 sps:$4 sm:$0xff]   ;;  %v5559_v53 = vld [vmem:[#allocation3 + $0x30] ss:$8 sps:$4 sm:$0xff]   ;;  %v5560_v54 = vld [vmem:[#allocation3 + $0x24] ss:$8 sps:$4 sm:$0xff]  }
  0xc6   : > { %v6212_v58 = vpop.permute.xlu1 %533  ;;  %v6214_v59 = vpop.permute.xlu0 %528  ;;  %1020 = vmatprep.subr.bf16.mxu1 %v5557_v52 }
  0xc7   : > { %v626_v61 = vmax.f32 %v610_v55, 0.0  ;;  %v625_v62 = vmax.f32 %v609_v56, 0.0  ;;  %v589_v63 = vmul.f32 %v6175_v33, %v6212_v58  ;;  %v588_v1 = vmul.f32 %v6175_v33, %v6214_v59  ;;  %5440 = vmatprep.mubr.bf16.mxu0 %v653_v60  ;;  %1021 = vmatpush1.bf16.msra.mxu1 %v5559_v53  ;;  %v5562_v55 = vld [vmem:[#allocation3 + $0x20] ss:$8 sps:$4 sm:$0xff]   ;;  %v5565_v56 = vld [vmem:[#allocation3 + $0x10] ss:$8 sps:$4 sm:$0xff]  }
  0xc8   : > { %5441 = vmatmul.mubr.bf16.vlgmr.msra.gmra.mxu0 %v654_v57  ;;  %1022 = vmatprep.subr.bf16.mxu1 %v5560_v54  ;;  %v5568_v57 = vld [vmem:[#allocation3] ss:$8 sps:$4 sm:$0xff]   ;;  %v5569_v60 = vld [vmem:[#allocation6 + $0x70] ss:$8 sps:$4 sm:$0xff]  }
  0xc9   : > { %v612_v2 = vadd.f32 %v6186_v37, %v589_v63  ;;  %v655_v3 = vpack.c.bf16 %v626_v61, %v625_v62  ;;  %v611_v4 = vadd.f32 %v6186_v37, %v588_v1  ;;  %v5571_v61 = vld [vmem:[#allocation6 + $0x74] ss:$8 sps:$4 sm:$0xff]   ;;  %v5574_v62 = vld [vmem:[#allocation6 + $0x64] ss:$8 sps:$4 sm:$0xff]   ;;  %v5572_v63 = vld [vmem:[#allocation6 + $0x60] ss:$8 sps:$4 sm:$0xff]  }
  0xca   : > { %v6222_v5 = vpop.permute.xlu1 %543  ;;  %v6224_v6 = vpop.permute.xlu0 %538  ;;  %1367 = vmatprep.subr.bf16.mxu0 %v5571_v61  ;;  %v5577_v1 = vld [vmem:[#allocation6 + $0x54] ss:$8 sps:$4 sm:$0xff]  }
  0xcb   : > { %v628_v7 = vmax.f32 %v612_v2, 0.0  ;;  %v591_v8 = vmul.f32 %v6175_v33, %v6222_v5  ;;  %v590_v9 = vmul.f32 %v6175_v33, %v6224_v6  ;;  %5444 = vmatprep.mubr.bf16.mxu0 %v655_v3  ;;  %v627_v10 = vmax.f32 %v611_v4, 0.0  ;;  %1023 = vmatpush1.bf16.msra.mxu1 %v5562_v55  ;;  %v5575_v2 = vld [vmem:[#allocation6 + $0x50] ss:$8 sps:$4 sm:$0xff]   ;;  %v5580_v3 = vld [vmem:[#allocation6 + $0x44] ss:$8 sps:$4 sm:$0xff]  }
  0xcc   : > { %1368 = vmatpush1.bf16.msra.mxu0 %v5569_v60  ;;  %v5578_v4 = vld [vmem:[#allocation6 + $0x40] ss:$8 sps:$4 sm:$0xff]  }
  0xcd   : > { %v614_v11 = vadd.f32 %v6186_v37, %v591_v8  ;;  %v613_v12 = vadd.f32 %v6186_v37, %v590_v9  ;;  %v656_v15 = vpack.c.bf16 %v628_v7, %v627_v10  ;;  %1369 = vmatprep.subr.bf16.mxu0 %v5574_v62  ;;  %v5583_v7 = vld [vmem:[#allocation6 + $0x34] ss:$8 sps:$4 sm:$0xff]   ;;  %v5581_v8 = vld [vmem:[#allocation6 + $0x30] ss:$8 sps:$4 sm:$0xff]   ;;  %v6266_v10 = vld [vmem:[%s8099_s5] ss:$0 sm:$0xff] }
  0xce   : > { %v6232_v13 = vpop.permute.xlu1 %553  ;;  %v6234_v14 = vpop.permute.xlu0 %548  ;;  %v841_v54 = vmul.f32 %v6266_v10, %v6202_v47 }
  0xcf   : > { %v630_v16 = vmax.f32 %v614_v11, 0.0  ;;  %v629_v17 = vmax.f32 %v613_v12, 0.0  ;;  %v593_v18 = vmul.f32 %v6175_v33, %v6232_v13  ;;  %v592_v19 = vmul.f32 %v6175_v33, %v6234_v14  ;;  %v6271_v11 = vld [vmem:[%s8098_s4] ss:$0 sm:$0xff] }
  0xd0   : > { %5445 = vmatmul.mubr.bf16.gmra.mxu0 %v656_v15 }
  0xd1   : > { %v616_v20 = vadd.f32 %v6186_v37, %v593_v18  ;;  %v657_v21 = vpack.c.bf16 %v630_v16, %v629_v17  ;;  %v615_v22 = vadd.f32 %v6186_v37, %v592_v19  ;;  %1370 = vmatpush1.bf16.msra.mxu0 %v5572_v63  ;;  %v836_v16 = vmul.f32 %v6266_v10, %v6179_v35  ;;  %v6281_v18 = vld [vmem:[%s8100_s6] ss:$0 sm:$0xff] }
  0xd2   : > { %v6242_v23 = vpop.permute.xlu1 %563  ;;  %v6244_v24 = vpop.permute.xlu0 %558  ;;  %1371 = vmatprep.subr.bf16.mxu0 %v5577_v1  ;;  %v837_v19 = vmul.f32 %v6266_v10, %v6192_v40  ;;  %v864_v47 = vadd.f32 %v6281_v18, %v841_v54 }
  0xd3   : > { %v632_v25 = vmax.f32 %v616_v20, 0.0  ;;  %v595_v26 = vmul.f32 %v6175_v33, %v6242_v23  ;;  %v594_v27 = vmul.f32 %v6175_v33, %v6244_v24  ;;  %5448 = vmatprep.mubr.bf16.mxu0 %v657_v21  ;;  %v631_v28 = vmax.f32 %v615_v22, 0.0 }
  0xd5   : > { %v618_v29 = vadd.f32 %v6186_v37, %v595_v26  ;;  %v617_v30 = vadd.f32 %v6186_v37, %v594_v27  ;;  %v658_v36 = vpack.c.bf16 %v632_v25, %v631_v28  ;;  %1372 = vmatpush1.bf16.msra.mxu0 %v5575_v2  ;;  %v859_v25 = vadd.f32 %v6281_v18, %v836_v16 }
  0xd6   : > { %v6252_v31 = vpop.permute.xlu1 %573  ;;  %v6254_v32 = vpop.permute.xlu0 %568  ;;  %1373 = vmatprep.subr.bf16.mxu0 %v5580_v3  ;;  %v860_v27 = vadd.f32 %v6281_v18, %v837_v19 }
  0xd7   : > { %v634_v38 = vmax.f32 %v618_v29, 0.0  ;;  %v633_v41 = vmax.f32 %v617_v30, 0.0  ;;  %v597_v42 = vmul.f32 %v6175_v33, %v6252_v31  ;;  %v596_v43 = vmul.f32 %v6175_v33, %v6254_v32  ;;  %v5563_v33 = vld [vmem:[#allocation3 + $0x14] ss:$8 sps:$4 sm:$0xff]  }
  0xd8   : > { %5449 = vmatmul.mubr.bf16.gmra.mxu0 %v658_v36  ;;  %1024 = vmatprep.subr.bf16.mxu1 %v5563_v33  ;;  %v839_v29 = vmul.f32 %v6266_v10, %v6190_v39 }
  0xd9   : > { %v620_v44 = vadd.f32 %v6186_v37, %v597_v42  ;;  %v659_v45 = vpack.c.bf16 %v634_v38, %v633_v41  ;;  %v619_v46 = vadd.f32 %v6186_v37, %v596_v43  ;;  %1025 = vmatpush1.bf16.msra.mxu1 %v5565_v56  ;;  %v5566_v37 = vld [vmem:[#allocation3 + $0x4] ss:$8 sps:$4 sm:$0xff]   ;;  %1374 = vmatpush1.bf16.msra.mxu0 %v5578_v4 }
  0xda   : > { %1026 = vmatprep.subr.bf16.mxu1 %v5566_v37  ;;  %1375 = vmatprep.subr.bf16.mxu0 %v5583_v7  ;;  %v838_v41 = vmul.f32 %v6266_v10, %v6177_v34  ;;  %v840_v56 = vmul.f32 %v6266_v10, %v6204_v48  ;;  %v843_v4 = vmul.f32 %v6266_v10, %v6212_v58 }
  0xdb   : > { %v636_v49 = vmax.f32 %v620_v44, 0.0  ;;  %5452 = vmatprep.mubr.bf16.mxu0 %v659_v45  ;;  %v635_v50 = vmax.f32 %v619_v46, 0.0  ;;  %v862_v44 = vadd.f32 %v6281_v18, %v839_v29 }
  0xdc   : > { %v863_v63 = vadd.f32 %v6281_v18, %v840_v56  ;;  %v866_v58 = vadd.f32 %v6281_v18, %v843_v4  ;;  %v847_v4 = vmul.f32 %v6266_v10, %v6232_v13 }
  0xdd   : > { %v660_v51 = vpack.c.bf16 %v636_v49, %v635_v50  ;;  %1027 = vmatpush1.bf16.msra.mxu1 %v5568_v57  ;;  %1376 = vmatpush1.bf16.msra.mxu0 %v5581_v8  ;;  %v861_v50 = vadd.f32 %v6281_v18, %v838_v41 }
  0xde   : > { %v870_v13 = vadd.f32 %v6281_v18, %v847_v4 }
  0xe0   : > { %5453 = vmatmul.mubr.bf16.gmra.mxu0 %v660_v51 }
  0xe1   : > { %1399 = vmatprep.mubr.bf16.mxu0 %v8165_v0 }
 0x188   : > { %v5442_v9 = vpop.f32.mrf.mxu0 }
 0x189   : > { %v6298_v40 = vadd.f32 %v5442_v9, %v6271_v11  ;;  %v842_v9 = vmul.f32 %v6266_v10, %v6214_v59 }
 0x18a   : > { %v750_v12 = vpop.f32.mrf.mxu0 }
 0x18b   : > { %v6274_v15 = vadd.f32 %v6271_v11, %v750_v12  ;;  %v8124_v45 = vmax.f32 %v6298_v40, 0.0 }
 0x18c   : > { %v5443_v17 = vpop.f32.mrf.mxu0 }
 0x18d   : > { %v8126_v20 = vmax.f32 %v6274_v15, 0.0  ;;  %v6291_v26 = vadd.f32 %v5443_v17, %v6271_v11  ;;  %v6331_v55 = vadd.f32 %v861_v50, %v8124_v45 }
 0x18e   : > { %v753_v21 = vpop.f32.mrf.mxu0 }
 0x18f   : > { %v6287_v22 = vadd.f32 %v6271_v11, %v753_v21  ;;  %v6302_v30 = vadd.f32 %v859_v25, %v8126_v20  ;;  %v8122_v42 = vmax.f32 %v6291_v26, 0.0  ;;  %v893_v61 = vmax.f32 %v6331_v55, 0.0 }
 0x190   : > { %v5446_v35 = vpop.f32.mrf.mxu0  ;;  %v865_v25 = vadd.f32 %v6281_v18, %v842_v9 }
 0x191   : > { %v8125_v28 = vmax.f32 %v6287_v22, 0.0  ;;  %v891_v46 = vmax.f32 %v6302_v30, 0.0  ;;  %v6318_v51 = vadd.f32 %v862_v44, %v8122_v42  ;;  %v6359_v7 = vadd.f32 %v5446_v35, %v6271_v11  ;;  %v5599_v42 = vld [vmem:[#allocation3 + $0xd0] ss:$8 sps:$4 sm:$0xff]  }
 0x192   : > { %v766_v36 = vpop.f32.mrf.mxu0  ;;  %v844_v44 = vmul.f32 %v6266_v10, %v6224_v6 }
 0x193   : > { %v6306_v38 = vadd.f32 %v860_v27, %v8125_v28  ;;  %v6334_v33 = vadd.f32 %v6271_v11, %v766_v36  ;;  %v894_v37 = vmax.f32 %v6318_v51, 0.0  ;;  %v8119_v19 = vmax.f32 %v6359_v7, 0.0 }
 0x194   : > { %v5447_v43 = vpop.f32.mrf.mxu0  ;;  %v845_v36 = vmul.f32 %v6266_v10, %v6222_v5 }
 0x195   : > { %v892_v39 = vmax.f32 %v6306_v38, 0.0  ;;  %v8121_v62 = vmax.f32 %v6334_v33, 0.0  ;;  %v6346_v1 = vadd.f32 %v5447_v43, %v6271_v11  ;;  %v925_v48 = vpack.c.bf16 %v894_v37, %v893_v61 }
 0x196   : > { %v769_v49 = vpop.f32.mrf.mxu0  ;;  %v6389_v41 = vadd.f32 %v865_v25, %v8119_v19  ;;  %v868_v5 = vadd.f32 %v6281_v18, %v845_v36  ;;  %v5595_v19 = vld [vmem:[#allocation3 + $0xf4] ss:$8 sps:$4 sm:$0xff]  }
 0x197   : > { %v6321_v34 = vadd.f32 %v6271_v11, %v769_v49  ;;  %v924_v52 = vpack.c.bf16 %v892_v39, %v891_v46  ;;  %v6363_v8 = vadd.f32 %v863_v63, %v8121_v62  ;;  %v8115_v12 = vmax.f32 %v6346_v1, 0.0  ;;  %1769 = vmatprep.subr.bf16.mxu1 %v5595_v19  ;;  %v5601_v62 = vld [vmem:[#allocation3 + $0xd4] ss:$8 sps:$4 sm:$0xff]  }
 0x198   : > { %v5450_v53 = vpop.f32.mrf.mxu0  ;;  %v897_v54 = vmax.f32 %v6389_v41, 0.0  ;;  %v8123_v19 = vlaneseq }
 0x199   : > { %1045 = vmatmul.mubr.bf16.vlgmr.msra.gmra.mxu1 %v924_v52  ;;  %v8120_v57 = vmax.f32 %v6321_v34, 0.0  ;;  %v895_v21 = vmax.f32 %v6363_v8, 0.0  ;;  %v6376_v35 = vadd.f32 %v866_v58, %v8115_v12  ;;  %v6417_v9 = vadd.f32 %v5450_v53, %v6271_v11 }
 0x19a   : > { %1054 = vmatprep.mubr.bf16.mxu1 %v8165_v0  ;;  %v782_v60 = vpop.f32.mrf.mxu0 }
 0x19b   : > { %v6350_v2 = vadd.f32 %v864_v47, %v8120_v57  ;;  %v6392_v43 = vadd.f32 %v6271_v11, %v782_v60  ;;  %v898_v49 = vmax.f32 %v6376_v35, 0.0  ;;  %v867_v60 = vadd.f32 %v6281_v18, %v844_v44  ;;  %v5598_v57 = vld [vmem:[#allocation3 + $0xe4] ss:$8 sps:$4 sm:$0xff]  }
 0x19c   : > { %v5451_v3 = vpop.f32.mrf.mxu0  ;;  %v8112_v53 = vmax.f32 %v6417_v9, 0.0 }
 0x19d   : > { %v896_v16 = vmax.f32 %v6350_v2, 0.0  ;;  %v8113_v56 = vmax.f32 %v6392_v43, 0.0  ;;  %v6404_v47 = vadd.f32 %v5451_v3, %v6271_v11  ;;  %v927_v6 = vpack.c.bf16 %v898_v49, %v897_v54 }
 0x19e   : > { %v785_v17 = vpop.f32.mrf.mxu0 }
 0x19f   : > { %v6379_v27 = vadd.f32 %v6271_v11, %v785_v17  ;;  %v926_v59 = vpack.c.bf16 %v896_v16, %v895_v21  ;;  %v6421_v3 = vadd.f32 %v867_v60, %v8113_v56  ;;  %v846_v17 = vmul.f32 %v6266_v10, %v6234_v14 }
 0x1a0   : > { %v5454_v29 = vpop.f32.mrf.mxu0  ;;  %v8110_v58 = vmax.f32 %v6404_v47, 0.0 }
 0x1a1   : > { %1055 = vmatmul.mubr.bf16.gmra.mxu1 %v925_v48  ;;  %v8111_v50 = vmax.f32 %v6379_v27, 0.0  ;;  %v899_v36 = vmax.f32 %v6421_v3, 0.0  ;;  %v869_v44 = vadd.f32 %v6281_v18, %v846_v17  ;;  %v6475_v56 = vadd.f32 %v5454_v29, %v6271_v11 }
 0x1a2   : > { %1064 = vmatprep.mubr.bf16.mxu1 %v8165_v0  ;;  %v798_v52 = vpop.f32.mrf.mxu0 }
 0x1a3   : > { %v6408_v63 = vadd.f32 %v868_v5, %v8111_v50  ;;  %v6434_v5 = vadd.f32 %v870_v13, %v8110_v58  ;;  %v6447_v4 = vadd.f32 %v869_v44, %v8112_v53  ;;  %v6450_v17 = vadd.f32 %v6271_v11, %v798_v52  ;;  %8211 = vst [vmem:[#allocation15_spill] sm:$0xff] %v6475_v56 }
 0x1a4   : > { %v5455_v48 = vpop.f32.mrf.mxu0 }
 0x1a5   : > { %v900_v25 = vmax.f32 %v6408_v63, 0.0  ;;  %v8131_v13 = vmax.f32 %v6434_v5, 0.0  ;;  %v8118_v44 = vmax.f32 %v6450_v17, 0.0  ;;  %v6462_v52 = vadd.f32 %v5455_v48, %v6271_v11 }
 0x1a7   : > { %v928_v14 = vpack.c.bf16 %v900_v25, %v899_v36  ;;  %8210 = vst [vmem:[#allocation14_spill] sm:$0xff] %v6462_v52  ;;  %v8116_v48 = vmax.f32 %v6462_v52, 0.0 }
 0x1a9   : > { %1065 = vmatmul.mubr.bf16.gmra.mxu1 %v926_v59  ;;  %v801_v59 = vpop.f32.mrf.mxu0 }
 0x1aa   : > { %1074 = vmatprep.mubr.bf16.mxu1 %v8165_v0  ;;  %v6437_v60 = vadd.f32 %v6271_v11, %v801_v59  ;;  %v848_v59 = vmul.f32 %v6266_v10, %v6244_v24 }
 0x1ac   : > { %v8114_v58 = vmax.f32 %v6437_v60, 0.0  ;;  %v871_v53 = vadd.f32 %v6281_v18, %v848_v59 }
 0x1ae   : > { %v6479_v59 = vadd.f32 %v871_v53, %v8118_v44  ;;  %v5593_v44 = vld [vmem:[#allocation3 + $0xf0] ss:$8 sps:$4 sm:$0xff]  }
 0x1af   : > { %1770 = vmatpush1.bf16.msra.mxu1 %v5593_v44 }
 0x1b0   : > { %v8130_v11 = vmax.f32 %v6479_v59, 0.0  ;;  %1771 = vmatprep.subr.bf16.mxu1 %v5598_v57  ;;  %v6511_v57 = vshrl.u32 %v8123_v19, 7 }
 0x1b1   : > { %1075 = vmatmul.mubr.bf16.gmra.mxu1 %v927_v6  ;;  %v849_v6 = vmul.f32 %v6266_v10, %v6242_v23  ;;  %v8132_v23 = vmax.f32 %v6447_v4, 0.0 }
 0x1b2   : > { %1084 = vmatprep.mubr.bf16.mxu1 %v8165_v0  ;;  %vm1190_vm1 = vcmp.ge.s32.totalorder %v6511_v57, 1  ;;  %vm1947_vm3 = vcmp.ge.s32.totalorder %v6511_v57, 2  ;;  %vm2706_vm5 = vcmp.ge.s32.totalorder %v6511_v57, 4 }
 0x1b3   : > { %v872_v50 = vadd.f32 %v6281_v18, %v849_v6  ;;  %v929_v24 = vpack.c.bf16 %v8131_v13, %v8132_v23  ;;  %v851_v6 = vmul.f32 %v6266_v10, %v6252_v31  ;;  %v8117_v31 = vmax.f32 %v6475_v56, 0.0 }
 0x1b4   : > { %v8222_v56 = vmov 0  }
 0x1b5   : > { %v874_v12 = vadd.f32 %v6281_v18, %v851_v6  ;;  %v5586_v6 = vld [vmem:[#allocation6 + $0x24] ss:$8 sps:$4 sm:$0xff]  }
 0x1b6   : > { %1377 = vmatprep.subr.bf16.mxu0 %v5586_v6  ;;  %v5604_v6 = vld [vmem:[#allocation3 + $0xc4] ss:$8 sps:$4 sm:$0xff]  }
 0x1b7   : > { %v6492_v53 = vadd.f32 %v874_v12, %v8116_v48  ;;  %v5592_v48 = vld [vmem:[#allocation6 + $0x4] ss:$8 sps:$4 sm:$0xff]  }
 0x1b9   : > { %1085 = vmatmul.mubr.bf16.gmra.mxu1 %v928_v14  ;;  %v6466_v14 = vadd.f32 %v872_v50, %v8114_v58  ;;  %v850_v50 = vmul.f32 %v6266_v10, %v6254_v32 }
 0x1ba   : > { %1094 = vmatprep.mubr.bf16.mxu1 %v8165_v0 }
 0x1bb   : > { %v8129_v58 = vmax.f32 %v6466_v14, 0.0  ;;  %v873_v29 = vadd.f32 %v6281_v18, %v850_v50  ;;  %v5584_v50 = vld [vmem:[#allocation6 + $0x20] ss:$8 sps:$4 sm:$0xff]  }
 0x1bc   : > { %1378 = vmatpush1.bf16.msra.mxu0 %v5584_v50  ;;  %v5602_v50 = vld [vmem:[#allocation3 + $0xc0] ss:$8 sps:$4 sm:$0xff]  }
 0x1bd   : > { %v930_v32 = vpack.c.bf16 %v8129_v58, %v8130_v11  ;;  %v6500_v10 = vadd.f32 %v873_v29, %v8117_v31  ;;  %v5589_v29 = vld [vmem:[#allocation6 + $0x14] ss:$8 sps:$4 sm:$0xff]   ;;  %v5590_v31 = vld [vmem:[#allocation6] ss:$8 sps:$4 sm:$0xff]  }
 0x1be   : > { %1379 = vmatprep.subr.bf16.mxu0 %v5589_v29  ;;  %v5607_v29 = vld [vmem:[#allocation3 + $0xb4] ss:$8 sps:$4 sm:$0xff]  }
 0x1bf   : > { %v8128_v18 = vmax.f32 %v6500_v10, 0.0 }
 0x1c1   : > { %1095 = vmatmul.mubr.bf16.gmra.mxu1 %v929_v24  ;;  %v8127_v24 = vmax.f32 %v6492_v53, 0.0 }
 0x1c2   : > { %1104 = vmatprep.mubr.bf16.mxu1 %v8165_v0 }
 0x1c3   : > { %v931_v12 = vpack.c.bf16 %v8127_v24, %v8128_v18 }
 0x1c9   : > { %1105 = vmatmul.mubr.bf16.gmra.mxu1 %v930_v32  ;;  %v5587_v32 = vld [vmem:[#allocation6 + $0x10] ss:$8 sps:$4 sm:$0xff]  }
 0x1ca   : > { %1114 = vmatprep.mubr.bf16.mxu1 %v8165_v0  ;;  %1380 = vmatpush1.bf16.msra.mxu0 %v5587_v32  ;;  %v5605_v32 = vld [vmem:[#allocation3 + $0xb0] ss:$8 sps:$4 sm:$0xff]  }
 0x1cb   : > { %1381 = vmatprep.subr.bf16.mxu0 %v5592_v48  ;;  %v5610_v48 = vld [vmem:[#allocation3 + $0xa4] ss:$8 sps:$4 sm:$0xff]  }
 0x1ce   : > { %1382 = vmatpush1.bf16.msra.mxu0 %v5590_v31  ;;  %v5608_v31 = vld [vmem:[#allocation3 + $0xa0] ss:$8 sps:$4 sm:$0xff]  }
 0x1d1   : > { %1115 = vmatmul.mubr.bf16.gmra.mxu1 %v931_v12  ;;  %v5596_v12 = vld [vmem:[#allocation3 + $0xe0] ss:$8 sps:$4 sm:$0xff]  }
 0x1d2   : > { %1801 = vmatprep.mubr.bf16.mxu1 %v8165_v0  ;;  %1772 = vmatpush1.bf16.msra.mxu1 %v5596_v12 }
 0x1d3   : > { %1773 = vmatprep.subr.bf16.mxu1 %v5601_v62 }
 0x1d6   : > { %1774 = vmatpush1.bf16.msra.mxu1 %v5599_v42 }
 0x1d7   : > { %1775 = vmatprep.subr.bf16.mxu1 %v5604_v6 }
 0x1da   : > { %1776 = vmatpush1.bf16.msra.mxu1 %v5602_v50 }
 0x1db   : > { %1777 = vmatprep.subr.bf16.mxu1 %v5607_v29  ;;  %v6520_v29 = vld [vmem:[%s8102_s8] ss:$0 sm:$0xff] }
 0x1de   : > { %1778 = vmatpush1.bf16.msra.mxu1 %v5605_v32 }
 0x1df   : > { %1779 = vmatprep.subr.bf16.mxu1 %v5610_v48 }
 0x1e2   : > { %1780 = vmatpush1.bf16.msra.mxu1 %v5608_v31 }
 0x259   : > { %v1046_v44 = vpop.f32.mrf.mxu1 }
 0x25a   : > { %v1142_v62 = vrot.slane %v1046_v44, 7 }
 0x25b   : > { %v1048_v42 = vpop.f32.mrf.mxu1 }
 0x25c   : > { %v1189_v12 = vsel %vm1141_vm0, 0.0, %v1142_v62 }
 0x25d   : > { %v1192_v6 = vsel %vm1190_vm1, %v1189_v12, 0.0  ;;  %v1050_v50 = vpop.f32.mrf.mxu1 }
 0x25e   : > { %v1208_v32 = vadd.f32 %v1192_v6, %v1048_v42  ;;  %v1143_v48 = vrot.slane %v1050_v50, 7 }
 0x25f   : > { %v1052_v31 = vpop.f32.mrf.mxu1 }
 0x260   : > { %v1144_v19 = vsel %vm1141_vm0, %v1142_v62, %v1143_v48  ;;  %v1230_v44 = vadd.f32 %v6520_v29, %v1208_v32 }
 0x261   : > { %v1209_v45 = vadd.f32 %v1144_v19, %v1052_v31  ;;  %v1056_v28 = vpop.f32.mrf.mxu1 }
 0x262   : > { %v1145_v20 = vrot.slane %v1056_v28, 7  ;;  %v1246_v58 = vmax.f32 %v1230_v44, 0.0 }
 0x263   : > { %v1231_v24 = vadd.f32 %v6520_v29, %v1209_v45  ;;  %v1058_v18 = vpop.f32.mrf.mxu1 }
 0x264   : > { %v1146_v12 = vsel %vm1141_vm0, %v1143_v48, %v1145_v20 }
 0x265   : > { %v1247_v11 = vmax.f32 %v1231_v24, 0.0  ;;  %v1194_v13 = vsel %vm1190_vm1, %v1146_v12, 0.0  ;;  %v1060_v42 = vpop.f32.mrf.mxu1 }
 0x266   : > { %v1210_v6 = vadd.f32 %v1194_v13, %v1058_v18  ;;  %v1147_v50 = vrot.slane %v1060_v42, 7 }
 0x267   : > { %v1279_v23 = vpack.c.bf16 %v1247_v11, %v1246_v58  ;;  %v1062_v62 = vpop.f32.mrf.mxu1 }
 0x268   : > { %v1148_v32 = vsel %vm1141_vm0, %v1145_v20, %v1147_v50  ;;  %v1232_v19 = vadd.f32 %v6520_v29, %v1210_v6 }
 0x269   : > { %v1211_v28 = vadd.f32 %v1148_v32, %v1062_v62  ;;  %v1066_v31 = vpop.f32.mrf.mxu1  ;;  %1400 = vmatmul.mubr.bf16.vlgmr.msra.gmra.mxu0 %v1279_v23 }
 0x26a   : > { %v1149_v45 = vrot.slane %v1066_v31, 7  ;;  %1409 = vmatprep.mubr.bf16.mxu0 %v8165_v0  ;;  %v1248_v12 = vmax.f32 %v1232_v19, 0.0 }
 0x26b   : > { %v1233_v24 = vadd.f32 %v6520_v29, %v1211_v28  ;;  %v1068_v48 = vpop.f32.mrf.mxu1 }
 0x26c   : > { %v1150_v44 = vsel %vm1141_vm0, %v1147_v50, %v1149_v45 }
 0x26d   : > { %v1249_v13 = vmax.f32 %v1233_v24, 0.0  ;;  %v1196_v58 = vsel %vm1190_vm1, %v1150_v44, 0.0  ;;  %v1070_v11 = vpop.f32.mrf.mxu1 }
 0x26e   : > { %v1212_v20 = vadd.f32 %v1196_v58, %v1068_v48  ;;  %v1151_v18 = vrot.slane %v1070_v11, 7 }
 0x26f   : > { %v1072_v42 = vpop.f32.mrf.mxu1  ;;  %v1280_v6 = vpack.c.bf16 %v1249_v13, %v1248_v12 }
 0x270   : > { %v1152_v23 = vsel %vm1141_vm0, %v1149_v45, %v1151_v18  ;;  %v1234_v62 = vadd.f32 %v6520_v29, %v1212_v20 }
 0x271   : > { %v1213_v32 = vadd.f32 %v1152_v23, %v1072_v42  ;;  %v1076_v31 = vpop.f32.mrf.mxu1  ;;  %1410 = vmatmul.mubr.bf16.gmra.mxu0 %v1280_v6 }
 0x272   : > { %v1153_v28 = vrot.slane %v1076_v31, 7  ;;  %1419 = vmatprep.mubr.bf16.mxu0 %v8165_v0  ;;  %v1250_v44 = vmax.f32 %v1234_v62, 0.0 }
 0x273   : > { %v1235_v50 = vadd.f32 %v6520_v29, %v1213_v32  ;;  %v1078_v19 = vpop.f32.mrf.mxu1 }
 0x274   : > { %v1154_v24 = vsel %vm1141_vm0, %v1151_v18, %v1153_v28 }
 0x275   : > { %v1251_v48 = vmax.f32 %v1235_v50, 0.0  ;;  %v1198_v12 = vsel %vm1190_vm1, %v1154_v24, 0.0  ;;  %v1080_v13 = vpop.f32.mrf.mxu1 }
 0x276   : > { %v1214_v45 = vadd.f32 %v1198_v12, %v1078_v19  ;;  %v1155_v58 = vrot.slane %v1080_v13, 7 }
 0x277   : > { %v1082_v11 = vpop.f32.mrf.mxu1  ;;  %v1281_v20 = vpack.c.bf16 %v1251_v48, %v1250_v44 }
 0x278   : > { %v1156_v42 = vsel %vm1141_vm0, %v1153_v28, %v1155_v58  ;;  %v1236_v6 = vadd.f32 %v6520_v29, %v1214_v45 }
 0x279   : > { %v1215_v23 = vadd.f32 %v1156_v42, %v1082_v11  ;;  %v1086_v31 = vpop.f32.mrf.mxu1  ;;  %1420 = vmatmul.mubr.bf16.gmra.mxu0 %v1281_v20 }
 0x27a   : > { %v1157_v32 = vrot.slane %v1086_v31, 7  ;;  %1429 = vmatprep.mubr.bf16.mxu0 %v8165_v0  ;;  %v1252_v24 = vmax.f32 %v1236_v6, 0.0 }
 0x27b   : > { %v1237_v18 = vadd.f32 %v6520_v29, %v1215_v23  ;;  %v1088_v62 = vpop.f32.mrf.mxu1 }
 0x27c   : > { %v1158_v50 = vsel %vm1141_vm0, %v1155_v58, %v1157_v32 }
 0x27d   : > { %v1253_v19 = vmax.f32 %v1237_v18, 0.0  ;;  %v1200_v44 = vsel %vm1190_vm1, %v1158_v50, 0.0  ;;  %v1090_v48 = vpop.f32.mrf.mxu1 }
 0x27e   : > { %v1216_v28 = vadd.f32 %v1200_v44, %v1088_v62  ;;  %v1159_v12 = vrot.slane %v1090_v48, 7 }
 0x27f   : > { %v1092_v13 = vpop.f32.mrf.mxu1  ;;  %v1282_v45 = vpack.c.bf16 %v1253_v19, %v1252_v24 }
 0x280   : > { %v1160_v11 = vsel %vm1141_vm0, %v1157_v32, %v1159_v12  ;;  %v1238_v20 = vadd.f32 %v6520_v29, %v1216_v28 }
 0x281   : > { %v1217_v42 = vadd.f32 %v1160_v11, %v1092_v13  ;;  %v1096_v31 = vpop.f32.mrf.mxu1  ;;  %1430 = vmatmul.mubr.bf16.gmra.mxu0 %v1282_v45 }
 0x282   : > { %v1161_v23 = vrot.slane %v1096_v31, 7  ;;  %1439 = vmatprep.mubr.bf16.mxu0 %v8165_v0  ;;  %v1254_v50 = vmax.f32 %v1238_v20, 0.0 }
 0x283   : > { %v1239_v58 = vadd.f32 %v6520_v29, %v1217_v42  ;;  %v1098_v6 = vpop.f32.mrf.mxu1 }
 0x284   : > { %v1162_v18 = vsel %vm1141_vm0, %v1159_v12, %v1161_v23 }
 0x285   : > { %v1255_v62 = vmax.f32 %v1239_v58, 0.0  ;;  %v1202_v24 = vsel %vm1190_vm1, %v1162_v18, 0.0  ;;  %v1100_v19 = vpop.f32.mrf.mxu1 }
 0x286   : > { %v1218_v32 = vadd.f32 %v1202_v24, %v1098_v6  ;;  %v1163_v44 = vrot.slane %v1100_v19, 7 }
 0x287   : > { %v1102_v48 = vpop.f32.mrf.mxu1  ;;  %v1283_v28 = vpack.c.bf16 %v1255_v62, %v1254_v50 }
 0x288   : > { %v1164_v13 = vsel %vm1141_vm0, %v1161_v23, %v1163_v44  ;;  %v1240_v45 = vadd.f32 %v6520_v29, %v1218_v32 }
 0x289   : > { %v1219_v11 = vadd.f32 %v1164_v13, %v1102_v48  ;;  %v1106_v31 = vpop.f32.mrf.mxu1  ;;  %1440 = vmatmul.mubr.bf16.gmra.mxu0 %v1283_v28 }
 0x28a   : > { %v1165_v42 = vrot.slane %v1106_v31, 7  ;;  %1449 = vmatprep.mubr.bf16.mxu0 %v8165_v0  ;;  %v1256_v18 = vmax.f32 %v1240_v45, 0.0 }
 0x28b   : > { %v1241_v12 = vadd.f32 %v6520_v29, %v1219_v11  ;;  %v1108_v20 = vpop.f32.mrf.mxu1 }
 0x28c   : > { %v1166_v58 = vsel %vm1141_vm0, %v1163_v44, %v1165_v42 }
 0x28d   : > { %v1257_v6 = vmax.f32 %v1241_v12, 0.0  ;;  %v1204_v50 = vsel %vm1190_vm1, %v1166_v58, 0.0  ;;  %v1110_v62 = vpop.f32.mrf.mxu1 }
 0x28e   : > { %v1220_v23 = vadd.f32 %v1204_v50, %v1108_v20  ;;  %v1167_v24 = vrot.slane %v1110_v62, 7 }
 0x28f   : > { %v1112_v19 = vpop.f32.mrf.mxu1  ;;  %v1284_v32 = vpack.c.bf16 %v1257_v6, %v1256_v18 }
 0x290   : > { %v1168_v48 = vsel %vm1141_vm0, %v1165_v42, %v1167_v24  ;;  %v1242_v28 = vadd.f32 %v6520_v29, %v1220_v23 }
 0x291   : > { %v1221_v13 = vadd.f32 %v1168_v48, %v1112_v19  ;;  %v1116_v31 = vpop.f32.mrf.mxu1  ;;  %1450 = vmatmul.mubr.bf16.gmra.mxu0 %v1284_v32 }
 0x292   : > { %v1169_v11 = vrot.slane %v1116_v31, 7  ;;  %1459 = vmatprep.mubr.bf16.mxu0 %v8165_v0  ;;  %v1258_v58 = vmax.f32 %v1242_v28, 0.0 }
 0x293   : > { %v1243_v44 = vadd.f32 %v6520_v29, %v1221_v13  ;;  %v1118_v45 = vpop.f32.mrf.mxu1 }
 0x294   : > { %v1170_v12 = vsel %vm1141_vm0, %v1167_v24, %v1169_v11 }
 0x295   : > { %v1259_v20 = vmax.f32 %v1243_v44, 0.0  ;;  %v1206_v18 = vsel %vm1190_vm1, %v1170_v12, 0.0  ;;  %v1120_v6 = vpop.f32.mrf.mxu1  ;;  %v5613_v44 = vld [vmem:[#allocation3 + $0x94] ss:$8 sps:$4 sm:$0xff]   ;;  %v5616_v12 = vld [vmem:[#allocation3 + $0x84] ss:$8 sps:$4 sm:$0xff]  }
 0x296   : > { %v1222_v42 = vadd.f32 %v1206_v18, %v1118_v45  ;;  %v1171_v50 = vrot.slane %v1120_v6, 7  ;;  %v5611_v45 = vld [vmem:[#allocation3 + $0x90] ss:$8 sps:$4 sm:$0xff]   ;;  %1781 = vmatprep.subr.bf16.mxu1 %v5613_v44  ;;  %v5622_v18 = vld [vmem:[#allocation6 + $0xe4] ss:$8 sps:$4 sm:$0xff]  }
 0x297   : > { %v1122_v62 = vpop.f32.mrf.mxu1  ;;  %v1285_v23 = vpack.c.bf16 %v1259_v20, %v1258_v58  ;;  %1782 = vmatpush1.bf16.msra.mxu1 %v5611_v45  ;;  %v5617_v58 = vld [vmem:[#allocation6 + $0xf0] ss:$8 sps:$4 sm:$0xff]   ;;  %v5619_v20 = vld [vmem:[#allocation6 + $0xf4] ss:$8 sps:$4 sm:$0xff]  }
 0x298   : > { %v1172_v19 = vsel %vm1141_vm0, %v1169_v11, %v1171_v50  ;;  %v1244_v32 = vadd.f32 %v6520_v29, %v1222_v42  ;;  %v5614_v11 = vld [vmem:[#allocation3 + $0x80] ss:$8 sps:$4 sm:$0xff]   ;;  %1783 = vmatprep.subr.bf16.mxu1 %v5616_v12  ;;  %2126 = vmatprep.subr.bf16.mxu0 %v5619_v20  ;;  %v5625_v6 = vld [vmem:[#allocation6 + $0xd4] ss:$8 sps:$4 sm:$0xff]   ;;  %v5623_v42 = vld [vmem:[#allocation6 + $0xd0] ss:$8 sps:$4 sm:$0xff]  }
 0x299   : > { %v1223_v48 = vadd.f32 %v1172_v19, %v1122_v62  ;;  %1460 = vmatmul.mubr.bf16.gmra.mxu0 %v1285_v23  ;;  %v5628_v50 = vld [vmem:[#allocation6 + $0xc4] ss:$8 sps:$4 sm:$0xff]   ;;  %v5626_v62 = vld [vmem:[#allocation6 + $0xc0] ss:$8 sps:$4 sm:$0xff]   ;;  %v5631_v23 = vld [vmem:[#allocation6 + $0xb4] ss:$8 sps:$4 sm:$0xff]  }
 0x29a   : > { %1469 = vmatprep.mubr.bf16.mxu0 %v8165_v0  ;;  %v1260_v28 = vmax.f32 %v1244_v32, 0.0  ;;  %2127 = vmatpush1.bf16.msra.mxu0 %v5617_v58  ;;  %v5629_v19 = vld [vmem:[#allocation6 + $0xb0] ss:$8 sps:$4 sm:$0xff]   ;;  %v5634_v32 = vld [vmem:[#allocation6 + $0xa4] ss:$8 sps:$4 sm:$0xff]  }
 0x29b   : > { %v1245_v24 = vadd.f32 %v6520_v29, %v1223_v48  ;;  %1784 = vmatpush1.bf16.msra.mxu1 %v5614_v11  ;;  %v5620_v29 = vld [vmem:[#allocation6 + $0xe0] ss:$8 sps:$4 sm:$0xff]   ;;  %2128 = vmatprep.subr.bf16.mxu0 %v5622_v18 }
 0x29c   : > { %v5632_v48 = vld [vmem:[#allocation6 + $0xa0] ss:$8 sps:$4 sm:$0xff]  }
 0x29d   : > { %v1261_v13 = vmax.f32 %v1245_v24, 0.0  ;;  %v5637_v24 = vld [vmem:[#allocation6 + $0x94] ss:$8 sps:$4 sm:$0xff]   ;;  %v6579_v12 = vld [vmem:[%s8104_s10] ss:$0 sm:$0xff] }
 0x29e   : > { %2129 = vmatpush1.bf16.msra.mxu0 %v5620_v29 }
 0x29f   : > { %v1286_v31 = vpack.c.bf16 %v1261_v13, %v1260_v28  ;;  %2130 = vmatprep.subr.bf16.mxu0 %v5625_v6  ;;  %v5635_v28 = vld [vmem:[#allocation6 + $0x90] ss:$8 sps:$4 sm:$0xff]  }
 0x2a1   : > { %1470 = vmatmul.mubr.bf16.gmra.mxu0 %v1286_v31 }
 0x2a2   : > { %2158 = vmatprep.mubr.bf16.mxu0 %v8165_v0  ;;  %2131 = vmatpush1.bf16.msra.mxu0 %v5623_v42 }
 0x2a3   : > { %2132 = vmatprep.subr.bf16.mxu0 %v5628_v50 }
 0x2a6   : > { %2133 = vmatpush1.bf16.msra.mxu0 %v5626_v62 }
 0x2a7   : > { %2134 = vmatprep.subr.bf16.mxu0 %v5631_v23 }
 0x2aa   : > { %2135 = vmatpush1.bf16.msra.mxu0 %v5629_v19 }
 0x2ab   : > { %2136 = vmatprep.subr.bf16.mxu0 %v5634_v32 }
 0x2ae   : > { %2137 = vmatpush1.bf16.msra.mxu0 %v5632_v48 }
 0x2af   : > { %2138 = vmatprep.subr.bf16.mxu0 %v5637_v24 }
 0x2b2   : > { %2139 = vmatpush1.bf16.msra.mxu0 %v5635_v28 }
 0x329   : > { %v1401_v13 = vpop.f32.mrf.mxu0 }
 0x32a   : > { %v1496_v31 = vrot.slane %v1401_v13, 7 }
 0x32b   : > { %v1403_v44 = vpop.f32.mrf.mxu0 }
 0x32c   : > { %v1543_v45 = vsel %vm1141_vm0, 0.0, %v1496_v31 }
 0x32d   : > { %v1544_v11 = vsel %vm1190_vm1, %v1543_v45, 0.0  ;;  %v1405_v58 = vpop.f32.mrf.mxu0 }
 0x32e   : > { %v1560_v20 = vadd.f32 %v1544_v11, %v1403_v44  ;;  %v1497_v18 = vrot.slane %v1405_v58, 7 }
 0x32f   : > { %v1407_v29 = vpop.f32.mrf.mxu0 }
 0x330   : > { %v6584_v6 = vadd.f32 %v6579_v12, %v1560_v20  ;;  %v1498_v42 = vsel %vm1141_vm0, %v1496_v31, %v1497_v18 }
 0x331   : > { %v1561_v50 = vadd.f32 %v1498_v42, %v1407_v29  ;;  %v1411_v62 = vpop.f32.mrf.mxu0 }
 0x332   : > { %v8154_v23 = vmax.f32 %v6584_v6, 0.0  ;;  %v1499_v19 = vrot.slane %v1411_v62, 7 }
 0x333   : > { %v6589_v32 = vadd.f32 %v6579_v12, %v1561_v50  ;;  %v1413_v48 = vpop.f32.mrf.mxu0 }
 0x334   : > { %v1500_v24 = vsel %vm1141_vm0, %v1497_v18, %v1499_v19  ;;  %v6596_v28 = vadd.f32 %v8154_v23, %v891_v46 }
 0x335   : > { %v8153_v13 = vmax.f32 %v6589_v32, 0.0  ;;  %v1546_v31 = vsel %vm1190_vm1, %v1500_v24, 0.0  ;;  %v1415_v44 = vpop.f32.mrf.mxu0 }
 0x336   : > { %v1562_v45 = vadd.f32 %v1546_v31, %v1413_v48  ;;  %v1501_v11 = vrot.slane %v1415_v44, 7  ;;  %v8148_v18 = vmax.f32 %v6596_v28, 0.0 }
 0x337   : > { %v6605_v58 = vadd.f32 %v8153_v13, %v892_v39  ;;  %v1417_v20 = vpop.f32.mrf.mxu0 }
 0x338   : > { %v6608_v30 = vadd.f32 %v6579_v12, %v1562_v45  ;;  %v1502_v46 = vsel %vm1141_vm0, %v1499_v19, %v1501_v11 }
 0x339   : > { %v8135_v29 = vmax.f32 %v6605_v58, 0.0  ;;  %v1563_v42 = vadd.f32 %v1502_v46, %v1417_v20  ;;  %v1421_v50 = vpop.f32.mrf.mxu0 }
 0x33a   : > { %v8133_v62 = vmax.f32 %v6608_v30, 0.0  ;;  %v1503_v48 = vrot.slane %v1421_v50, 7 }
 0x33b   : > { %v1681_v38 = vpack.c.bf16 %v8135_v29, %v8148_v18  ;;  %v6619_v39 = vadd.f32 %v6579_v12, %v1563_v42  ;;  %v1423_v24 = vpop.f32.mrf.mxu0 }
 0x33c   : > { %v1504_v19 = vsel %vm1141_vm0, %v1501_v11, %v1503_v48  ;;  %v6626_v31 = vadd.f32 %v8133_v62, %v893_v61 }
 0x33d   : > { %v8134_v44 = vmax.f32 %v6619_v39, 0.0  ;;  %v1548_v45 = vsel %vm1190_vm1, %v1504_v19, 0.0  ;;  %v1425_v20 = vpop.f32.mrf.mxu0  ;;  %1802 = vmatmul.mubr.bf16.vlgmr.msra.gmra.mxu1 %v1681_v38 }
 0x33e   : > { %v1564_v46 = vadd.f32 %v1548_v45, %v1423_v24  ;;  %v1505_v50 = vrot.slane %v1425_v20, 7  ;;  %1811 = vmatprep.mubr.bf16.mxu1 %v8165_v0  ;;  %v8139_v19 = vmax.f32 %v6626_v31, 0.0 }
 0x33f   : > { %v6636_v55 = vadd.f32 %v8134_v44, %v894_v37  ;;  %v1427_v11 = vpop.f32.mrf.mxu0 }
 0x340   : > { %v6639_v61 = vadd.f32 %v6579_v12, %v1564_v46  ;;  %v1506_v42 = vsel %vm1141_vm0, %v1503_v48, %v1505_v50 }
 0x341   : > { %v1565_v62 = vadd.f32 %v1506_v42, %v1427_v11  ;;  %v1431_v38 = vpop.f32.mrf.mxu0  ;;  %v8137_v24 = vmax.f32 %v6636_v55, 0.0 }
 0x342   : > { %v8136_v45 = vmax.f32 %v6639_v61, 0.0  ;;  %v1507_v20 = vrot.slane %v1431_v38, 7 }
 0x343   : > { %v6646_v51 = vadd.f32 %v6579_v12, %v1565_v62  ;;  %v1433_v37 = vpop.f32.mrf.mxu0  ;;  %v1682_v46 = vpack.c.bf16 %v8137_v24, %v8139_v19 }
 0x344   : > { %v1508_v48 = vsel %vm1141_vm0, %v1505_v50, %v1507_v20  ;;  %v6657_v11 = vadd.f32 %v8136_v45, %v895_v21 }
 0x345   : > { %v8138_v42 = vmax.f32 %v6646_v51, 0.0  ;;  %v1550_v62 = vsel %vm1190_vm1, %v1508_v48, 0.0  ;;  %v1435_v38 = vpop.f32.mrf.mxu0  ;;  %1812 = vmatmul.mubr.bf16.gmra.mxu1 %v1682_v46 }
 0x346   : > { %v1566_v44 = vadd.f32 %v1550_v62, %v1433_v37  ;;  %v1509_v29 = vrot.slane %v1435_v38, 7  ;;  %1821 = vmatprep.mubr.bf16.mxu1 %v8165_v0  ;;  %v8143_v48 = vmax.f32 %v6657_v11, 0.0 }
 0x347   : > { %v6667_v8 = vadd.f32 %v8138_v42, %v896_v16  ;;  %v1437_v50 = vpop.f32.mrf.mxu0 }
 0x348   : > { %v6670_v21 = vadd.f32 %v6579_v12, %v1566_v44  ;;  %v1510_v45 = vsel %vm1141_vm0, %v1507_v20, %v1509_v29 }
 0x349   : > { %v1567_v24 = vadd.f32 %v1510_v45, %v1437_v50  ;;  %v1441_v46 = vpop.f32.mrf.mxu0  ;;  %v8141_v37 = vmax.f32 %v6667_v8, 0.0 }
 0x34a   : > { %v8140_v62 = vmax.f32 %v6670_v21, 0.0  ;;  %v1511_v38 = vrot.slane %v1441_v46, 7 }
 0x34b   : > { %v6677_v2 = vadd.f32 %v6579_v12, %v1567_v24  ;;  %v1443_v16 = vpop.f32.mrf.mxu0  ;;  %v1683_v44 = vpack.c.bf16 %v8141_v37, %v8143_v48 }
 0x34c   : > { %v1512_v20 = vsel %vm1141_vm0, %v1509_v29, %v1511_v38  ;;  %v6688_v45 = vadd.f32 %v8140_v62, %v897_v54 }
 0x34d   : > { %v8142_v50 = vmax.f32 %v6677_v2, 0.0  ;;  %v1552_v24 = vsel %vm1190_vm1, %v1512_v20, 0.0  ;;  %v1445_v46 = vpop.f32.mrf.mxu0  ;;  %1822 = vmatmul.mubr.bf16.gmra.mxu1 %v1683_v44 }
 0x34e   : > { %v1568_v42 = vadd.f32 %v1552_v24, %v1443_v16  ;;  %v1513_v19 = vrot.slane %v1445_v46, 7  ;;  %1831 = vmatprep.mubr.bf16.mxu1 %v8165_v0  ;;  %v8147_v20 = vmax.f32 %v6688_v45, 0.0 }
 0x34f   : > { %v6698_v41 = vadd.f32 %v8142_v50, %v898_v49  ;;  %v1447_v29 = vpop.f32.mrf.mxu0 }
 0x350   : > { %v6701_v54 = vadd.f32 %v6579_v12, %v1568_v42  ;;  %v1514_v62 = vsel %vm1141_vm0, %v1511_v38, %v1513_v19 }
 0x351   : > { %v1569_v37 = vadd.f32 %v1514_v62, %v1447_v29  ;;  %v1451_v44 = vpop.f32.mrf.mxu0  ;;  %v8145_v16 = vmax.f32 %v6698_v41, 0.0 }
 0x352   : > { %v8144_v24 = vmax.f32 %v6701_v54, 0.0  ;;  %v1515_v46 = vrot.slane %v1451_v44, 7 }
 0x353   : > { %v6708_v35 = vadd.f32 %v6579_v12, %v1569_v37  ;;  %v1453_v49 = vpop.f32.mrf.mxu0  ;;  %v1684_v42 = vpack.c.bf16 %v8145_v16, %v8147_v20 }
 0x354   : > { %v1516_v38 = vsel %vm1141_vm0, %v1513_v19, %v1515_v46  ;;  %v6719_v62 = vadd.f32 %v8144_v24, %v899_v36 }
 0x355   : > { %v8146_v29 = vmax.f32 %v6708_v35, 0.0  ;;  %v1554_v37 = vsel %vm1190_vm1, %v1516_v38, 0.0  ;;  %v1455_v44 = vpop.f32.mrf.mxu0  ;;  %1832 = vmatmul.mubr.bf16.gmra.mxu1 %v1684_v42 }
 0x356   : > { %v1570_v50 = vadd.f32 %v1554_v37, %v1453_v49  ;;  %v1517_v48 = vrot.slane %v1455_v44, 7  ;;  %1841 = vmatprep.mubr.bf16.mxu1 %v8165_v0  ;;  %v8151_v38 = vmax.f32 %v6719_v62, 0.0 }
 0x357   : > { %v6729_v3 = vadd.f32 %v8146_v29, %v900_v25  ;;  %v1457_v19 = vpop.f32.mrf.mxu0  ;;  %v8212_v29 = vmax.f32 %v6447_v4, 0.0 }
 0x358   : > { %v6732_v36 = vadd.f32 %v6579_v12, %v1570_v50  ;;  %v1518_v24 = vsel %vm1141_vm0, %v1515_v46, %v1517_v48 }
 0x359   : > { %v1571_v16 = vadd.f32 %v1518_v24, %v1457_v19  ;;  %v1461_v42 = vpop.f32.mrf.mxu0  ;;  %v8149_v49 = vmax.f32 %v6729_v3, 0.0 }
 0x35a   : > { %v8150_v37 = vmax.f32 %v6732_v36, 0.0  ;;  %v1519_v44 = vrot.slane %v1461_v42, 7 }
 0x35b   : > { %v6739_v63 = vadd.f32 %v6579_v12, %v1571_v16  ;;  %v1463_v25 = vpop.f32.mrf.mxu0  ;;  %v1685_v50 = vpack.c.bf16 %v8149_v49, %v8151_v38  ;;  %v8213_v49 = vmax.f32 %v6434_v5, 0.0 }
 0x35c   : > { %v1520_v46 = vsel %vm1141_vm0, %v1517_v48, %v1519_v44  ;;  %v6750_v24 = vadd.f32 %v8150_v37, %v8212_v29 }
 0x35d   : > { %v8152_v19 = vmax.f32 %v6739_v63, 0.0  ;;  %v1556_v16 = vsel %vm1190_vm1, %v1520_v46, 0.0  ;;  %v1465_v42 = vpop.f32.mrf.mxu0  ;;  %1842 = vmatmul.mubr.bf16.gmra.mxu1 %v1685_v50 }
 0x35e   : > { %v1572_v20 = vadd.f32 %v1556_v16, %v1463_v25  ;;  %v1521_v18 = vrot.slane %v1465_v42, 7  ;;  %1851 = vmatprep.mubr.bf16.mxu1 %v8165_v0  ;;  %v8157_v46 = vmax.f32 %v6750_v24, 0.0 }
 0x35f   : > { %v6760_v4 = vadd.f32 %v8152_v19, %v8213_v49  ;;  %v1467_v48 = vpop.f32.mrf.mxu0  ;;  %v8214_v19 = vmax.f32 %v6479_v59, 0.0 }
 0x360   : > { %v6763_v29 = vadd.f32 %v6579_v12, %v1572_v20  ;;  %v1522_v37 = vsel %vm1141_vm0, %v1519_v44, %v1521_v18 }
 0x361   : > { %v1573_v38 = vadd.f32 %v1522_v37, %v1467_v48  ;;  %v1471_v50 = vpop.f32.mrf.mxu0  ;;  %v8155_v25 = vmax.f32 %v6760_v4, 0.0 }
 0x362   : > { %v8156_v16 = vmax.f32 %v6763_v29, 0.0  ;;  %v1523_v42 = vrot.slane %v1471_v50, 7 }
 0x363   : > { %v6770_v5 = vadd.f32 %v6579_v12, %v1573_v38  ;;  %v1473_v49 = vpop.f32.mrf.mxu0  ;;  %v1686_v20 = vpack.c.bf16 %v8155_v25, %v8157_v46  ;;  %v8215_v25 = vmax.f32 %v6466_v14, 0.0 }
 0x364   : > { %v1524_v44 = vsel %vm1141_vm0, %v1521_v18, %v1523_v42  ;;  %v6781_v37 = vadd.f32 %v8156_v16, %v8214_v19 }
 0x365   : > { %v8164_v48 = vmax.f32 %v6770_v5, 0.0  ;;  %v1558_v38 = vsel %vm1190_vm1, %v1524_v44, 0.0  ;;  %v1475_v50 = vpop.f32.mrf.mxu0  ;;  %1852 = vmatmul.mubr.bf16.gmra.mxu1 %v1686_v20 }
 0x366   : > { %v1574_v13 = vadd.f32 %v1558_v38, %v1473_v49  ;;  %v1525_v23 = vrot.slane %v1475_v50, 7  ;;  %1861 = vmatprep.mubr.bf16.mxu1 %v8165_v0  ;;  %v8163_v44 = vmax.f32 %v6781_v37, 0.0  ;;  %v5640_v50 = vld [vmem:[#allocation6 + $0x84] ss:$8 sps:$4 sm:$0xff]  }
 0x367   : > { %v6791_v59 = vadd.f32 %v8164_v48, %v8215_v25  ;;  %v1477_v18 = vpop.f32.mrf.mxu0  ;;  %2140 = vmatprep.subr.bf16.mxu0 %v5640_v50  ;;  %v5658_v50 = vld [vmem:[#allocation3 + $0x124] ss:$8 sps:$4 sm:$0xff]  }
 0x368   : > { %v6794_v19 = vadd.f32 %v6579_v12, %v1574_v13  ;;  %v1526_v16 = vsel %vm1141_vm0, %v1523_v42, %v1525_v23  ;;  %v8218_v13 = vmax.f32 %v6500_v10, 0.0 }
 0x369   : > { %v1575_v46 = vadd.f32 %v1526_v16, %v1477_v18  ;;  %v8160_v49 = vmax.f32 %v6791_v59, 0.0  ;;  %v8220_v16 = vmax.f32 %v6492_v53, 0.0  ;;  %v5638_v18 = vld [vmem:[#allocation6 + $0x80] ss:$8 sps:$4 sm:$0xff]   ;;  %v5641_v53 = vld [vmem:[#allocation3 + $0x170] ss:$8 sps:$4 sm:$0xff]  }
 0x36a   : > { %8216 = vst [vmem:[#allocation16_spill] sm:$0xff] %v6794_v19  ;;  %v8159_v20 = vmax.f32 %v6794_v19, 0.0  ;;  %2141 = vmatpush1.bf16.msra.mxu0 %v5638_v18  ;;  %v5656_v18 = vld [vmem:[#allocation3 + $0x120] ss:$8 sps:$4 sm:$0xff]  }
 0x36b   : > { %v6801_v38 = vadd.f32 %v6579_v12, %v1575_v46  ;;  %v1687_v14 = vpack.c.bf16 %v8160_v49, %v8163_v44  ;;  %v5652_v49 = vld [vmem:[#allocation3 + $0x144] ss:$8 sps:$4 sm:$0xff]  }
 0x36c   : > { %v6811_v23 = vadd.f32 %v8159_v20, %v8218_v13  ;;  %v5646_v13 = vld [vmem:[#allocation3 + $0x164] ss:$8 sps:$4 sm:$0xff]   ;;  %v5647_v20 = vld [vmem:[#allocation3 + $0x150] ss:$8 sps:$4 sm:$0xff]  }
 0x36d   : > { %8217 = vst [vmem:[#allocation17_spill] sm:$0xff] %v6801_v38  ;;  %v8158_v25 = vmax.f32 %v6801_v38, 0.0  ;;  %1862 = vmatmul.mubr.bf16.gmra.mxu1 %v1687_v14  ;;  %v5643_v14 = vld [vmem:[#allocation3 + $0x174] ss:$8 sps:$4 sm:$0xff]  }
 0x36e   : > { %8219 = vst [vmem:[#allocation18_spill] sm:$0xff] %v6811_v23  ;;  %1871 = vmatprep.mubr.bf16.mxu1 %v8165_v0  ;;  %v8162_v46 = vmax.f32 %v6811_v23, 0.0  ;;  %2528 = vmatprep.subr.bf16.mxu1 %v5643_v14 }
 0x36f   : > { %v6819_v12 = vadd.f32 %v8158_v25, %v8220_v16  ;;  %2529 = vmatpush1.bf16.msra.mxu1 %v5641_v53  ;;  %v5644_v16 = vld [vmem:[#allocation3 + $0x160] ss:$8 sps:$4 sm:$0xff]   ;;  %v5649_v25 = vld [vmem:[#allocation3 + $0x154] ss:$8 sps:$4 sm:$0xff]  }
 0x370   : > { %2530 = vmatprep.subr.bf16.mxu1 %v5646_v13 }
 0x371   : > { %8221 = vst [vmem:[#allocation19_spill] sm:$0xff] %v6819_v12  ;;  %v8161_v42 = vmax.f32 %v6819_v12, 0.0 }
 0x373   : > { %v1688_v10 = vpack.c.bf16 %v8161_v42, %v8162_v46  ;;  %2531 = vmatpush1.bf16.msra.mxu1 %v5644_v16  ;;  %v5655_v42 = vld [vmem:[#allocation3 + $0x134] ss:$8 sps:$4 sm:$0xff]   ;;  %v5653_v46 = vld [vmem:[#allocation3 + $0x130] ss:$8 sps:$4 sm:$0xff]  }
 0x374   : > { %2532 = vmatprep.subr.bf16.mxu1 %v5649_v25 }
 0x375   : > { %1872 = vmatmul.mubr.bf16.gmra.mxu1 %v1688_v10  ;;  %v5650_v10 = vld [vmem:[#allocation3 + $0x140] ss:$8 sps:$4 sm:$0xff]  }
 0x376   : > { %2560 = vmatprep.mubr.bf16.mxu1 %v8165_v0 }
 0x377   : > { %2533 = vmatpush1.bf16.msra.mxu1 %v5647_v20 }
 0x378   : > { %2534 = vmatprep.subr.bf16.mxu1 %v5652_v49 }
 0x37b   : > { %2535 = vmatpush1.bf16.msra.mxu1 %v5650_v10 }
 0x37c   : > { %2536 = vmatprep.subr.bf16.mxu1 %v5655_v42  ;;  %v6835_v42 = vld [vmem:[%s8102_s8 + $0x1] ss:$0 sm:$0xff] }
 0x37f   : > { %2537 = vmatpush1.bf16.msra.mxu1 %v5653_v46 }
 0x380   : > { %2538 = vmatprep.subr.bf16.mxu1 %v5658_v50 }
 0x383   : > { %2539 = vmatpush1.bf16.msra.mxu1 %v5656_v18 }
 0x3fd   : > { %v1803_v53 = vpop.f32.mrf.mxu1 }
 0x3fe   : > { %v1899_v14 = vrot.slane %v1803_v53, 6 }
 0x3ff   : > { %v1805_v13 = vpop.f32.mrf.mxu1 }
 0x400   : > { %v1946_v25 = vsel %vm1898_vm2, 0.0, %v1899_v14 }
 0x401   : > { %v1949_v49 = vsel %vm1947_vm3, %v1946_v25, 0.0  ;;  %v1807_v20 = vpop.f32.mrf.mxu1 }
 0x402   : > { %v1965_v46 = vadd.f32 %v1949_v49, %v1805_v13  ;;  %v1900_v16 = vrot.slane %v1807_v20, 6 }
 0x403   : > { %v1809_v10 = vpop.f32.mrf.mxu1 }
 0x404   : > { %v1901_v50 = vsel %vm1898_vm2, %v1899_v14, %v1900_v16  ;;  %v1987_v18 = vadd.f32 %v6835_v42, %v1965_v46 }
 0x405   : > { %v1966_v53 = vadd.f32 %v1901_v50, %v1809_v10  ;;  %v1813_v44 = vpop.f32.mrf.mxu1 }
 0x406   : > { %v1902_v48 = vrot.slane %v1813_v44, 6  ;;  %v2003_v23 = vmax.f32 %v1987_v18, 0.0 }
 0x407   : > { %v1988_v0 = vadd.f32 %v6835_v42, %v1966_v53  ;;  %v1815_v12 = vpop.f32.mrf.mxu1 }
 0x408   : > { %v1903_v25 = vsel %vm1898_vm2, %v1900_v16, %v1902_v48 }
 0x409   : > { %v2004_v38 = vmax.f32 %v1988_v0, 0.0  ;;  %v1951_v52 = vsel %vm1947_vm3, %v1903_v25, 0.0  ;;  %v1817_v13 = vpop.f32.mrf.mxu1 }
 0x40a   : > { %v1967_v49 = vadd.f32 %v1951_v52, %v1815_v12  ;;  %v1904_v20 = vrot.slane %v1817_v13, 6 }
 0x40b   : > { %v2038_v19 = vpack.c.bf16 %v2004_v38, %v2003_v23  ;;  %v1819_v14 = vpop.f32.mrf.mxu1 }
 0x40c   : > { %v1905_v46 = vsel %vm1898_vm2, %v1902_v48, %v1904_v20  ;;  %v1989_v10 = vadd.f32 %v6835_v42, %v1967_v49 }
 0x40d   : > { %v1968_v44 = vadd.f32 %v1905_v46, %v1819_v14  ;;  %v1823_v50 = vpop.f32.mrf.mxu1  ;;  %2159 = vmatmul.mubr.bf16.vlgmr.msra.gmra.mxu0 %v2038_v19 }
 0x40e   : > { %v1906_v53 = vrot.slane %v1823_v50, 6  ;;  %2168 = vmatprep.mubr.bf16.mxu0 %v8222_v56  ;;  %v2005_v25 = vmax.f32 %v1989_v10, 0.0 }
 0x40f   : > { %v1990_v0 = vadd.f32 %v6835_v42, %v1968_v44  ;;  %v1825_v16 = vpop.f32.mrf.mxu1 }
 0x410   : > { %v1907_v18 = vsel %vm1898_vm2, %v1904_v20, %v1906_v53 }
 0x411   : > { %v2006_v52 = vmax.f32 %v1990_v0, 0.0  ;;  %v1953_v38 = vsel %vm1947_vm3, %v1907_v18, 0.0  ;;  %v1827_v23 = vpop.f32.mrf.mxu1 }
 0x412   : > { %v1969_v48 = vadd.f32 %v1953_v38, %v1825_v16  ;;  %v1908_v12 = vrot.slane %v1827_v23, 6 }
 0x413   : > { %v1829_v13 = vpop.f32.mrf.mxu1  ;;  %v2039_v49 = vpack.c.bf16 %v2006_v52, %v2005_v25 }
 0x414   : > { %v1909_v19 = vsel %vm1898_vm2, %v1906_v53, %v1908_v12  ;;  %v1991_v14 = vadd.f32 %v6835_v42, %v1969_v48 }
 0x415   : > { %v1970_v46 = vadd.f32 %v1909_v19, %v1829_v13  ;;  %v1833_v50 = vpop.f32.mrf.mxu1  ;;  %2169 = vmatmul.mubr.bf16.gmra.mxu0 %v2039_v49 }
 0x416   : > { %v1910_v44 = vrot.slane %v1833_v50, 6  ;;  %2178 = vmatprep.mubr.bf16.mxu0 %v8222_v56  ;;  %v2007_v18 = vmax.f32 %v1991_v14, 0.0 }
 0x417   : > { %v1992_v20 = vadd.f32 %v6835_v42, %v1970_v46  ;;  %v1835_v10 = vpop.f32.mrf.mxu1 }
 0x418   : > { %v1911_v0 = vsel %vm1898_vm2, %v1908_v12, %v1910_v44 }
 0x419   : > { %v2008_v16 = vmax.f32 %v1992_v20, 0.0  ;;  %v1955_v25 = vsel %vm1947_vm3, %v1911_v0, 0.0  ;;  %v1837_v52 = vpop.f32.mrf.mxu1 }
 0x41a   : > { %v1971_v53 = vadd.f32 %v1955_v25, %v1835_v10  ;;  %v1912_v38 = vrot.slane %v1837_v52, 6 }
 0x41b   : > { %v1839_v23 = vpop.f32.mrf.mxu1  ;;  %v2040_v48 = vpack.c.bf16 %v2008_v16, %v2007_v18 }
 0x41c   : > { %v1913_v13 = vsel %vm1898_vm2, %v1910_v44, %v1912_v38  ;;  %v1993_v49 = vadd.f32 %v6835_v42, %v1971_v53 }
 0x41d   : > { %v1972_v19 = vadd.f32 %v1913_v13, %v1839_v23  ;;  %v1843_v50 = vpop.f32.mrf.mxu1  ;;  %2179 = vmatmul.mubr.bf16.gmra.mxu0 %v2040_v48 }
 0x41e   : > { %v1914_v46 = vrot.slane %v1843_v50, 6  ;;  %2188 = vmatprep.mubr.bf16.mxu0 %v8222_v56  ;;  %v2009_v0 = vmax.f32 %v1993_v49, 0.0 }
 0x41f   : > { %v1994_v12 = vadd.f32 %v6835_v42, %v1972_v19  ;;  %v1845_v14 = vpop.f32.mrf.mxu1 }
 0x420   : > { %v1915_v20 = vsel %vm1898_vm2, %v1912_v38, %v1914_v46 }
 0x421   : > { %v2010_v10 = vmax.f32 %v1994_v12, 0.0  ;;  %v1957_v18 = vsel %vm1947_vm3, %v1915_v20, 0.0  ;;  %v1847_v16 = vpop.f32.mrf.mxu1 }
 0x422   : > { %v1973_v44 = vadd.f32 %v1957_v18, %v1845_v14  ;;  %v1916_v25 = vrot.slane %v1847_v16, 6 }
 0x423   : > { %v1849_v52 = vpop.f32.mrf.mxu1  ;;  %v2041_v53 = vpack.c.bf16 %v2010_v10, %v2009_v0 }
 0x424   : > { %v1917_v23 = vsel %vm1898_vm2, %v1914_v46, %v1916_v25  ;;  %v1995_v48 = vadd.f32 %v6835_v42, %v1973_v44 }
 0x425   : > { %v1974_v13 = vadd.f32 %v1917_v23, %v1849_v52  ;;  %v1853_v50 = vpop.f32.mrf.mxu1  ;;  %2189 = vmatmul.mubr.bf16.gmra.mxu0 %v2041_v53 }
 0x426   : > { %v1918_v19 = vrot.slane %v1853_v50, 6  ;;  %2198 = vmatprep.mubr.bf16.mxu0 %v8222_v56  ;;  %v2011_v20 = vmax.f32 %v1995_v48, 0.0 }
 0x427   : > { %v1996_v38 = vadd.f32 %v6835_v42, %v1974_v13  ;;  %v1855_v49 = vpop.f32.mrf.mxu1 }
 0x428   : > { %v1919_v12 = vsel %vm1898_vm2, %v1916_v25, %v1918_v19 }
 0x429   : > { %v2012_v14 = vmax.f32 %v1996_v38, 0.0  ;;  %v1959_v0 = vsel %vm1947_vm3, %v1919_v12, 0.0  ;;  %v1857_v10 = vpop.f32.mrf.mxu1 }
 0x42a   : > { %v1975_v46 = vadd.f32 %v1959_v0, %v1855_v49  ;;  %v1920_v18 = vrot.slane %v1857_v10, 6 }
 0x42b   : > { %v1859_v16 = vpop.f32.mrf.mxu1  ;;  %v2042_v44 = vpack.c.bf16 %v2012_v14, %v2011_v20 }
 0x42c   : > { %v1921_v52 = vsel %vm1898_vm2, %v1918_v19, %v1920_v18  ;;  %v1997_v53 = vadd.f32 %v6835_v42, %v1975_v46 }
 0x42d   : > { %v1976_v23 = vadd.f32 %v1921_v52, %v1859_v16  ;;  %v1863_v50 = vpop.f32.mrf.mxu1  ;;  %2199 = vmatmul.mubr.bf16.gmra.mxu0 %v2042_v44 }
 0x42e   : > { %v1922_v13 = vrot.slane %v1863_v50, 6  ;;  %2208 = vmatprep.mubr.bf16.mxu0 %v8222_v56  ;;  %v2013_v12 = vmax.f32 %v1997_v53, 0.0 }
 0x42f   : > { %v1998_v25 = vadd.f32 %v6835_v42, %v1976_v23  ;;  %v1865_v48 = vpop.f32.mrf.mxu1 }
 0x430   : > { %v1923_v38 = vsel %vm1898_vm2, %v1920_v18, %v1922_v13 }
 0x431   : > { %v2014_v49 = vmax.f32 %v1998_v25, 0.0  ;;  %v1961_v20 = vsel %vm1947_vm3, %v1923_v38, 0.0  ;;  %v1867_v14 = vpop.f32.mrf.mxu1 }
 0x432   : > { %v1977_v19 = vadd.f32 %v1961_v20, %v1865_v48  ;;  %v1924_v0 = vrot.slane %v1867_v14, 6 }
 0x433   : > { %v1869_v10 = vpop.f32.mrf.mxu1  ;;  %v2043_v46 = vpack.c.bf16 %v2014_v49, %v2013_v12 }
 0x434   : > { %v1925_v16 = vsel %vm1898_vm2, %v1922_v13, %v1924_v0  ;;  %v1999_v44 = vadd.f32 %v6835_v42, %v1977_v19 }
 0x435   : > { %v1978_v52 = vadd.f32 %v1925_v16, %v1869_v10  ;;  %v1873_v50 = vpop.f32.mrf.mxu1  ;;  %2209 = vmatmul.mubr.bf16.gmra.mxu0 %v2043_v46 }
 0x436   : > { %v1926_v23 = vrot.slane %v1873_v50, 6  ;;  %2218 = vmatprep.mubr.bf16.mxu0 %v8222_v56  ;;  %v2015_v38 = vmax.f32 %v1999_v44, 0.0 }
 0x437   : > { %v2000_v18 = vadd.f32 %v6835_v42, %v1978_v52  ;;  %v1875_v53 = vpop.f32.mrf.mxu1 }
 0x438   : > { %v1927_v25 = vsel %vm1898_vm2, %v1924_v0, %v1926_v23 }
 0x439   : > { %v2016_v48 = vmax.f32 %v2000_v18, 0.0  ;;  %v1963_v12 = vsel %vm1947_vm3, %v1927_v25, 0.0  ;;  %v1877_v49 = vpop.f32.mrf.mxu1  ;;  %v5661_v18 = vld [vmem:[#allocation3 + $0x114] ss:$8 sps:$4 sm:$0xff]   ;;  %v5664_v25 = vld [vmem:[#allocation3 + $0x104] ss:$8 sps:$4 sm:$0xff]  }
 0x43a   : > { %v1979_v13 = vadd.f32 %v1963_v12, %v1875_v53  ;;  %v1928_v20 = vrot.slane %v1877_v49, 6  ;;  %v5659_v53 = vld [vmem:[#allocation3 + $0x110] ss:$8 sps:$4 sm:$0xff]   ;;  %2540 = vmatprep.subr.bf16.mxu1 %v5661_v18  ;;  %v5670_v12 = vld [vmem:[#allocation6 + $0x164] ss:$8 sps:$4 sm:$0xff]  }
 0x43b   : > { %v1879_v14 = vpop.f32.mrf.mxu1  ;;  %v2044_v19 = vpack.c.bf16 %v2016_v48, %v2015_v38  ;;  %2541 = vmatpush1.bf16.msra.mxu1 %v5659_v53  ;;  %v5665_v38 = vld [vmem:[#allocation6 + $0x170] ss:$8 sps:$4 sm:$0xff]   ;;  %v5667_v48 = vld [vmem:[#allocation6 + $0x174] ss:$8 sps:$4 sm:$0xff]  }
 0x43c   : > { %v1929_v10 = vsel %vm1898_vm2, %v1926_v23, %v1928_v20  ;;  %v2001_v46 = vadd.f32 %v6835_v42, %v1979_v13  ;;  %v5662_v23 = vld [vmem:[#allocation3 + $0x100] ss:$8 sps:$4 sm:$0xff]   ;;  %2542 = vmatprep.subr.bf16.mxu1 %v5664_v25  ;;  %2885 = vmatprep.subr.bf16.mxu0 %v5667_v48  ;;  %v5673_v49 = vld [vmem:[#allocation6 + $0x154] ss:$8 sps:$4 sm:$0xff]   ;;  %v5671_v13 = vld [vmem:[#allocation6 + $0x150] ss:$8 sps:$4 sm:$0xff]  }
 0x43d   : > { %v1980_v16 = vadd.f32 %v1929_v10, %v1879_v14  ;;  %2219 = vmatmul.mubr.bf16.gmra.mxu0 %v2044_v19  ;;  %v5676_v20 = vld [vmem:[#allocation6 + $0x144] ss:$8 sps:$4 sm:$0xff]   ;;  %v5674_v14 = vld [vmem:[#allocation6 + $0x140] ss:$8 sps:$4 sm:$0xff]   ;;  %v5679_v19 = vld [vmem:[#allocation6 + $0x134] ss:$8 sps:$4 sm:$0xff]  }
 0x43e   : > { %2228 = vmatprep.mubr.bf16.mxu0 %v8222_v56  ;;  %v2017_v44 = vmax.f32 %v2001_v46, 0.0  ;;  %2886 = vmatpush1.bf16.msra.mxu0 %v5665_v38  ;;  %v5677_v10 = vld [vmem:[#allocation6 + $0x130] ss:$8 sps:$4 sm:$0xff]   ;;  %v5682_v46 = vld [vmem:[#allocation6 + $0x124] ss:$8 sps:$4 sm:$0xff]  }
 0x43f   : > { %v2002_v0 = vadd.f32 %v6835_v42, %v1980_v16  ;;  %2543 = vmatpush1.bf16.msra.mxu1 %v5662_v23  ;;  %v5668_v42 = vld [vmem:[#allocation6 + $0x160] ss:$8 sps:$4 sm:$0xff]   ;;  %2887 = vmatprep.subr.bf16.mxu0 %v5670_v12 }
 0x440   : > { %v5680_v16 = vld [vmem:[#allocation6 + $0x120] ss:$8 sps:$4 sm:$0xff]  }
 0x441   : > { %v2018_v52 = vmax.f32 %v2002_v0, 0.0  ;;  %v5685_v0 = vld [vmem:[#allocation6 + $0x114] ss:$8 sps:$4 sm:$0xff]   ;;  %v6894_v25 = vld [vmem:[%s8104_s10 + $0x1] ss:$0 sm:$0xff] }
 0x442   : > { %2888 = vmatpush1.bf16.msra.mxu0 %v5668_v42 }
 0x443   : > { %v2045_v50 = vpack.c.bf16 %v2018_v52, %v2017_v44  ;;  %2889 = vmatprep.subr.bf16.mxu0 %v5673_v49  ;;  %v5683_v44 = vld [vmem:[#allocation6 + $0x110] ss:$8 sps:$4 sm:$0xff]  }
 0x445   : > { %2229 = vmatmul.mubr.bf16.gmra.mxu0 %v2045_v50 }
 0x446   : > { %2917 = vmatprep.mubr.bf16.mxu0 %v8222_v56  ;;  %2890 = vmatpush1.bf16.msra.mxu0 %v5671_v13 }
 0x447   : > { %2891 = vmatprep.subr.bf16.mxu0 %v5676_v20 }
 0x44a   : > { %2892 = vmatpush1.bf16.msra.mxu0 %v5674_v14 }
 0x44b   : > { %2893 = vmatprep.subr.bf16.mxu0 %v5679_v19  ;;  %v8223_v19 = vmax.f32 %v6274_v15, 0.0 }
 0x44e   : > { %2894 = vmatpush1.bf16.msra.mxu0 %v5677_v10  ;;  %v8224_v10 = vmax.f32 %v6584_v6, 0.0 }
 0x44f   : > { %2895 = vmatprep.subr.bf16.mxu0 %v5682_v46 }
 0x450   : > { %v1614_v46 = vadd.f32 %v8224_v10, %v8223_v19 }
 0x452   : > { %2896 = vmatpush1.bf16.msra.mxu0 %v5680_v16 }
 0x453   : > { %2897 = vmatprep.subr.bf16.mxu0 %v5685_v0 }
 0x456   : > { %2898 = vmatpush1.bf16.msra.mxu0 %v5683_v44 }
 0x4cd   : > { %v2160_v52 = vpop.f32.mrf.mxu0 }
 0x4ce   : > { %v2255_v50 = vrot.slane %v2160_v52, 6 }
 0x4cf   : > { %v2162_v18 = vpop.f32.mrf.mxu0 }
 0x4d0   : > { %v2302_v53 = vsel %vm1898_vm2, 0.0, %v2255_v50 }
 0x4d1   : > { %v2303_v23 = vsel %vm1947_vm3, %v2302_v53, 0.0  ;;  %v2164_v38 = vpop.f32.mrf.mxu0 }
 0x4d2   : > { %v2319_v48 = vadd.f32 %v2303_v23, %v2162_v18  ;;  %v2256_v12 = vrot.slane %v2164_v38, 6  ;;  %v8225_v23 = vmax.f32 %v6287_v22, 0.0 }
 0x4d3   : > { %v2166_v42 = vpop.f32.mrf.mxu0 }
 0x4d4   : > { %v2341_v49 = vadd.f32 %v6894_v25, %v2319_v48  ;;  %v2257_v13 = vsel %vm1898_vm2, %v2255_v50, %v2256_v12  ;;  %v8226_v50 = vmax.f32 %v6589_v32, 0.0  ;;  %v8227_v48 = vmax.f32 %v6596_v28, 0.0 }
 0x4d5   : > { %v2320_v20 = vadd.f32 %v2257_v13, %v2166_v42  ;;  %v2170_v14 = vpop.f32.mrf.mxu0 }
 0x4d6   : > { %v2357_v16 = vmax.f32 %v2341_v49, 0.0  ;;  %v2258_v0 = vrot.slane %v2170_v14, 6  ;;  %v1615_v38 = vadd.f32 %v8226_v50, %v8225_v23 }
 0x4d7   : > { %v2342_v44 = vadd.f32 %v6894_v25, %v2320_v20  ;;  %v2172_v52 = vpop.f32.mrf.mxu0 }
 0x4d8   : > { %v6905_v53 = vadd.f32 %v2357_v16, %v1614_v46  ;;  %v2259_v18 = vsel %vm1898_vm2, %v2256_v12, %v2258_v0  ;;  %v6914_v15 = vadd.f32 %v2357_v16, %v8227_v48  ;;  %v8228_v12 = vmax.f32 %v6605_v58, 0.0 }
 0x4d9   : > { %v2358_v6 = vmax.f32 %v2342_v44, 0.0  ;;  %v2305_v42 = vsel %vm1947_vm3, %v2259_v18, 0.0  ;;  %v2174_v49 = vpop.f32.mrf.mxu0  ;;  %v8230_v18 = vmax.f32 %v6608_v30, 0.0 }
 0x4da   : > { %v2321_v13 = vadd.f32 %v2305_v42, %v2172_v52  ;;  %v2260_v20 = vrot.slane %v2174_v49, 6  ;;  %v2405_v10 = vmax.f32 %v6914_v15, 0.0  ;;  %v8229_v52 = vmax.f32 %v6298_v40, 0.0 }
 0x4db   : > { %v6918_v14 = vadd.f32 %v2358_v6, %v1615_v38  ;;  %v6922_v19 = vadd.f32 %v2358_v6, %v8228_v12  ;;  %v2176_v22 = vpop.f32.mrf.mxu0  ;;  %v8231_v49 = vmax.f32 %v6291_v26, 0.0  ;;  %v8232_v40 = vmax.f32 %v6619_v39, 0.0 }
 0x4dc   : > { %v2343_v32 = vadd.f32 %v6894_v25, %v2321_v13  ;;  %v2261_v28 = vsel %vm1898_vm2, %v2258_v0, %v2260_v20  ;;  %v1616_v23 = vadd.f32 %v8230_v18, %v8229_v52  ;;  %v8233_v13 = vmax.f32 %v6626_v31, 0.0 }
 0x4dd   : > { %v2406_v46 = vmax.f32 %v6922_v19, 0.0  ;;  %v2322_v16 = vadd.f32 %v2261_v28, %v2176_v22  ;;  %v2180_v44 = vpop.f32.mrf.mxu0  ;;  %v1617_v30 = vadd.f32 %v8232_v40, %v8231_v49  ;;  %v8234_v26 = vmax.f32 %v6636_v55, 0.0 }
 0x4de   : > { %v2359_v50 = vmax.f32 %v2343_v32, 0.0  ;;  %v2262_v58 = vrot.slane %v2180_v44, 6 }
 0x4df   : > { %v2440_v38 = vpack.c.bf16 %v2406_v46, %v2405_v10  ;;  %v2344_v0 = vadd.f32 %v6894_v25, %v2322_v16  ;;  %v2182_v48 = vpop.f32.mrf.mxu0 }
 0x4e0   : > { %v6937_v6 = vadd.f32 %v2359_v50, %v1616_v23  ;;  %v2263_v42 = vsel %vm1898_vm2, %v2260_v20, %v2262_v58  ;;  %v6946_v12 = vadd.f32 %v2359_v50, %v8233_v13 }
 0x4e1   : > { %v2360_v22 = vmax.f32 %v2344_v0, 0.0  ;;  %v2307_v32 = vsel %vm1947_vm3, %v2263_v42, 0.0  ;;  %v2184_v28 = vpop.f32.mrf.mxu0  ;;  %2561 = vmatmul.mubr.bf16.vlgmr.msra.gmra.mxu1 %v2440_v38  ;;  %v8236_v42 = vmax.f32 %v6639_v61, 0.0 }
 0x4e2   : > { %v2323_v16 = vadd.f32 %v2307_v32, %v2182_v48  ;;  %v2264_v44 = vrot.slane %v2184_v28, 6  ;;  %2570 = vmatprep.mubr.bf16.mxu1 %v8222_v56  ;;  %v2407_v23 = vmax.f32 %v6946_v12, 0.0  ;;  %v8235_v48 = vmax.f32 %v6334_v33, 0.0 }
 0x4e3   : > { %v6951_v20 = vadd.f32 %v2360_v22, %v1617_v30  ;;  %v6955_v39 = vadd.f32 %v2360_v22, %v8234_v26  ;;  %v2186_v52 = vpop.f32.mrf.mxu0  ;;  %v8237_v28 = vmax.f32 %v6321_v34, 0.0  ;;  %v8238_v33 = vmax.f32 %v6646_v51, 0.0 }
 0x4e4   : > { %v2345_v31 = vadd.f32 %v6894_v25, %v2323_v16  ;;  %v2265_v18 = vsel %vm1898_vm2, %v2262_v58, %v2264_v44  ;;  %v1618_v49 = vadd.f32 %v8236_v42, %v8235_v48  ;;  %v8239_v16 = vmax.f32 %v6657_v11, 0.0 }
 0x4e5   : > { %v2324_v50 = vadd.f32 %v2265_v18, %v2186_v52  ;;  %v2190_v0 = vpop.f32.mrf.mxu0  ;;  %v2408_v38 = vmax.f32 %v6955_v39, 0.0  ;;  %v1619_v61 = vadd.f32 %v8238_v33, %v8237_v28  ;;  %v8240_v34 = vmax.f32 %v6667_v8, 0.0 }
 0x4e6   : > { %v2361_v40 = vmax.f32 %v2345_v31, 0.0  ;;  %v2266_v55 = vrot.slane %v2190_v0, 6 }
 0x4e7   : > { %v2346_v30 = vadd.f32 %v6894_v25, %v2324_v50  ;;  %v2192_v13 = vpop.f32.mrf.mxu0  ;;  %v2441_v58 = vpack.c.bf16 %v2408_v38, %v2407_v23 }
 0x4e8   : > { %v6970_v22 = vadd.f32 %v2361_v40, %v1618_v49  ;;  %v2267_v32 = vsel %vm1898_vm2, %v2264_v44, %v2266_v55  ;;  %v6979_v26 = vadd.f32 %v2361_v40, %v8239_v16 }
 0x4e9   : > { %v2362_v52 = vmax.f32 %v2346_v30, 0.0  ;;  %v2309_v31 = vsel %vm1947_vm3, %v2267_v32, 0.0  ;;  %v2194_v18 = vpop.f32.mrf.mxu0  ;;  %2571 = vmatmul.mubr.bf16.gmra.mxu1 %v2441_v58  ;;  %v8241_v58 = vmax.f32 %v6359_v7, 0.0  ;;  %v8242_v32 = vmax.f32 %v6670_v21, 0.0 }
 0x4ea   : > { %v2325_v50 = vadd.f32 %v2309_v31, %v2192_v13  ;;  %v2268_v0 = vrot.slane %v2194_v18, 6  ;;  %2580 = vmatprep.mubr.bf16.mxu1 %v8222_v56  ;;  %v2409_v49 = vmax.f32 %v6979_v26, 0.0  ;;  %v8243_v18 = vmax.f32 %v6346_v1, 0.0 }
 0x4eb   : > { %v6984_v44 = vadd.f32 %v2362_v52, %v1619_v61  ;;  %v6988_v51 = vadd.f32 %v2362_v52, %v8240_v34  ;;  %v2196_v48 = vpop.f32.mrf.mxu0  ;;  %v1620_v28 = vadd.f32 %v8242_v32, %v8241_v58  ;;  %v8244_v7 = vmax.f32 %v6677_v2, 0.0 }
 0x4ec   : > { %v2347_v11 = vadd.f32 %v6894_v25, %v2325_v50  ;;  %v2269_v42 = vsel %vm1898_vm2, %v2266_v55, %v2268_v0  ;;  %v8245_v50 = vmax.f32 %v6688_v45, 0.0  ;;  %v8246_v1 = vmax.f32 %v6698_v41, 0.0 }
 0x4ed   : > { %v2326_v40 = vadd.f32 %v2269_v42, %v2196_v48  ;;  %v2200_v30 = vpop.f32.mrf.mxu0  ;;  %v2410_v13 = vmax.f32 %v6988_v51, 0.0  ;;  %v1621_v21 = vadd.f32 %v8244_v7, %v8243_v18 }
 0x4ee   : > { %v2363_v33 = vmax.f32 %v2347_v11, 0.0  ;;  %v2270_v8 = vrot.slane %v2200_v30, 6 }
 0x4ef   : > { %v2348_v61 = vadd.f32 %v6894_v25, %v2326_v40  ;;  %v2202_v16 = vpop.f32.mrf.mxu0  ;;  %v2442_v55 = vpack.c.bf16 %v2410_v13, %v2409_v49 }
 0x4f0   : > { %v7003_v52 = vadd.f32 %v2363_v33, %v1620_v28  ;;  %v2271_v31 = vsel %vm1898_vm2, %v2268_v0, %v2270_v8  ;;  %v7012_v34 = vadd.f32 %v2363_v33, %v8245_v50 }
 0x4f1   : > { %v2364_v48 = vmax.f32 %v2348_v61, 0.0  ;;  %v2311_v11 = vsel %vm1947_vm3, %v2271_v31, 0.0  ;;  %v2204_v42 = vpop.f32.mrf.mxu0  ;;  %2581 = vmatmul.mubr.bf16.gmra.mxu1 %v2442_v55  ;;  %v8247_v55 = vmax.f32 %v6392_v43, 0.0  ;;  %v8248_v31 = vmax.f32 %v6701_v54, 0.0 }
 0x4f2   : > { %v2327_v40 = vadd.f32 %v2311_v11, %v2202_v16  ;;  %v2272_v30 = vrot.slane %v2204_v42, 6  ;;  %2590 = vmatprep.mubr.bf16.mxu1 %v8222_v56  ;;  %v2411_v28 = vmax.f32 %v7012_v34, 0.0  ;;  %v8249_v42 = vmax.f32 %v6379_v27, 0.0 }
 0x4f3   : > { %v7017_v0 = vadd.f32 %v2364_v48, %v1621_v21  ;;  %v7021_v2 = vadd.f32 %v2364_v48, %v8246_v1  ;;  %v2206_v58 = vpop.f32.mrf.mxu0  ;;  %v1622_v18 = vadd.f32 %v8248_v31, %v8247_v55  ;;  %v8250_v43 = vmax.f32 %v6708_v35, 0.0 }
 0x4f4   : > { %v2349_v45 = vadd.f32 %v6894_v25, %v2327_v40  ;;  %v2273_v32 = vsel %vm1898_vm2, %v2270_v8, %v2272_v30  ;;  %v8251_v40 = vmax.f32 %v6719_v62, 0.0  ;;  %v8252_v27 = vmax.f32 %v6729_v3, 0.0 }
 0x4f5   : > { %v2328_v33 = vadd.f32 %v2273_v32, %v2206_v58  ;;  %v2210_v61 = vpop.f32.mrf.mxu0  ;;  %v2412_v16 = vmax.f32 %v7021_v2, 0.0  ;;  %v1623_v54 = vadd.f32 %v8250_v43, %v8249_v42 }
 0x4f6   : > { %v2365_v7 = vmax.f32 %v2349_v45, 0.0  ;;  %v2274_v41 = vrot.slane %v2210_v61, 6 }
 0x4f7   : > { %v2350_v21 = vadd.f32 %v6894_v25, %v2328_v33  ;;  %v2212_v50 = vpop.f32.mrf.mxu0  ;;  %v2443_v8 = vpack.c.bf16 %v2412_v16, %v2411_v28 }
 0x4f8   : > { %v7036_v48 = vadd.f32 %v2365_v7, %v1622_v18  ;;  %v2275_v11 = vsel %vm1898_vm2, %v2272_v30, %v2274_v41  ;;  %v7045_v1 = vadd.f32 %v2365_v7, %v8251_v40 }
 0x4f9   : > { %v2366_v58 = vmax.f32 %v2350_v21, 0.0  ;;  %v2313_v45 = vsel %vm1947_vm3, %v2275_v11, 0.0  ;;  %v2214_v32 = vpop.f32.mrf.mxu0  ;;  %2591 = vmatmul.mubr.bf16.gmra.mxu1 %v2443_v8  ;;  %v8253_v8 = vmax.f32 %v6417_v9, 0.0  ;;  %v8254_v11 = vmax.f32 %v6732_v36, 0.0 }
 0x4fa   : > { %v2329_v33 = vadd.f32 %v2313_v45, %v2212_v50  ;;  %v2276_v61 = vrot.slane %v2214_v32, 6  ;;  %2600 = vmatprep.mubr.bf16.mxu1 %v8222_v56  ;;  %v2413_v18 = vmax.f32 %v7045_v1, 0.0  ;;  %v8255_v32 = vmax.f32 %v6404_v47, 0.0 }
 0x4fb   : > { %v7050_v30 = vadd.f32 %v2366_v58, %v1623_v54  ;;  %v7054_v35 = vadd.f32 %v2366_v58, %v8252_v27  ;;  %v2216_v55 = vpop.f32.mrf.mxu0  ;;  %v1624_v42 = vadd.f32 %v8254_v11, %v8253_v8  ;;  %v8256_v9 = vmax.f32 %v6739_v63, 0.0 }
 0x4fc   : > { %v2351_v62 = vadd.f32 %v6894_v25, %v2329_v33  ;;  %v2277_v31 = vsel %vm1898_vm2, %v2274_v41, %v2276_v61  ;;  %v8257_v33 = vmax.f32 %v6750_v24, 0.0  ;;  %v8258_v47 = vmax.f32 %v6760_v4, 0.0 }
 0x4fd   : > { %v2330_v7 = vadd.f32 %v2277_v31, %v2216_v55  ;;  %v2220_v21 = vpop.f32.mrf.mxu0  ;;  %v2414_v50 = vmax.f32 %v7054_v35, 0.0  ;;  %v1625_v36 = vadd.f32 %v8256_v9, %v8255_v32 }
 0x4fe   : > { %v2367_v43 = vmax.f32 %v2351_v62, 0.0  ;;  %v2278_v3 = vrot.slane %v2220_v21, 6 }
 0x4ff   : > { %v2352_v54 = vadd.f32 %v6894_v25, %v2330_v7  ;;  %v2222_v40 = vpop.f32.mrf.mxu0  ;;  %v2444_v41 = vpack.c.bf16 %v2414_v50, %v2413_v18 }
 0x500   : > { %v7069_v58 = vadd.f32 %v2367_v43, %v1624_v42  ;;  %v2279_v45 = vsel %vm1898_vm2, %v2276_v61, %v2278_v3  ;;  %v7078_v27 = vadd.f32 %v2367_v43, %v8257_v33 }
 0x501   : > { %v2368_v55 = vmax.f32 %v2352_v54, 0.0  ;;  %v2315_v62 = vsel %vm1947_vm3, %v2279_v45, 0.0  ;;  %v2224_v31 = vpop.f32.mrf.mxu0  ;;  %2601 = vmatmul.mubr.bf16.gmra.mxu1 %v2444_v41  ;;  %v8259_v41 = vmax.f32 %v6450_v17, 0.0  ;;  %v8260_v45 = vmax.f32 %v6763_v29, 0.0 }
 0x502   : > { %v2331_v7 = vadd.f32 %v2315_v62, %v2222_v40  ;;  %v2280_v21 = vrot.slane %v2224_v31, 6  ;;  %2610 = vmatprep.mubr.bf16.mxu1 %v8222_v56  ;;  %v8178_v42 = vmax.f32 %v7078_v27, 0.0  ;;  %v8261_v31 = vmax.f32 %v6437_v60, 0.0 }
 0x503   : > { %v7083_v61 = vadd.f32 %v2368_v55, %v1625_v36  ;;  %v7087_v63 = vadd.f32 %v2368_v55, %v8258_v47  ;;  %v2226_v8 = vpop.f32.mrf.mxu0  ;;  %v1626_v32 = vadd.f32 %v8260_v45, %v8259_v41  ;;  %v8262_v17 = vmax.f32 %v6770_v5, 0.0 }
 0x504   : > { %v2353_v24 = vadd.f32 %v6894_v25, %v2331_v7  ;;  %v2281_v11 = vsel %vm1898_vm2, %v2278_v3, %v2280_v21  ;;  %v8263_v7 = vmax.f32 %v6781_v37, 0.0  ;;  %v8264_v60 = vmax.f32 %v6791_v59, 0.0 }
 0x505   : > { %v2332_v43 = vadd.f32 %v2281_v11, %v2226_v8  ;;  %v2230_v54 = vpop.f32.mrf.mxu0  ;;  %v8177_v40 = vmax.f32 %v7087_v63, 0.0  ;;  %v1627_v29 = vadd.f32 %v8262_v17, %v8261_v31 }
 0x506   : > { %v2369_v9 = vmax.f32 %v2353_v24, 0.0  ;;  %v2282_v4 = vrot.slane %v2230_v54, 6 }
 0x507   : > { %v2354_v36 = vadd.f32 %v6894_v25, %v2332_v43  ;;  %v2232_v33 = vpop.f32.mrf.mxu0  ;;  %v2445_v3 = vpack.c.bf16 %v8177_v40, %v8178_v42 }
 0x508   : > { %v7102_v55 = vadd.f32 %v2369_v9, %v1626_v32  ;;  %v2283_v62 = vsel %vm1898_vm2, %v2280_v21, %v2282_v4  ;;  %v7111_v47 = vadd.f32 %v2369_v9, %v8263_v7 }
 0x509   : > { %v2370_v8 = vmax.f32 %v2354_v36, 0.0  ;;  %v2317_v24 = vsel %vm1947_vm3, %v2283_v62, 0.0  ;;  %v2234_v11 = vpop.f32.mrf.mxu0  ;;  %2611 = vmatmul.mubr.bf16.gmra.mxu1 %v2445_v3  ;;  %v8267_v62 = vld [vmem:[#allocation16_spill] sm:$0xff] }
 0x50a   : > { %v2333_v43 = vadd.f32 %v2317_v24, %v2232_v33  ;;  %v2284_v54 = vrot.slane %v2234_v11, 6  ;;  %2620 = vmatprep.mubr.bf16.mxu1 %v8222_v56  ;;  %v8176_v32 = vmax.f32 %v7111_v47, 0.0  ;;  %v8265_v33 = vld [vmem:[#allocation15_spill] sm:$0xff]  ;;  %v8268_v31 = vmax.f32 %v8267_v62, 0.0  ;;  %v8271_v11 = vld [vmem:[#allocation17_spill] sm:$0xff] }
 0x50b   : > { %v7116_v21 = vadd.f32 %v2370_v8, %v1627_v29  ;;  %v7120_v5 = vadd.f32 %v2370_v8, %v8264_v60  ;;  %v2236_v41 = vpop.f32.mrf.mxu0  ;;  %v8266_v3 = vmax.f32 %v8265_v33, 0.0  ;;  %v8273_v60 = vld [vmem:[#allocation18_spill] sm:$0xff] }
 0x50c   : > { %v2355_v37 = vadd.f32 %v6894_v25, %v2333_v43  ;;  %v2285_v45 = vsel %vm1898_vm2, %v2282_v4, %v2284_v54  ;;  %v8269_v4 = vld [vmem:[#allocation14_spill] sm:$0xff]  ;;  %v8272_v43 = vmax.f32 %v8271_v11, 0.0  ;;  %v5692_v11 = vld [vmem:[#allocation3 + $0x1e0] ss:$8 sps:$4 sm:$0xff]  }
 0x50d   : > { %v2334_v9 = vadd.f32 %v2285_v45, %v2236_v41  ;;  %v8175_v36 = vmax.f32 %v7120_v5, 0.0  ;;  %v1628_v17 = vadd.f32 %v8268_v31, %v8266_v3  ;;  %v8270_v24 = vmax.f32 %v8269_v4, 0.0  ;;  %v5691_v4 = vld [vmem:[#allocation3 + $0x1f4] ss:$8 sps:$4 sm:$0xff]  }
 0x50e   : > { %v2371_v29 = vmax.f32 %v2355_v37, 0.0  ;;  %v8274_v41 = vmax.f32 %v8273_v60, 0.0  ;;  %v8275_v37 = vld [vmem:[#allocation19_spill] sm:$0xff]  ;;  %3287 = vmatprep.subr.bf16.mxu1 %v5691_v4  ;;  %v5700_v60 = vld [vmem:[#allocation3 + $0x1c4] ss:$8 sps:$4 sm:$0xff]  }
 0x50f   : > { %v2356_v59 = vadd.f32 %v6894_v25, %v2334_v9  ;;  %v2446_v7 = vpack.c.bf16 %v8175_v36, %v8176_v32  ;;  %v1629_v54 = vadd.f32 %v8272_v43, %v8270_v24  ;;  %v8276_v9 = vmax.f32 %v8275_v37, 0.0  ;;  %v5694_v24 = vld [vmem:[#allocation3 + $0x1e4] ss:$8 sps:$4 sm:$0xff]   ;;  %v5697_v43 = vld [vmem:[#allocation3 + $0x1d4] ss:$8 sps:$4 sm:$0xff]  }
 0x510   : > { %v7135_v8 = vadd.f32 %v2371_v29, %v1628_v17  ;;  %v7143_v45 = vadd.f32 %v2371_v29, %v8274_v41  ;;  %v5688_v29 = vld [vmem:[#allocation6 + $0x104] ss:$8 sps:$4 sm:$0xff]   ;;  %v5698_v41 = vld [vmem:[#allocation3 + $0x1c0] ss:$8 sps:$4 sm:$0xff]   ;;  %v5701_v37 = vld [vmem:[#allocation3 + $0x1b0] ss:$8 sps:$4 sm:$0xff]  }
 0x511   : > { %v2372_v33 = vmax.f32 %v2356_v59, 0.0  ;;  %2621 = vmatmul.mubr.bf16.gmra.mxu1 %v2446_v7  ;;  %v5686_v59 = vld [vmem:[#allocation6 + $0x100] ss:$8 sps:$4 sm:$0xff]   ;;  %2899 = vmatprep.subr.bf16.mxu0 %v5688_v29  ;;  %v5689_v7 = vld [vmem:[#allocation3 + $0x1f0] ss:$8 sps:$4 sm:$0xff]  }
 0x512   : > { %2630 = vmatprep.mubr.bf16.mxu1 %v8222_v56  ;;  %v8174_v62 = vmax.f32 %v7143_v45, 0.0  ;;  %2900 = vmatpush1.bf16.msra.mxu0 %v5686_v59 }
 0x513   : > { %v7146_v25 = vadd.f32 %v2372_v33, %v1629_v54  ;;  %v7150_v3 = vadd.f32 %v2372_v33, %v8276_v9  ;;  %3288 = vmatpush1.bf16.msra.mxu1 %v5689_v7  ;;  %v5695_v54 = vld [vmem:[#allocation3 + $0x1d0] ss:$8 sps:$4 sm:$0xff]   ;;  %v5703_v33 = vld [vmem:[#allocation3 + $0x1b4] ss:$8 sps:$4 sm:$0xff]   ;;  %v5706_v9 = vld [vmem:[#allocation3 + $0x1a4] ss:$8 sps:$4 sm:$0xff]  }
 0x514   : > { %3289 = vmatprep.subr.bf16.mxu1 %v5694_v24 }
 0x515   : > { %v8173_v31 = vmax.f32 %v7150_v3, 0.0 }
 0x517   : > { %v2447_v17 = vpack.c.bf16 %v8173_v31, %v8174_v62  ;;  %3290 = vmatpush1.bf16.msra.mxu1 %v5692_v11 }
 0x518   : > { %3291 = vmatprep.subr.bf16.mxu1 %v5697_v43  ;;  %v7166_v43 = vld [vmem:[%s8102_s8 + $0x2] ss:$0 sm:$0xff] }
 0x519   : > { %2631 = vmatmul.mubr.bf16.gmra.mxu1 %v2447_v17  ;;  %v5704_v17 = vld [vmem:[#allocation3 + $0x1a0] ss:$8 sps:$4 sm:$0xff]  }
 0x51a   : > { %3319 = vmatprep.mubr.bf16.mxu1 %v8222_v56 }
 0x51b   : > { %3292 = vmatpush1.bf16.msra.mxu1 %v5695_v54 }
 0x51c   : > { %3293 = vmatprep.subr.bf16.mxu1 %v5700_v60 }
 0x51f   : > { %3294 = vmatpush1.bf16.msra.mxu1 %v5698_v41 }
 0x520   : > { %3295 = vmatprep.subr.bf16.mxu1 %v5703_v33 }
 0x523   : > { %3296 = vmatpush1.bf16.msra.mxu1 %v5701_v37 }
 0x524   : > { %3297 = vmatprep.subr.bf16.mxu1 %v5706_v9 }
 0x527   : > { %3298 = vmatpush1.bf16.msra.mxu1 %v5704_v17 }
 0x5a1   : > { %v2562_v29 = vpop.f32.mrf.mxu1 }
 0x5a2   : > { %v2658_v59 = vrot.slane %v2562_v29, 4 }
 0x5a3   : > { %v2564_v7 = vpop.f32.mrf.mxu1 }
 0x5a4   : > { %v2705_v4 = vsel %vm2657_vm4, 0.0, %v2658_v59 }
 0x5a5   : > { %v2708_v24 = vsel %vm2706_vm5, %v2705_v4, 0.0  ;;  %v2566_v11 = vpop.f32.mrf.mxu1 }
 0x5a6   : > { %v2724_v54 = vadd.f32 %v2708_v24, %v2564_v7  ;;  %v2659_v60 = vrot.slane %v2566_v11, 4 }
 0x5a7   : > { %v2568_v41 = vpop.f32.mrf.mxu1 }
 0x5a8   : > { %v2660_v33 = vsel %vm2657_vm4, %v2658_v59, %v2659_v60  ;;  %v2746_v37 = vadd.f32 %v7166_v43, %v2724_v54 }
 0x5a9   : > { %v2725_v9 = vadd.f32 %v2660_v33, %v2568_v41  ;;  %v2572_v17 = vpop.f32.mrf.mxu1 }
 0x5aa   : > { %v2661_v29 = vrot.slane %v2572_v17, 4  ;;  %v2762_v36 = vmax.f32 %v2746_v37, 0.0 }
 0x5ab   : > { %v2747_v31 = vadd.f32 %v7166_v43, %v2725_v9  ;;  %v2574_v62 = vpop.f32.mrf.mxu1 }
 0x5ac   : > { %v2662_v4 = vsel %vm2657_vm4, %v2659_v60, %v2661_v29 }
 0x5ad   : > { %v2763_v32 = vmax.f32 %v2747_v31, 0.0  ;;  %v2710_v40 = vsel %vm2706_vm5, %v2662_v4, 0.0  ;;  %v2576_v7 = vpop.f32.mrf.mxu1 }
 0x5ae   : > { %v2726_v24 = vadd.f32 %v2710_v40, %v2574_v62  ;;  %v2663_v11 = vrot.slane %v2576_v7, 4 }
 0x5af   : > { %v2797_v42 = vpack.c.bf16 %v2763_v32, %v2762_v36  ;;  %v2578_v59 = vpop.f32.mrf.mxu1 }
 0x5b0   : > { %v2664_v54 = vsel %vm2657_vm4, %v2661_v29, %v2663_v11  ;;  %v2748_v41 = vadd.f32 %v7166_v43, %v2726_v24 }
 0x5b1   : > { %v2727_v33 = vadd.f32 %v2664_v54, %v2578_v59  ;;  %v2582_v17 = vpop.f32.mrf.mxu1  ;;  %2918 = vmatmul.mubr.bf16.vlgmr.msra.gmra.mxu0 %v2797_v42 }
 0x5b2   : > { %v2665_v9 = vrot.slane %v2582_v17, 4  ;;  %2927 = vmatprep.mubr.bf16.mxu0 %v8222_v56  ;;  %v2764_v4 = vmax.f32 %v2748_v41, 0.0 }
 0x5b3   : > { %v2749_v31 = vadd.f32 %v7166_v43, %v2727_v33  ;;  %v2584_v60 = vpop.f32.mrf.mxu1 }
 0x5b4   : > { %v2666_v37 = vsel %vm2657_vm4, %v2663_v11, %v2665_v9 }
 0x5b5   : > { %v2765_v40 = vmax.f32 %v2749_v31, 0.0  ;;  %v2712_v32 = vsel %vm2706_vm5, %v2666_v37, 0.0  ;;  %v2586_v36 = vpop.f32.mrf.mxu1 }
 0x5b6   : > { %v2728_v62 = vadd.f32 %v2712_v32, %v2584_v60  ;;  %v2667_v29 = vrot.slane %v2586_v36, 4 }
 0x5b7   : > { %v2588_v7 = vpop.f32.mrf.mxu1  ;;  %v2798_v24 = vpack.c.bf16 %v2765_v40, %v2764_v4 }
 0x5b8   : > { %v2668_v42 = vsel %vm2657_vm4, %v2665_v9, %v2667_v29  ;;  %v2750_v59 = vadd.f32 %v7166_v43, %v2728_v62 }
 0x5b9   : > { %v2729_v54 = vadd.f32 %v2668_v42, %v2588_v7  ;;  %v2592_v17 = vpop.f32.mrf.mxu1  ;;  %2928 = vmatmul.mubr.bf16.gmra.mxu0 %v2798_v24 }
 0x5ba   : > { %v2669_v33 = vrot.slane %v2592_v17, 4  ;;  %2937 = vmatprep.mubr.bf16.mxu0 %v8222_v56  ;;  %v2766_v37 = vmax.f32 %v2750_v59, 0.0 }
 0x5bb   : > { %v2751_v11 = vadd.f32 %v7166_v43, %v2729_v54  ;;  %v2594_v41 = vpop.f32.mrf.mxu1 }
 0x5bc   : > { %v2670_v31 = vsel %vm2657_vm4, %v2667_v29, %v2669_v33 }
 0x5bd   : > { %v2767_v60 = vmax.f32 %v2751_v11, 0.0  ;;  %v2714_v4 = vsel %vm2706_vm5, %v2670_v31, 0.0  ;;  %v2596_v40 = vpop.f32.mrf.mxu1 }
 0x5be   : > { %v2730_v9 = vadd.f32 %v2714_v4, %v2594_v41  ;;  %v2671_v32 = vrot.slane %v2596_v40, 4 }
 0x5bf   : > { %v2598_v36 = vpop.f32.mrf.mxu1  ;;  %v2799_v62 = vpack.c.bf16 %v2767_v60, %v2766_v37 }
 0x5c0   : > { %v2672_v7 = vsel %vm2657_vm4, %v2669_v33, %v2671_v32  ;;  %v2752_v24 = vadd.f32 %v7166_v43, %v2730_v9 }
 0x5c1   : > { %v2731_v42 = vadd.f32 %v2672_v7, %v2598_v36  ;;  %v2602_v17 = vpop.f32.mrf.mxu1  ;;  %2938 = vmatmul.mubr.bf16.gmra.mxu0 %v2799_v62 }
 0x5c2   : > { %v2673_v54 = vrot.slane %v2602_v17, 4  ;;  %2947 = vmatprep.mubr.bf16.mxu0 %v8222_v56  ;;  %v2768_v31 = vmax.f32 %v2752_v24, 0.0 }
 0x5c3   : > { %v2753_v29 = vadd.f32 %v7166_v43, %v2731_v42  ;;  %v2604_v59 = vpop.f32.mrf.mxu1 }
 0x5c4   : > { %v2674_v11 = vsel %vm2657_vm4, %v2671_v32, %v2673_v54 }
 0x5c5   : > { %v2769_v41 = vmax.f32 %v2753_v29, 0.0  ;;  %v2716_v37 = vsel %vm2706_vm5, %v2674_v11, 0.0  ;;  %v2606_v60 = vpop.f32.mrf.mxu1 }
 0x5c6   : > { %v2732_v33 = vadd.f32 %v2716_v37, %v2604_v59  ;;  %v2675_v4 = vrot.slane %v2606_v60, 4 }
 0x5c7   : > { %v2608_v40 = vpop.f32.mrf.mxu1  ;;  %v2800_v9 = vpack.c.bf16 %v2769_v41, %v2768_v31 }
 0x5c8   : > { %v2676_v36 = vsel %vm2657_vm4, %v2673_v54, %v2675_v4  ;;  %v2754_v62 = vadd.f32 %v7166_v43, %v2732_v33 }
 0x5c9   : > { %v2733_v7 = vadd.f32 %v2676_v36, %v2608_v40  ;;  %v2612_v17 = vpop.f32.mrf.mxu1  ;;  %2948 = vmatmul.mubr.bf16.gmra.mxu0 %v2800_v9 }
 0x5ca   : > { %v2677_v42 = vrot.slane %v2612_v17, 4  ;;  %2957 = vmatprep.mubr.bf16.mxu0 %v8222_v56  ;;  %v2770_v11 = vmax.f32 %v2754_v62, 0.0 }
 0x5cb   : > { %v2755_v32 = vadd.f32 %v7166_v43, %v2733_v7  ;;  %v2614_v24 = vpop.f32.mrf.mxu1 }
 0x5cc   : > { %v2678_v29 = vsel %vm2657_vm4, %v2675_v4, %v2677_v42 }
 0x5cd   : > { %v2771_v59 = vmax.f32 %v2755_v32, 0.0  ;;  %v2718_v31 = vsel %vm2706_vm5, %v2678_v29, 0.0  ;;  %v2616_v41 = vpop.f32.mrf.mxu1 }
 0x5ce   : > { %v2734_v54 = vadd.f32 %v2718_v31, %v2614_v24  ;;  %v2679_v37 = vrot.slane %v2616_v41, 4 }
 0x5cf   : > { %v2618_v60 = vpop.f32.mrf.mxu1  ;;  %v2801_v33 = vpack.c.bf16 %v2771_v59, %v2770_v11 }
 0x5d0   : > { %v2680_v40 = vsel %vm2657_vm4, %v2677_v42, %v2679_v37  ;;  %v2756_v9 = vadd.f32 %v7166_v43, %v2734_v54 }
 0x5d1   : > { %v2735_v36 = vadd.f32 %v2680_v40, %v2618_v60  ;;  %v2622_v17 = vpop.f32.mrf.mxu1  ;;  %2958 = vmatmul.mubr.bf16.gmra.mxu0 %v2801_v33 }
 0x5d2   : > { %v2681_v7 = vrot.slane %v2622_v17, 4  ;;  %2967 = vmatprep.mubr.bf16.mxu0 %v8222_v56  ;;  %v2772_v29 = vmax.f32 %v2756_v9, 0.0 }
 0x5d3   : > { %v2757_v4 = vadd.f32 %v7166_v43, %v2735_v36  ;;  %v2624_v62 = vpop.f32.mrf.mxu1 }
 0x5d4   : > { %v2682_v32 = vsel %vm2657_vm4, %v2679_v37, %v2681_v7 }
 0x5d5   : > { %v2773_v24 = vmax.f32 %v2757_v4, 0.0  ;;  %v2720_v11 = vsel %vm2706_vm5, %v2682_v32, 0.0  ;;  %v2626_v59 = vpop.f32.mrf.mxu1 }
 0x5d6   : > { %v2736_v42 = vadd.f32 %v2720_v11, %v2624_v62  ;;  %v2683_v31 = vrot.slane %v2626_v59, 4 }
 0x5d7   : > { %v2628_v41 = vpop.f32.mrf.mxu1  ;;  %v2802_v54 = vpack.c.bf16 %v2773_v24, %v2772_v29 }
 0x5d8   : > { %v2684_v60 = vsel %vm2657_vm4, %v2681_v7, %v2683_v31  ;;  %v2758_v33 = vadd.f32 %v7166_v43, %v2736_v42 }
 0x5d9   : > { %v2737_v40 = vadd.f32 %v2684_v60, %v2628_v41  ;;  %v2632_v17 = vpop.f32.mrf.mxu1  ;;  %2968 = vmatmul.mubr.bf16.gmra.mxu0 %v2802_v54 }
 0x5da   : > { %v2685_v36 = vrot.slane %v2632_v17, 4  ;;  %2977 = vmatprep.mubr.bf16.mxu0 %v8222_v56  ;;  %v2774_v32 = vmax.f32 %v2758_v33, 0.0 }
 0x5db   : > { %v2759_v37 = vadd.f32 %v7166_v43, %v2737_v40  ;;  %v2634_v9 = vpop.f32.mrf.mxu1 }
 0x5dc   : > { %v2686_v4 = vsel %vm2657_vm4, %v2683_v31, %v2685_v36 }
 0x5dd   : > { %v2775_v62 = vmax.f32 %v2759_v37, 0.0  ;;  %v2722_v29 = vsel %vm2706_vm5, %v2686_v4, 0.0  ;;  %v2636_v24 = vpop.f32.mrf.mxu1  ;;  %v5709_v37 = vld [vmem:[#allocation3 + $0x194] ss:$8 sps:$4 sm:$0xff]   ;;  %v5712_v4 = vld [vmem:[#allocation3 + $0x184] ss:$8 sps:$4 sm:$0xff]  }
 0x5de   : > { %v2738_v7 = vadd.f32 %v2722_v29, %v2634_v9  ;;  %v2687_v11 = vrot.slane %v2636_v24, 4  ;;  %v5707_v9 = vld [vmem:[#allocation3 + $0x190] ss:$8 sps:$4 sm:$0xff]   ;;  %3299 = vmatprep.subr.bf16.mxu1 %v5709_v37  ;;  %v5718_v29 = vld [vmem:[#allocation6 + $0x1e4] ss:$8 sps:$4 sm:$0xff]  }
 0x5df   : > { %v2638_v59 = vpop.f32.mrf.mxu1  ;;  %v2803_v42 = vpack.c.bf16 %v2775_v62, %v2774_v32  ;;  %3300 = vmatpush1.bf16.msra.mxu1 %v5707_v9  ;;  %v5713_v32 = vld [vmem:[#allocation6 + $0x1f0] ss:$8 sps:$4 sm:$0xff]   ;;  %v5715_v62 = vld [vmem:[#allocation6 + $0x1f4] ss:$8 sps:$4 sm:$0xff]  }
 0x5e0   : > { %v2688_v41 = vsel %vm2657_vm4, %v2685_v36, %v2687_v11  ;;  %v2760_v54 = vadd.f32 %v7166_v43, %v2738_v7  ;;  %v5710_v36 = vld [vmem:[#allocation3 + $0x180] ss:$8 sps:$4 sm:$0xff]   ;;  %3301 = vmatprep.subr.bf16.mxu1 %v5712_v4  ;;  %3577 = vmatprep.subr.bf16.mxu0 %v5715_v62  ;;  %v5721_v24 = vld [vmem:[#allocation6 + $0x1d4] ss:$8 sps:$4 sm:$0xff]   ;;  %v5719_v7 = vld [vmem:[#allocation6 + $0x1d0] ss:$8 sps:$4 sm:$0xff]  }
 0x5e1   : > { %v2739_v60 = vadd.f32 %v2688_v41, %v2638_v59  ;;  %2978 = vmatmul.mubr.bf16.gmra.mxu0 %v2803_v42  ;;  %v5724_v11 = vld [vmem:[#allocation6 + $0x1c4] ss:$8 sps:$4 sm:$0xff]   ;;  %v5722_v59 = vld [vmem:[#allocation6 + $0x1c0] ss:$8 sps:$4 sm:$0xff]   ;;  %v5727_v42 = vld [vmem:[#allocation6 + $0x1b4] ss:$8 sps:$4 sm:$0xff]  }
 0x5e2   : > { %2987 = vmatprep.mubr.bf16.mxu0 %v8222_v56  ;;  %v2776_v33 = vmax.f32 %v2760_v54, 0.0  ;;  %3578 = vmatpush1.bf16.msra.mxu0 %v5713_v32  ;;  %v5725_v41 = vld [vmem:[#allocation6 + $0x1b0] ss:$8 sps:$4 sm:$0xff]   ;;  %v5730_v54 = vld [vmem:[#allocation6 + $0x1a4] ss:$8 sps:$4 sm:$0xff]  }
 0x5e3   : > { %v2761_v31 = vadd.f32 %v7166_v43, %v2739_v60  ;;  %3302 = vmatpush1.bf16.msra.mxu1 %v5710_v36  ;;  %v5716_v43 = vld [vmem:[#allocation6 + $0x1e0] ss:$8 sps:$4 sm:$0xff]   ;;  %3579 = vmatprep.subr.bf16.mxu0 %v5718_v29 }
 0x5e4   : > { %v5728_v60 = vld [vmem:[#allocation6 + $0x1a0] ss:$8 sps:$4 sm:$0xff]  }
 0x5e5   : > { %v2777_v40 = vmax.f32 %v2761_v31, 0.0  ;;  %v5733_v31 = vld [vmem:[#allocation6 + $0x194] ss:$8 sps:$4 sm:$0xff]   ;;  %v7225_v4 = vld [vmem:[%s8104_s10 + $0x2] ss:$0 sm:$0xff] }
 0x5e6   : > { %3580 = vmatpush1.bf16.msra.mxu0 %v5716_v43 }
 0x5e7   : > { %v2804_v17 = vpack.c.bf16 %v2777_v40, %v2776_v33  ;;  %3581 = vmatprep.subr.bf16.mxu0 %v5721_v24  ;;  %v5731_v33 = vld [vmem:[#allocation6 + $0x190] ss:$8 sps:$4 sm:$0xff]  }
 0x5e9   : > { %2988 = vmatmul.mubr.bf16.gmra.mxu0 %v2804_v17 }
 0x5ea   : > { %3609 = vmatprep.mubr.bf16.mxu0 %v8222_v56  ;;  %3582 = vmatpush1.bf16.msra.mxu0 %v5719_v7 }
 0x5eb   : > { %3583 = vmatprep.subr.bf16.mxu0 %v5724_v11 }
 0x5ee   : > { %3584 = vmatpush1.bf16.msra.mxu0 %v5722_v59 }
 0x5ef   : > { %3585 = vmatprep.subr.bf16.mxu0 %v5727_v42 }
 0x5f2   : > { %3586 = vmatpush1.bf16.msra.mxu0 %v5725_v41 }
 0x5f3   : > { %3587 = vmatprep.subr.bf16.mxu0 %v5730_v54 }
 0x5f6   : > { %3588 = vmatpush1.bf16.msra.mxu0 %v5728_v60 }
 0x5f7   : > { %3589 = vmatprep.subr.bf16.mxu0 %v5733_v31 }
 0x5fa   : > { %3590 = vmatpush1.bf16.msra.mxu0 %v5731_v33 }
 0x671   : > { %v2919_v40 = vpop.f32.mrf.mxu0 }
 0x672   : > { %v3014_v17 = vrot.slane %v2919_v40, 4 }
 0x673   : > { %v2921_v37 = vpop.f32.mrf.mxu0 }
 0x674   : > { %v3061_v9 = vsel %vm2657_vm4, 0.0, %v3014_v17 }
 0x675   : > { %v3062_v36 = vsel %vm2706_vm5, %v3061_v9, 0.0  ;;  %v2923_v32 = vpop.f32.mrf.mxu0 }
 0x676   : > { %v3078_v62 = vadd.f32 %v3062_v36, %v2921_v37  ;;  %v3015_v29 = vrot.slane %v2923_v32, 4 }
 0x677   : > { %v2925_v43 = vpop.f32.mrf.mxu0 }
 0x678   : > { %v3100_v24 = vadd.f32 %v7225_v4, %v3078_v62  ;;  %v3016_v7 = vsel %vm2657_vm4, %v3014_v17, %v3015_v29 }
 0x679   : > { %v3079_v11 = vadd.f32 %v3016_v7, %v2925_v43  ;;  %v2929_v59 = vpop.f32.mrf.mxu0 }
 0x67a   : > { %v3116_v42 = vmax.f32 %v3100_v24, 0.0  ;;  %v3017_v41 = vrot.slane %v2929_v59, 4 }
 0x67b   : > { %v3101_v54 = vadd.f32 %v7225_v4, %v3079_v11  ;;  %v2931_v60 = vpop.f32.mrf.mxu0 }
 0x67c   : > { %v3018_v31 = vsel %vm2657_vm4, %v3015_v29, %v3017_v41  ;;  %v7234_v33 = vadd.f32 %v3116_v42, %v6905_v53  ;;  %v7238_v40 = vadd.f32 %v3116_v42, %v2405_v10 }
 0x67d   : > { %v3117_v37 = vmax.f32 %v3101_v54, 0.0  ;;  %v3064_v17 = vsel %vm2706_vm5, %v3018_v31, 0.0  ;;  %v2933_v9 = vpop.f32.mrf.mxu0 }
 0x67e   : > { %v3080_v36 = vadd.f32 %v3064_v17, %v2931_v60  ;;  %v3019_v32 = vrot.slane %v2933_v9, 4  ;;  %v3164_v10 = vmax.f32 %v7238_v40, 0.0 }
 0x67f   : > { %v7243_v62 = vadd.f32 %v3117_v37, %v6918_v14  ;;  %v7247_v29 = vadd.f32 %v3117_v37, %v2406_v46  ;;  %v2935_v53 = vpop.f32.mrf.mxu0 }
 0x680   : > { %v3102_v43 = vadd.f32 %v7225_v4, %v3080_v36  ;;  %v3020_v15 = vsel %vm2657_vm4, %v3017_v41, %v3019_v32 }
 0x681   : > { %v3165_v24 = vmax.f32 %v7247_v29, 0.0  ;;  %v3081_v7 = vadd.f32 %v3020_v15, %v2935_v53  ;;  %v2939_v11 = vpop.f32.mrf.mxu0 }
 0x682   : > { %v3118_v59 = vmax.f32 %v3102_v43, 0.0  ;;  %v3021_v42 = vrot.slane %v2939_v11, 4 }
 0x683   : > { %v3199_v14 = vpack.c.bf16 %v3165_v24, %v3164_v10  ;;  %v3103_v19 = vadd.f32 %v7225_v4, %v3081_v7  ;;  %v2941_v46 = vpop.f32.mrf.mxu0 }
 0x684   : > { %v3022_v54 = vsel %vm2657_vm4, %v3019_v32, %v3021_v42  ;;  %v7260_v41 = vadd.f32 %v3118_v59, %v6937_v6  ;;  %v7264_v60 = vadd.f32 %v3118_v59, %v2407_v23 }
 0x685   : > { %v3119_v31 = vmax.f32 %v3103_v19, 0.0  ;;  %v3066_v37 = vsel %vm2706_vm5, %v3022_v54, 0.0  ;;  %v2943_v17 = vpop.f32.mrf.mxu0  ;;  %3320 = vmatmul.mubr.bf16.vlgmr.msra.gmra.mxu1 %v3199_v14 }
 0x686   : > { %v3082_v9 = vadd.f32 %v3066_v37, %v2941_v46  ;;  %v3023_v36 = vrot.slane %v2943_v17, 4  ;;  %3329 = vmatprep.mubr.bf16.mxu1 %v8222_v56  ;;  %v3166_v43 = vmax.f32 %v7264_v60, 0.0 }
 0x687   : > { %v7270_v53 = vadd.f32 %v3119_v31, %v6951_v20  ;;  %v7274_v6 = vadd.f32 %v3119_v31, %v2408_v38  ;;  %v2945_v12 = vpop.f32.mrf.mxu0 }
 0x688   : > { %v3104_v23 = vadd.f32 %v7225_v4, %v3082_v9  ;;  %v3024_v32 = vsel %vm2657_vm4, %v3021_v42, %v3023_v36 }
 0x689   : > { %v3083_v15 = vadd.f32 %v3024_v32, %v2945_v12  ;;  %v2949_v7 = vpop.f32.mrf.mxu0  ;;  %v3167_v11 = vmax.f32 %v7274_v6, 0.0 }
 0x68a   : > { %v3120_v59 = vmax.f32 %v3104_v23, 0.0  ;;  %v3025_v14 = vrot.slane %v2949_v7, 4 }
 0x68b   : > { %v3105_v20 = vadd.f32 %v7225_v4, %v3083_v15  ;;  %v2951_v19 = vpop.f32.mrf.mxu0  ;;  %v3200_v39 = vpack.c.bf16 %v3167_v11, %v3166_v43 }
 0x68c   : > { %v3026_v38 = vsel %vm2657_vm4, %v3023_v36, %v3025_v14  ;;  %v7287_v42 = vadd.f32 %v3120_v59, %v6970_v22  ;;  %v7291_v46 = vadd.f32 %v3120_v59, %v2409_v49 }
 0x68d   : > { %v3121_v54 = vmax.f32 %v3105_v20, 0.0  ;;  %v3068_v31 = vsel %vm2706_vm5, %v3026_v38, 0.0  ;;  %v2953_v37 = vpop.f32.mrf.mxu0  ;;  %3330 = vmatmul.mubr.bf16.gmra.mxu1 %v3200_v39 }
 0x68e   : > { %v3084_v17 = vadd.f32 %v3068_v31, %v2951_v19  ;;  %v3027_v9 = vrot.slane %v2953_v37, 4  ;;  %3339 = vmatprep.mubr.bf16.mxu1 %v8222_v56  ;;  %v3168_v23 = vmax.f32 %v7291_v46, 0.0 }
 0x68f   : > { %v7297_v12 = vadd.f32 %v3121_v54, %v6984_v44  ;;  %v7301_v22 = vadd.f32 %v3121_v54, %v2410_v13  ;;  %v2955_v26 = vpop.f32.mrf.mxu0 }
 0x690   : > { %v3106_v49 = vadd.f32 %v7225_v4, %v3084_v17  ;;  %v3028_v36 = vsel %vm2657_vm4, %v3025_v14, %v3027_v9 }
 0x691   : > { %v3169_v32 = vmax.f32 %v7301_v22, 0.0  ;;  %v3085_v15 = vadd.f32 %v3028_v36, %v2955_v26  ;;  %v2959_v7 = vpop.f32.mrf.mxu0 }
 0x692   : > { %v3122_v59 = vmax.f32 %v3106_v49, 0.0  ;;  %v3029_v20 = vrot.slane %v2959_v7, 4 }
 0x693   : > { %v3107_v44 = vadd.f32 %v7225_v4, %v3085_v15  ;;  %v2961_v19 = vpop.f32.mrf.mxu0  ;;  %v3201_v51 = vpack.c.bf16 %v3169_v32, %v3168_v23 }
 0x694   : > { %v3030_v13 = vsel %vm2657_vm4, %v3027_v9, %v3029_v20  ;;  %v7314_v14 = vadd.f32 %v3122_v59, %v7003_v52  ;;  %v7318_v39 = vadd.f32 %v3122_v59, %v2411_v28 }
 0x695   : > { %v3123_v38 = vmax.f32 %v3107_v44, 0.0  ;;  %v3070_v54 = vsel %vm2706_vm5, %v3030_v13, 0.0  ;;  %v2963_v31 = vpop.f32.mrf.mxu0  ;;  %3340 = vmatmul.mubr.bf16.gmra.mxu1 %v3201_v51 }
 0x696   : > { %v3086_v37 = vadd.f32 %v3070_v54, %v2961_v19  ;;  %v3031_v17 = vrot.slane %v2963_v31, 4  ;;  %3349 = vmatprep.mubr.bf16.mxu1 %v8222_v56  ;;  %v3170_v49 = vmax.f32 %v7318_v39, 0.0 }
 0x697   : > { %v7324_v26 = vadd.f32 %v3123_v38, %v7017_v0  ;;  %v7328_v52 = vadd.f32 %v3123_v38, %v2412_v16  ;;  %v2965_v34 = vpop.f32.mrf.mxu0 }
 0x698   : > { %v3108_v28 = vadd.f32 %v7225_v4, %v3086_v37  ;;  %v3032_v9 = vsel %vm2657_vm4, %v3029_v20, %v3031_v17 }
 0x699   : > { %v3171_v36 = vmax.f32 %v7328_v52, 0.0  ;;  %v3087_v15 = vadd.f32 %v3032_v9, %v2965_v34  ;;  %v2969_v7 = vpop.f32.mrf.mxu0 }
 0x69a   : > { %v3124_v59 = vmax.f32 %v3108_v28, 0.0  ;;  %v3033_v44 = vrot.slane %v2969_v7, 4 }
 0x69b   : > { %v3109_v0 = vadd.f32 %v7225_v4, %v3087_v15  ;;  %v2971_v19 = vpop.f32.mrf.mxu0  ;;  %v3202_v2 = vpack.c.bf16 %v3171_v36, %v3170_v49 }
 0x69c   : > { %v3034_v16 = vsel %vm2657_vm4, %v3031_v17, %v3033_v44  ;;  %v7341_v20 = vadd.f32 %v3124_v59, %v7036_v48  ;;  %v7345_v51 = vadd.f32 %v3124_v59, %v2413_v18 }
 0x69d   : > { %v3125_v13 = vmax.f32 %v3109_v0, 0.0  ;;  %v3072_v38 = vsel %vm2706_vm5, %v3034_v16, 0.0  ;;  %v2973_v54 = vpop.f32.mrf.mxu0  ;;  %3350 = vmatmul.mubr.bf16.gmra.mxu1 %v3202_v2  ;;  %v8277_v2 = vmax.f32 %v7078_v27, 0.0 }
 0x69e   : > { %v3088_v31 = vadd.f32 %v3072_v38, %v2971_v19  ;;  %v3035_v37 = vrot.slane %v2973_v54, 4  ;;  %3359 = vmatprep.mubr.bf16.mxu1 %v8222_v56  ;;  %v3172_v28 = vmax.f32 %v7345_v51, 0.0 }
 0x69f   : > { %v7351_v34 = vadd.f32 %v3125_v13, %v7050_v30  ;;  %v7355_v48 = vadd.f32 %v3125_v13, %v2414_v50  ;;  %v2975_v1 = vpop.f32.mrf.mxu0 }
 0x6a0   : > { %v3110_v18 = vadd.f32 %v7225_v4, %v3088_v31  ;;  %v3036_v17 = vsel %vm2657_vm4, %v3033_v44, %v3035_v37 }
 0x6a1   : > { %v3173_v9 = vmax.f32 %v7355_v48, 0.0  ;;  %v3089_v15 = vadd.f32 %v3036_v17, %v2975_v1  ;;  %v2979_v7 = vpop.f32.mrf.mxu0 }
 0x6a2   : > { %v3126_v59 = vmax.f32 %v3110_v18, 0.0  ;;  %v3037_v0 = vrot.slane %v2979_v7, 4 }
 0x6a3   : > { %v3111_v30 = vadd.f32 %v7225_v4, %v3089_v15  ;;  %v2981_v19 = vpop.f32.mrf.mxu0  ;;  %v3203_v35 = vpack.c.bf16 %v3173_v9, %v3172_v28 }
 0x6a4   : > { %v3038_v50 = vsel %vm2657_vm4, %v3035_v37, %v3037_v0  ;;  %v7368_v44 = vadd.f32 %v3126_v59, %v7069_v58  ;;  %v7372_v16 = vadd.f32 %v3126_v59, %v8277_v2  ;;  %v8278_v58 = vmax.f32 %v7087_v63, 0.0 }
 0x6a5   : > { %v3127_v13 = vmax.f32 %v3111_v30, 0.0  ;;  %v3074_v38 = vsel %vm2706_vm5, %v3038_v50, 0.0  ;;  %v2983_v54 = vpop.f32.mrf.mxu0  ;;  %3360 = vmatmul.mubr.bf16.gmra.mxu1 %v3203_v35 }
 0x6a6   : > { %v3090_v31 = vadd.f32 %v3074_v38, %v2981_v19  ;;  %v3039_v1 = vrot.slane %v2983_v54, 4  ;;  %3369 = vmatprep.mubr.bf16.mxu1 %v8222_v56  ;;  %v8184_v7 = vmax.f32 %v7372_v16, 0.0  ;;  %v8279_v38 = vmax.f32 %v7111_v47, 0.0 }
 0x6a7   : > { %v7378_v18 = vadd.f32 %v3127_v13, %v7083_v61  ;;  %v7382_v37 = vadd.f32 %v3127_v13, %v8278_v58  ;;  %v2985_v27 = vpop.f32.mrf.mxu0 }
 0x6a8   : > { %v3112_v17 = vadd.f32 %v7225_v4, %v3090_v31  ;;  %v3040_v15 = vsel %vm2657_vm4, %v3037_v0, %v3039_v1 }
 0x6a9   : > { %v8183_v59 = vmax.f32 %v7382_v37, 0.0  ;;  %v3091_v30 = vadd.f32 %v3040_v15, %v2985_v27  ;;  %v2989_v19 = vpop.f32.mrf.mxu0 }
 0x6aa   : > { %v3128_v35 = vmax.f32 %v3112_v17, 0.0  ;;  %v3041_v50 = vrot.slane %v2989_v19, 4 }
 0x6ab   : > { %v3113_v61 = vadd.f32 %v7225_v4, %v3091_v30  ;;  %v2991_v2 = vpop.f32.mrf.mxu0  ;;  %v3204_v63 = vpack.c.bf16 %v8183_v59, %v8184_v7 }
 0x6ac   : > { %v3042_v13 = vsel %vm2657_vm4, %v3039_v1, %v3041_v50  ;;  %v7395_v0 = vadd.f32 %v3128_v35, %v7102_v55  ;;  %v7399_v54 = vadd.f32 %v3128_v35, %v8279_v38  ;;  %v8280_v55 = vmax.f32 %v7120_v5, 0.0 }
 0x6ad   : > { %v3129_v31 = vmax.f32 %v3113_v61, 0.0  ;;  %v3076_v58 = vsel %vm2706_vm5, %v3042_v13, 0.0  ;;  %v2993_v27 = vpop.f32.mrf.mxu0  ;;  %3370 = vmatmul.mubr.bf16.gmra.mxu1 %v3204_v63 }
 0x6ae   : > { %v3092_v17 = vadd.f32 %v3076_v58, %v2991_v2  ;;  %v3043_v15 = vrot.slane %v2993_v27, 4  ;;  %3379 = vmatprep.mubr.bf16.mxu1 %v8222_v56  ;;  %v8182_v61 = vmax.f32 %v7399_v54, 0.0 }
 0x6af   : > { %v7405_v30 = vadd.f32 %v3129_v31, %v7116_v21  ;;  %v7409_v1 = vadd.f32 %v3129_v31, %v8280_v55  ;;  %v2995_v47 = vpop.f32.mrf.mxu0  ;;  %v8281_v31 = vmax.f32 %v7143_v45, 0.0  ;;  %v5736_v55 = vld [vmem:[#allocation6 + $0x184] ss:$8 sps:$4 sm:$0xff]  }
 0x6b0   : > { %v3114_v19 = vadd.f32 %v7225_v4, %v3092_v17  ;;  %v3044_v35 = vsel %vm2657_vm4, %v3041_v50, %v3043_v15  ;;  %3591 = vmatprep.subr.bf16.mxu0 %v5736_v55 }
 0x6b1   : > { %v8181_v63 = vmax.f32 %v7409_v1, 0.0  ;;  %v3093_v2 = vadd.f32 %v3044_v35, %v2995_v47  ;;  %v5734_v47 = vld [vmem:[#allocation6 + $0x180] ss:$8 sps:$4 sm:$0xff]  }
 0x6b2   : > { %v3130_v13 = vmax.f32 %v3114_v19, 0.0  ;;  %3592 = vmatpush1.bf16.msra.mxu0 %v5734_v47  ;;  %v5742_v19 = vld [vmem:[#allocation3 + $0x264] ss:$8 sps:$4 sm:$0xff]   ;;  %v5740_v35 = vld [vmem:[#allocation3 + $0x260] ss:$8 sps:$4 sm:$0xff]  }
 0x6b3   : > { %v3115_v38 = vadd.f32 %v7225_v4, %v3093_v2  ;;  %v3205_v21 = vpack.c.bf16 %v8181_v63, %v8182_v61  ;;  %v8282_v4 = vmax.f32 %v7150_v3, 0.0  ;;  %v5739_v3 = vld [vmem:[#allocation3 + $0x274] ss:$8 sps:$4 sm:$0xff]  }
 0x6b4   : > { %v7421_v5 = vadd.f32 %v3130_v13, %v7135_v8  ;;  %v7425_v58 = vadd.f32 %v3130_v13, %v8281_v31  ;;  %3913 = vmatprep.subr.bf16.mxu1 %v5739_v3  ;;  %v5745_v2 = vld [vmem:[#allocation3 + $0x254] ss:$8 sps:$4 sm:$0xff]   ;;  %v5743_v13 = vld [vmem:[#allocation3 + $0x250] ss:$8 sps:$4 sm:$0xff]  }
 0x6b5   : > { %v3131_v50 = vmax.f32 %v3115_v38, 0.0  ;;  %3380 = vmatmul.mubr.bf16.gmra.mxu1 %v3205_v21  ;;  %v5748_v38 = vld [vmem:[#allocation3 + $0x244] ss:$8 sps:$4 sm:$0xff]   ;;  %v5746_v21 = vld [vmem:[#allocation3 + $0x240] ss:$8 sps:$4 sm:$0xff]  }
 0x6b6   : > { %3389 = vmatprep.mubr.bf16.mxu1 %v8222_v56  ;;  %v8180_v15 = vmax.f32 %v7425_v58, 0.0  ;;  %v5751_v31 = vld [vmem:[#allocation3 + $0x234] ss:$8 sps:$4 sm:$0xff]  }
 0x6b7   : > { %v7429_v27 = vadd.f32 %v3131_v50, %v7146_v25  ;;  %v7433_v17 = vadd.f32 %v3131_v50, %v8282_v4  ;;  %v5737_v25 = vld [vmem:[#allocation3 + $0x270] ss:$8 sps:$4 sm:$0xff]   ;;  %v5754_v4 = vld [vmem:[#allocation3 + $0x224] ss:$8 sps:$4 sm:$0xff]  }
 0x6b8   : > { %3914 = vmatpush1.bf16.msra.mxu1 %v5737_v25  ;;  %v5749_v50 = vld [vmem:[#allocation3 + $0x230] ss:$8 sps:$4 sm:$0xff]   ;;  %v7445_v25 = vld [vmem:[%s8102_s8 + $0x3] ss:$0 sm:$0xff] }
 0x6b9   : > { %v8179_v8 = vmax.f32 %v7433_v17, 0.0  ;;  %3915 = vmatprep.subr.bf16.mxu1 %v5742_v19 }
 0x6bb   : > { %v3206_v45 = vpack.c.bf16 %v8179_v8, %v8180_v15 }
 0x6bc   : > { %3916 = vmatpush1.bf16.msra.mxu1 %v5740_v35 }
 0x6bd   : > { %3390 = vmatmul.mubr.bf16.gmra.mxu1 %v3206_v45  ;;  %3917 = vmatprep.subr.bf16.mxu1 %v5745_v2  ;;  %v5752_v45 = vld [vmem:[#allocation3 + $0x220] ss:$8 sps:$4 sm:$0xff]  }
 0x6be   : > { %3945 = vmatprep.mubr.bf16.mxu1 %v8222_v56 }
 0x6c0   : > { %3918 = vmatpush1.bf16.msra.mxu1 %v5743_v13 }
 0x6c1   : > { %3919 = vmatprep.subr.bf16.mxu1 %v5748_v38 }
 0x6c4   : > { %3920 = vmatpush1.bf16.msra.mxu1 %v5746_v21 }
 0x6c5   : > { %3921 = vmatprep.subr.bf16.mxu1 %v5751_v31 }
 0x6c8   : > { %3922 = vmatpush1.bf16.msra.mxu1 %v5749_v50 }
 0x6c9   : > { %3923 = vmatprep.subr.bf16.mxu1 %v5754_v4 }
 0x6cc   : > { %3924 = vmatpush1.bf16.msra.mxu1 %v5752_v45 }
 0x745   : > { %v3321_v55 = vpop.f32.mrf.mxu1 }
 0x747   : > { %v3323_v47 = vpop.f32.mrf.mxu1 }
 0x748   : > { %v3438_v35 = vadd.f32 %v7445_v25, %v3323_v47 }
 0x749   : > { %v3325_v3 = vpop.f32.mrf.mxu1 }
 0x74a   : > { %v3454_v31 = vmax.f32 %v3438_v35, 0.0 }
 0x74b   : > { %v3327_v19 = vpop.f32.mrf.mxu1 }
 0x74c   : > { %v3417_v2 = vadd.f32 %v3327_v19, %v3321_v55 }
 0x74d   : > { %v3331_v13 = vpop.f32.mrf.mxu1 }
 0x74e   : > { %v3439_v38 = vadd.f32 %v7445_v25, %v3417_v2 }
 0x74f   : > { %v3333_v21 = vpop.f32.mrf.mxu1 }
 0x750   : > { %v3455_v50 = vmax.f32 %v3439_v38, 0.0  ;;  %v3440_v15 = vadd.f32 %v7445_v25, %v3333_v21 }
 0x751   : > { %v3335_v4 = vpop.f32.mrf.mxu1 }
 0x752   : > { %v3489_v45 = vpack.c.bf16 %v3455_v50, %v3454_v31  ;;  %v3456_v55 = vmax.f32 %v3440_v15, 0.0 }
 0x753   : > { %v3337_v8 = vpop.f32.mrf.mxu1 }
 0x754   : > { %v3419_v63 = vadd.f32 %v3337_v8, %v3331_v13  ;;  %3610 = vmatmul.mubr.bf16.vlgmr.msra.gmra.mxu0 %v3489_v45 }
 0x755   : > { %v3341_v61 = vpop.f32.mrf.mxu1  ;;  %3619 = vmatprep.mubr.bf16.mxu0 %v8222_v56 }
 0x756   : > { %v3441_v3 = vadd.f32 %v7445_v25, %v3419_v63 }
 0x757   : > { %v3343_v47 = vpop.f32.mrf.mxu1 }
 0x758   : > { %v3457_v19 = vmax.f32 %v3441_v3, 0.0  ;;  %v3442_v35 = vadd.f32 %v7445_v25, %v3343_v47 }
 0x759   : > { %v3345_v59 = vpop.f32.mrf.mxu1 }
 0x75a   : > { %v3490_v2 = vpack.c.bf16 %v3457_v19, %v3456_v55  ;;  %v3458_v21 = vmax.f32 %v3442_v35, 0.0 }
 0x75b   : > { %v3347_v7 = vpop.f32.mrf.mxu1 }
 0x75c   : > { %v3421_v38 = vadd.f32 %v3347_v7, %v3341_v61  ;;  %3620 = vmatmul.mubr.bf16.gmra.mxu0 %v3490_v2 }
 0x75d   : > { %v3351_v31 = vpop.f32.mrf.mxu1  ;;  %3629 = vmatprep.mubr.bf16.mxu0 %v8222_v56 }
 0x75e   : > { %v3443_v8 = vadd.f32 %v7445_v25, %v3421_v38 }
 0x75f   : > { %v3353_v13 = vpop.f32.mrf.mxu1 }
 0x760   : > { %v3459_v50 = vmax.f32 %v3443_v8, 0.0  ;;  %v3444_v15 = vadd.f32 %v7445_v25, %v3353_v13 }
 0x761   : > { %v3355_v4 = vpop.f32.mrf.mxu1 }
 0x762   : > { %v3491_v63 = vpack.c.bf16 %v3459_v50, %v3458_v21  ;;  %v3460_v47 = vmax.f32 %v3444_v15, 0.0 }
 0x763   : > { %v3357_v45 = vpop.f32.mrf.mxu1 }
 0x764   : > { %v3423_v59 = vadd.f32 %v3357_v45, %v3351_v31  ;;  %3630 = vmatmul.mubr.bf16.gmra.mxu0 %v3491_v63 }
 0x765   : > { %v3361_v3 = vpop.f32.mrf.mxu1  ;;  %3639 = vmatprep.mubr.bf16.mxu0 %v8222_v56 }
 0x766   : > { %v3445_v7 = vadd.f32 %v7445_v25, %v3423_v59 }
 0x767   : > { %v3363_v61 = vpop.f32.mrf.mxu1 }
 0x768   : > { %v3461_v55 = vmax.f32 %v3445_v7, 0.0  ;;  %v3446_v35 = vadd.f32 %v7445_v25, %v3363_v61 }
 0x769   : > { %v3365_v19 = vpop.f32.mrf.mxu1 }
 0x76a   : > { %v3492_v2 = vpack.c.bf16 %v3461_v55, %v3460_v47  ;;  %v3462_v50 = vmax.f32 %v3446_v35, 0.0 }
 0x76b   : > { %v3367_v38 = vpop.f32.mrf.mxu1 }
 0x76c   : > { %v3425_v8 = vadd.f32 %v3367_v38, %v3361_v3  ;;  %3640 = vmatmul.mubr.bf16.gmra.mxu0 %v3492_v2 }
 0x76d   : > { %v3371_v21 = vpop.f32.mrf.mxu1  ;;  %3649 = vmatprep.mubr.bf16.mxu0 %v8222_v56 }
 0x76e   : > { %v3447_v31 = vadd.f32 %v7445_v25, %v3425_v8 }
 0x76f   : > { %v3373_v13 = vpop.f32.mrf.mxu1 }
 0x770   : > { %v3463_v4 = vmax.f32 %v3447_v31, 0.0  ;;  %v3448_v15 = vadd.f32 %v7445_v25, %v3373_v13 }
 0x771   : > { %v3375_v63 = vpop.f32.mrf.mxu1 }
 0x772   : > { %v3493_v45 = vpack.c.bf16 %v3463_v4, %v3462_v50  ;;  %v3464_v55 = vmax.f32 %v3448_v15, 0.0 }
 0x773   : > { %v3377_v59 = vpop.f32.mrf.mxu1 }
 0x774   : > { %v3427_v7 = vadd.f32 %v3377_v59, %v3371_v21  ;;  %3650 = vmatmul.mubr.bf16.gmra.mxu0 %v3493_v45 }
 0x775   : > { %v3381_v47 = vpop.f32.mrf.mxu1  ;;  %3659 = vmatprep.mubr.bf16.mxu0 %v8222_v56 }
 0x776   : > { %v3449_v3 = vadd.f32 %v7445_v25, %v3427_v7 }
 0x777   : > { %v3383_v61 = vpop.f32.mrf.mxu1 }
 0x778   : > { %v3465_v19 = vmax.f32 %v3449_v3, 0.0  ;;  %v3450_v35 = vadd.f32 %v7445_v25, %v3383_v61 }
 0x779   : > { %v3385_v2 = vpop.f32.mrf.mxu1 }
 0x77a   : > { %v3494_v38 = vpack.c.bf16 %v3465_v19, %v3464_v55  ;;  %v3466_v4 = vmax.f32 %v3450_v35, 0.0  ;;  %v5755_v2 = vld [vmem:[#allocation3 + $0x210] ss:$8 sps:$4 sm:$0xff]   ;;  %v5758_v35 = vld [vmem:[#allocation3 + $0x200] ss:$8 sps:$4 sm:$0xff]  }
 0x77b   : > { %v3387_v8 = vpop.f32.mrf.mxu1 }
 0x77c   : > { %v3429_v31 = vadd.f32 %v3387_v8, %v3381_v47  ;;  %3660 = vmatmul.mubr.bf16.gmra.mxu0 %v3494_v38  ;;  %v5757_v38 = vld [vmem:[#allocation3 + $0x214] ss:$8 sps:$4 sm:$0xff]   ;;  %v5760_v8 = vld [vmem:[#allocation3 + $0x204] ss:$8 sps:$4 sm:$0xff]  }
 0x77d   : > { %v3391_v50 = vpop.f32.mrf.mxu1  ;;  %3669 = vmatprep.mubr.bf16.mxu0 %v8222_v56  ;;  %3925 = vmatprep.subr.bf16.mxu1 %v5757_v38 }
 0x77e   : > { %v3451_v21 = vadd.f32 %v7445_v25, %v3429_v31  ;;  %3926 = vmatpush1.bf16.msra.mxu1 %v5755_v2  ;;  %v5761_v31 = vld [vmem:[#allocation6 + $0x270] ss:$8 sps:$4 sm:$0xff]  }
 0x77f   : > { %v3393_v13 = vpop.f32.mrf.mxu1  ;;  %3927 = vmatprep.subr.bf16.mxu1 %v5760_v8 }
 0x780   : > { %v3467_v63 = vmax.f32 %v3451_v21, 0.0  ;;  %v3452_v15 = vadd.f32 %v7445_v25, %v3393_v13  ;;  %v5766_v21 = vld [vmem:[#allocation6 + $0x264] ss:$8 sps:$4 sm:$0xff]   ;;  %v5769_v13 = vld [vmem:[#allocation6 + $0x254] ss:$8 sps:$4 sm:$0xff]  }
 0x781   : > { %v3395_v45 = vpop.f32.mrf.mxu1 }
 0x782   : > { %v3495_v59 = vpack.c.bf16 %v3467_v63, %v3466_v4  ;;  %v3468_v61 = vmax.f32 %v3452_v15, 0.0  ;;  %3928 = vmatpush1.bf16.msra.mxu1 %v5758_v35  ;;  %v5767_v4 = vld [vmem:[#allocation6 + $0x250] ss:$8 sps:$4 sm:$0xff]   ;;  %v5772_v63 = vld [vmem:[#allocation6 + $0x244] ss:$8 sps:$4 sm:$0xff]  }
 0x783   : > { %v3396_v7 = vpop.f32.mrf.mxu1  ;;  %v5770_v45 = vld [vmem:[#allocation6 + $0x240] ss:$8 sps:$4 sm:$0xff]   ;;  %v5778_v15 = vld [vmem:[#allocation6 + $0x224] ss:$8 sps:$4 sm:$0xff]  }
 0x784   : > { %v3431_v3 = vadd.f32 %v3396_v7, %v3391_v50  ;;  %3670 = vmatmul.mubr.bf16.gmra.mxu0 %v3495_v59  ;;  %v5763_v50 = vld [vmem:[#allocation6 + $0x274] ss:$8 sps:$4 sm:$0xff]   ;;  %v5773_v7 = vld [vmem:[#allocation6 + $0x230] ss:$8 sps:$4 sm:$0xff]  }
 0x785   : > { %3679 = vmatprep.mubr.bf16.mxu0 %v8222_v56  ;;  %4155 = vmatprep.subr.bf16.mxu0 %v5763_v50  ;;  %v5775_v59 = vld [vmem:[#allocation6 + $0x234] ss:$8 sps:$4 sm:$0xff]  }
 0x786   : > { %v3453_v47 = vadd.f32 %v7445_v25, %v3431_v3  ;;  %4156 = vmatpush1.bf16.msra.mxu0 %v5761_v31  ;;  %v5764_v25 = vld [vmem:[#allocation6 + $0x260] ss:$8 sps:$4 sm:$0xff]  }
 0x787   : > { %4157 = vmatprep.subr.bf16.mxu0 %v5766_v21  ;;  %v5776_v3 = vld [vmem:[#allocation6 + $0x220] ss:$8 sps:$4 sm:$0xff]  }
 0x788   : > { %v3469_v55 = vmax.f32 %v3453_v47, 0.0  ;;  %v5781_v47 = vld [vmem:[#allocation6 + $0x214] ss:$8 sps:$4 sm:$0xff]  }
 0x78a   : > { %v3496_v19 = vpack.c.bf16 %v3469_v55, %v3468_v61  ;;  %4158 = vmatpush1.bf16.msra.mxu0 %v5764_v25  ;;  %v5779_v61 = vld [vmem:[#allocation6 + $0x210] ss:$8 sps:$4 sm:$0xff]  }
 0x78b   : > { %4159 = vmatprep.subr.bf16.mxu0 %v5769_v13 }
 0x78c   : > { %3680 = vmatmul.mubr.bf16.gmra.mxu0 %v3496_v19  ;;  %v7474_v19 = vld [vmem:[%s8104_s10 + $0x3] ss:$0 sm:$0xff] }
 0x78d   : > { %4187 = vmatprep.mubr.bf16.mxu0 %v8222_v56 }
 0x78e   : > { %4160 = vmatpush1.bf16.msra.mxu0 %v5767_v4 }
 0x78f   : > { %4161 = vmatprep.subr.bf16.mxu0 %v5772_v63 }
 0x792   : > { %4162 = vmatpush1.bf16.msra.mxu0 %v5770_v45 }
 0x793   : > { %4163 = vmatprep.subr.bf16.mxu0 %v5775_v59 }
 0x796   : > { %4164 = vmatpush1.bf16.msra.mxu0 %v5773_v7 }
 0x797   : > { %4165 = vmatprep.subr.bf16.mxu0 %v5778_v15 }
 0x79a   : > { %4166 = vmatpush1.bf16.msra.mxu0 %v5776_v3 }
 0x79b   : > { %4167 = vmatprep.subr.bf16.mxu0 %v5781_v47 }
 0x79e   : > { %4168 = vmatpush1.bf16.msra.mxu0 %v5779_v61 }
 0x814   : > { %v3611_v55 = vpop.f32.mrf.mxu0 }
 0x816   : > { %v3613_v2 = vpop.f32.mrf.mxu0 }
 0x817   : > { %v3726_v38 = vadd.f32 %v7474_v19, %v3613_v2 }
 0x818   : > { %v3615_v8 = vpop.f32.mrf.mxu0 }
 0x819   : > { %v3742_v35 = vmax.f32 %v3726_v38, 0.0 }
 0x81a   : > { %v3617_v31 = vpop.f32.mrf.mxu0 }
 0x81b   : > { %v7478_v50 = vadd.f32 %v3742_v35, %v7234_v33  ;;  %v3705_v21 = vadd.f32 %v3617_v31, %v3611_v55  ;;  %v7483_v63 = vadd.f32 %v3742_v35, %v3164_v10 }
 0x81c   : > { %v3621_v25 = vpop.f32.mrf.mxu0 }
 0x81d   : > { %v3727_v13 = vadd.f32 %v7474_v19, %v3705_v21  ;;  %v3790_v61 = vmax.f32 %v7483_v63, 0.0 }
 0x81e   : > { %v3623_v4 = vpop.f32.mrf.mxu0 }
 0x81f   : > { %v3743_v45 = vmax.f32 %v3727_v13, 0.0  ;;  %v3728_v59 = vadd.f32 %v7474_v19, %v3623_v4 }
 0x820   : > { %v3625_v7 = vpop.f32.mrf.mxu0 }
 0x821   : > { %v7488_v15 = vadd.f32 %v3743_v45, %v3165_v24  ;;  %v3744_v3 = vmax.f32 %v3728_v59, 0.0  ;;  %v7491_v33 = vadd.f32 %v3743_v45, %v7243_v62 }
 0x822   : > { %v3627_v47 = vpop.f32.mrf.mxu0 }
 0x823   : > { %v3791_v55 = vmax.f32 %v7488_v15, 0.0  ;;  %v7496_v40 = vadd.f32 %v3744_v3, %v7260_v41  ;;  %v3707_v10 = vadd.f32 %v3627_v47, %v3621_v25  ;;  %v7505_v62 = vadd.f32 %v3744_v3, %v3166_v43 }
 0x824   : > { %v3631_v2 = vpop.f32.mrf.mxu0 }
 0x825   : > { %v3825_v29 = vpack.c.bf16 %v3791_v55, %v3790_v61  ;;  %v3729_v24 = vadd.f32 %v7474_v19, %v3707_v10  ;;  %v3792_v60 = vmax.f32 %v7505_v62, 0.0 }
 0x826   : > { %v3633_v38 = vpop.f32.mrf.mxu0 }
 0x827   : > { %v3745_v8 = vmax.f32 %v3729_v24, 0.0  ;;  %v3730_v35 = vadd.f32 %v7474_v19, %v3633_v38  ;;  %3946 = vmatmul.mubr.bf16.vlgmr.msra.gmra.mxu1 %v3825_v29 }
 0x828   : > { %v3635_v41 = vpop.f32.mrf.mxu0  ;;  %3953 = vmatprep.mubr.bf16.mxu1 %v8222_v56 }
 0x829   : > { %v7511_v31 = vadd.f32 %v3745_v8, %v3167_v11  ;;  %v3746_v21 = vmax.f32 %v3730_v35, 0.0  ;;  %v7514_v25 = vadd.f32 %v3745_v8, %v7270_v53 }
 0x82a   : > { %v3637_v13 = vpop.f32.mrf.mxu0 }
 0x82b   : > { %v3793_v43 = vmax.f32 %v7511_v31, 0.0  ;;  %v7519_v4 = vadd.f32 %v3746_v21, %v7287_v42  ;;  %v3709_v45 = vadd.f32 %v3637_v13, %v3631_v2  ;;  %v7528_v53 = vadd.f32 %v3746_v21, %v3168_v23 }
 0x82c   : > { %v3641_v59 = vpop.f32.mrf.mxu0 }
 0x82d   : > { %v3731_v7 = vadd.f32 %v7474_v19, %v3709_v45  ;;  %v3826_v6 = vpack.c.bf16 %v3793_v43, %v3792_v60  ;;  %v3794_v46 = vmax.f32 %v7528_v53, 0.0 }
 0x82e   : > { %v3643_v11 = vpop.f32.mrf.mxu0 }
 0x82f   : > { %v3747_v3 = vmax.f32 %v3731_v7, 0.0  ;;  %v3732_v47 = vadd.f32 %v7474_v19, %v3643_v11  ;;  %3954 = vmatmul.mubr.bf16.gmra.mxu1 %v3826_v6 }
 0x830   : > { %v3645_v42 = vpop.f32.mrf.mxu0  ;;  %3961 = vmatprep.mubr.bf16.mxu1 %v8222_v56 }
 0x831   : > { %v7534_v10 = vadd.f32 %v3747_v3, %v3169_v32  ;;  %v3748_v2 = vmax.f32 %v3732_v47, 0.0  ;;  %v7537_v29 = vadd.f32 %v3747_v3, %v7297_v12 }
 0x832   : > { %v3647_v24 = vpop.f32.mrf.mxu0 }
 0x833   : > { %v3795_v23 = vmax.f32 %v7534_v10, 0.0  ;;  %v7542_v38 = vadd.f32 %v3748_v2, %v7314_v14  ;;  %v3711_v8 = vadd.f32 %v3647_v24, %v3641_v59  ;;  %v7551_v12 = vadd.f32 %v3748_v2, %v3170_v49 }
 0x834   : > { %v3651_v35 = vpop.f32.mrf.mxu0 }
 0x835   : > { %v3733_v41 = vadd.f32 %v7474_v19, %v3711_v8  ;;  %v3827_v22 = vpack.c.bf16 %v3795_v23, %v3794_v46  ;;  %v8194_v39 = vmax.f32 %v7551_v12, 0.0 }
 0x836   : > { %v3653_v32 = vpop.f32.mrf.mxu0 }
 0x837   : > { %v3749_v21 = vmax.f32 %v3733_v41, 0.0  ;;  %v3734_v13 = vadd.f32 %v7474_v19, %v3653_v32  ;;  %3962 = vmatmul.mubr.bf16.gmra.mxu1 %v3827_v22 }
 0x838   : > { %v3655_v14 = vpop.f32.mrf.mxu0  ;;  %3969 = vmatprep.mubr.bf16.mxu1 %v8222_v56 }
 0x839   : > { %v7557_v45 = vadd.f32 %v3749_v21, %v3171_v36  ;;  %v3750_v59 = vmax.f32 %v3734_v13, 0.0  ;;  %v7560_v7 = vadd.f32 %v3749_v21, %v7324_v26 }
 0x83a   : > { %v3657_v6 = vpop.f32.mrf.mxu0 }
 0x83b   : > { %v8193_v49 = vmax.f32 %v7557_v45, 0.0  ;;  %v7565_v11 = vadd.f32 %v3750_v59, %v7341_v20  ;;  %v3713_v3 = vadd.f32 %v3657_v6, %v3651_v35  ;;  %v7574_v26 = vadd.f32 %v3750_v59, %v3172_v28 }
 0x83c   : > { %v3661_v47 = vpop.f32.mrf.mxu0 }
 0x83d   : > { %v3735_v42 = vadd.f32 %v7474_v19, %v3713_v3  ;;  %v3828_v52 = vpack.c.bf16 %v8193_v49, %v8194_v39  ;;  %v8192_v51 = vmax.f32 %v7574_v26, 0.0 }
 0x83e   : > { %v3663_v36 = vpop.f32.mrf.mxu0 }
 0x83f   : > { %v3751_v2 = vmax.f32 %v3735_v42, 0.0  ;;  %v3736_v24 = vadd.f32 %v7474_v19, %v3663_v36  ;;  %3970 = vmatmul.mubr.bf16.gmra.mxu1 %v3828_v52 }
 0x840   : > { %v3665_v20 = vpop.f32.mrf.mxu0  ;;  %3977 = vmatprep.mubr.bf16.mxu1 %v8222_v56 }
 0x841   : > { %v7580_v8 = vadd.f32 %v3751_v2, %v3173_v9  ;;  %v3752_v35 = vmax.f32 %v3736_v24, 0.0  ;;  %v7583_v41 = vadd.f32 %v3751_v2, %v7351_v34  ;;  %v8283_v34 = vmax.f32 %v7372_v16, 0.0 }
 0x842   : > { %v3667_v22 = vpop.f32.mrf.mxu0 }
 0x843   : > { %v8191_v28 = vmax.f32 %v7580_v8, 0.0  ;;  %v7588_v32 = vadd.f32 %v3752_v35, %v7368_v44  ;;  %v3715_v21 = vadd.f32 %v3667_v22, %v3661_v47  ;;  %v7597_v59 = vadd.f32 %v3752_v35, %v8283_v34 }
 0x844   : > { %v3671_v13 = vpop.f32.mrf.mxu0  ;;  %v8284_v47 = vmax.f32 %v7382_v37, 0.0 }
 0x845   : > { %v3737_v14 = vadd.f32 %v7474_v19, %v3715_v21  ;;  %v3829_v48 = vpack.c.bf16 %v8191_v28, %v8192_v51  ;;  %v8190_v16 = vmax.f32 %v7597_v59, 0.0 }
 0x846   : > { %v3673_v9 = vpop.f32.mrf.mxu0 }
 0x847   : > { %v3753_v6 = vmax.f32 %v3737_v14, 0.0  ;;  %v3738_v3 = vadd.f32 %v7474_v19, %v3673_v9  ;;  %3978 = vmatmul.mubr.bf16.gmra.mxu1 %v3829_v48 }
 0x848   : > { %v3675_v44 = vpop.f32.mrf.mxu0  ;;  %3985 = vmatprep.mubr.bf16.mxu1 %v8222_v56 }
 0x849   : > { %v7603_v42 = vadd.f32 %v3753_v6, %v8284_v47  ;;  %v3754_v52 = vmax.f32 %v3738_v3, 0.0  ;;  %v7606_v36 = vadd.f32 %v3753_v6, %v7378_v18  ;;  %v8285_v18 = vmax.f32 %v7399_v54, 0.0 }
 0x84a   : > { %v3677_v2 = vpop.f32.mrf.mxu0 }
 0x84b   : > { %v8189_v24 = vmax.f32 %v7603_v42, 0.0  ;;  %v7611_v20 = vadd.f32 %v3754_v52, %v7395_v0  ;;  %v3717_v35 = vadd.f32 %v3677_v2, %v3671_v13  ;;  %v7620_v48 = vadd.f32 %v3754_v52, %v8285_v18 }
 0x84c   : > { %v3681_v22 = vpop.f32.mrf.mxu0  ;;  %v8286_v13 = vmax.f32 %v7409_v1, 0.0  ;;  %v8288_v18 = vmax.f32 %v7433_v17, 0.0  ;;  %v5785_v17 = vld [vmem:[#allocation3 + $0x2f0] ss:$8 sps:$4 sm:$0xff]  }
 0x84d   : > { %v3739_v21 = vadd.f32 %v7474_v19, %v3717_v35  ;;  %v3830_v37 = vpack.c.bf16 %v8189_v24, %v8190_v16  ;;  %v8188_v54 = vmax.f32 %v7620_v48, 0.0 }
 0x84e   : > { %v3683_v14 = vpop.f32.mrf.mxu0 }
 0x84f   : > { %v3755_v9 = vmax.f32 %v3739_v21, 0.0  ;;  %v3740_v34 = vadd.f32 %v7474_v19, %v3683_v14  ;;  %3986 = vmatmul.mubr.bf16.gmra.mxu1 %v3830_v37  ;;  %v8287_v37 = vmax.f32 %v7425_v58, 0.0 }
 0x850   : > { %v3685_v0 = vpop.f32.mrf.mxu0  ;;  %3993 = vmatprep.mubr.bf16.mxu1 %v8222_v56 }
 0x851   : > { %v7626_v6 = vadd.f32 %v3755_v9, %v8286_v13  ;;  %v3756_v3 = vmax.f32 %v3740_v34, 0.0  ;;  %v7629_v44 = vadd.f32 %v3755_v9, %v7405_v30  ;;  %v5782_v34 = vld [vmem:[#allocation6 + $0x200] ss:$8 sps:$4 sm:$0xff]   ;;  %v5784_v0 = vld [vmem:[#allocation6 + $0x204] ss:$8 sps:$4 sm:$0xff]  }
 0x852   : > { %v3686_v47 = vpop.f32.mrf.mxu0  ;;  %4169 = vmatprep.subr.bf16.mxu0 %v5784_v0  ;;  %v5787_v13 = vld [vmem:[#allocation3 + $0x2f4] ss:$8 sps:$4 sm:$0xff]   ;;  %v7663_v0 = vld [vmem:[%s8102_s8 + $0x4] ss:$0 sm:$0xff] }
 0x853   : > { %v8187_v52 = vmax.f32 %v7626_v6, 0.0  ;;  %v7634_v2 = vadd.f32 %v3756_v3, %v7421_v5  ;;  %v3719_v35 = vadd.f32 %v3686_v47, %v3681_v22  ;;  %v7643_v30 = vadd.f32 %v3756_v3, %v8287_v37  ;;  %4170 = vmatpush1.bf16.msra.mxu0 %v5782_v34  ;;  %4445 = vmatprep.subr.bf16.mxu1 %v5787_v13  ;;  %v5788_v3 = vld [vmem:[#allocation3 + $0x2e0] ss:$8 sps:$4 sm:$0xff]   ;;  %v5793_v47 = vld [vmem:[#allocation3 + $0x2d4] ss:$8 sps:$4 sm:$0xff]  }
 0x854   : > { %4446 = vmatpush1.bf16.msra.mxu1 %v5785_v17  ;;  %v5799_v37 = vld [vmem:[#allocation3 + $0x2b4] ss:$8 sps:$4 sm:$0xff]  }
 0x855   : > { %v3741_v21 = vadd.f32 %v7474_v19, %v3719_v35  ;;  %v3831_v1 = vpack.c.bf16 %v8187_v52, %v8188_v54  ;;  %v8186_v19 = vmax.f32 %v7643_v30, 0.0  ;;  %v5791_v35 = vld [vmem:[#allocation3 + $0x2d0] ss:$8 sps:$4 sm:$0xff]  }
 0x857   : > { %v3757_v14 = vmax.f32 %v3741_v21, 0.0  ;;  %3994 = vmatmul.mubr.bf16.gmra.mxu1 %v3831_v1  ;;  %v5796_v21 = vld [vmem:[#allocation3 + $0x2c4] ss:$8 sps:$4 sm:$0xff]   ;;  %v5794_v1 = vld [vmem:[#allocation3 + $0x2c0] ss:$8 sps:$4 sm:$0xff]  }
 0x858   : > { %4001 = vmatprep.mubr.bf16.mxu1 %v8222_v56 }
 0x859   : > { %v7648_v5 = vadd.f32 %v3757_v14, %v8288_v18  ;;  %v7651_v22 = vadd.f32 %v3757_v14, %v7429_v27  ;;  %v5790_v27 = vld [vmem:[#allocation3 + $0x2e4] ss:$8 sps:$4 sm:$0xff]   ;;  %v5797_v14 = vld [vmem:[#allocation3 + $0x2b0] ss:$8 sps:$4 sm:$0xff]  }
 0x85a   : > { %4447 = vmatprep.subr.bf16.mxu1 %v5790_v27  ;;  %v5802_v18 = vld [vmem:[#allocation3 + $0x2a4] ss:$8 sps:$4 sm:$0xff]  }
 0x85b   : > { %v8185_v9 = vmax.f32 %v7648_v5, 0.0  ;;  %4448 = vmatpush1.bf16.msra.mxu1 %v5788_v3 }
 0x85c   : > { %4449 = vmatprep.subr.bf16.mxu1 %v5793_v47 }
 0x85d   : > { %v3832_v58 = vpack.c.bf16 %v8185_v9, %v8186_v19 }
 0x85f   : > { %4002 = vmatmul.mubr.bf16.gmra.mxu1 %v3832_v58  ;;  %v5800_v58 = vld [vmem:[#allocation3 + $0x2a0] ss:$8 sps:$4 sm:$0xff]  }
 0x860   : > { %4477 = vmatprep.mubr.bf16.mxu1 %v8222_v56  ;;  %4450 = vmatpush1.bf16.msra.mxu1 %v5791_v35 }
 0x861   : > { %4451 = vmatprep.subr.bf16.mxu1 %v5796_v21 }
 0x864   : > { %4452 = vmatpush1.bf16.msra.mxu1 %v5794_v1 }
 0x865   : > { %4453 = vmatprep.subr.bf16.mxu1 %v5799_v37 }
 0x868   : > { %4454 = vmatpush1.bf16.msra.mxu1 %v5797_v14 }
 0x869   : > { %4455 = vmatprep.subr.bf16.mxu1 %v5802_v18 }
 0x86c   : > { %4456 = vmatpush1.bf16.msra.mxu1 %v5800_v58 }
 0x8e7   : > { %v3947_v34 = vpop.f32.mrf.mxu1 }
 0x8e9   : > { %v3948_v17 = vpop.f32.mrf.mxu1 }
 0x8ea   : > { %v4016_v27 = vadd.f32 %v7663_v0, %v3948_v17 }
 0x8eb   : > { %v3950_v13 = vpop.f32.mrf.mxu1 }
 0x8ec   : > { %v4032_v21 = vmax.f32 %v4016_v27, 0.0 }
 0x8ed   : > { %v3951_v3 = vpop.f32.mrf.mxu1 }
 0x8ee   : > { %v4017_v47 = vadd.f32 %v7663_v0, %v3951_v3 }
 0x8ef   : > { %v3955_v35 = vpop.f32.mrf.mxu1 }
 0x8f0   : > { %v4033_v1 = vmax.f32 %v4017_v47, 0.0 }
 0x8f1   : > { %v3956_v37 = vpop.f32.mrf.mxu1 }
 0x8f2   : > { %v4067_v14 = vpack.c.bf16 %v4033_v1, %v4032_v21  ;;  %v4018_v58 = vadd.f32 %v7663_v0, %v3956_v37 }
 0x8f3   : > { %v3958_v18 = vpop.f32.mrf.mxu1 }
 0x8f4   : > { %4188 = vmatmul.mubr.bf16.vlgmr.msra.gmra.mxu0 %v4067_v14  ;;  %v4034_v19 = vmax.f32 %v4018_v58, 0.0 }
 0x8f5   : > { %v3959_v34 = vpop.f32.mrf.mxu1  ;;  %4195 = vmatprep.mubr.bf16.mxu0 %v8222_v56 }
 0x8f6   : > { %v4019_v9 = vadd.f32 %v7663_v0, %v3959_v34 }
 0x8f7   : > { %v3963_v13 = vpop.f32.mrf.mxu1 }
 0x8f8   : > { %v4035_v17 = vmax.f32 %v4019_v9, 0.0 }
 0x8f9   : > { %v3964_v52 = vpop.f32.mrf.mxu1 }
 0x8fa   : > { %v4068_v54 = vpack.c.bf16 %v4035_v17, %v4034_v19  ;;  %v4020_v27 = vadd.f32 %v7663_v0, %v3964_v52 }
 0x8fb   : > { %v3966_v3 = vpop.f32.mrf.mxu1 }
 0x8fc   : > { %4196 = vmatmul.mubr.bf16.gmra.mxu0 %v4068_v54  ;;  %v4036_v1 = vmax.f32 %v4020_v27, 0.0 }
 0x8fd   : > { %v3967_v47 = vpop.f32.mrf.mxu1  ;;  %4203 = vmatprep.mubr.bf16.mxu0 %v8222_v56 }
 0x8fe   : > { %v4021_v35 = vadd.f32 %v7663_v0, %v3967_v47 }
 0x8ff   : > { %v3971_v21 = vpop.f32.mrf.mxu1 }
 0x900   : > { %v4037_v37 = vmax.f32 %v4021_v35, 0.0 }
 0x901   : > { %v3972_v14 = vpop.f32.mrf.mxu1 }
 0x902   : > { %v4069_v18 = vpack.c.bf16 %v4037_v37, %v4036_v1  ;;  %v4022_v58 = vadd.f32 %v7663_v0, %v3972_v14 }
 0x903   : > { %v3974_v34 = vpop.f32.mrf.mxu1 }
 0x904   : > { %4204 = vmatmul.mubr.bf16.gmra.mxu0 %v4069_v18  ;;  %v4038_v19 = vmax.f32 %v4022_v58, 0.0 }
 0x905   : > { %v3975_v9 = vpop.f32.mrf.mxu1  ;;  %4211 = vmatprep.mubr.bf16.mxu0 %v8222_v56 }
 0x906   : > { %v4023_v52 = vadd.f32 %v7663_v0, %v3975_v9 }
 0x907   : > { %v3979_v54 = vpop.f32.mrf.mxu1 }
 0x908   : > { %v4039_v13 = vmax.f32 %v4023_v52, 0.0 }
 0x909   : > { %v3980_v17 = vpop.f32.mrf.mxu1 }
 0x90a   : > { %v4070_v3 = vpack.c.bf16 %v4039_v13, %v4038_v19  ;;  %v4024_v27 = vadd.f32 %v7663_v0, %v3980_v17 }
 0x90b   : > { %v3982_v47 = vpop.f32.mrf.mxu1 }
 0x90c   : > { %4212 = vmatmul.mubr.bf16.gmra.mxu0 %v4070_v3  ;;  %v4040_v37 = vmax.f32 %v4024_v27, 0.0 }
 0x90d   : > { %v3983_v35 = vpop.f32.mrf.mxu1  ;;  %4219 = vmatprep.mubr.bf16.mxu0 %v8222_v56 }
 0x90e   : > { %v4025_v21 = vadd.f32 %v7663_v0, %v3983_v35 }
 0x90f   : > { %v3987_v1 = vpop.f32.mrf.mxu1 }
 0x910   : > { %v4041_v14 = vmax.f32 %v4025_v21, 0.0 }
 0x911   : > { %v3988_v18 = vpop.f32.mrf.mxu1 }
 0x912   : > { %v4071_v34 = vpack.c.bf16 %v4041_v14, %v4040_v37  ;;  %v4026_v58 = vadd.f32 %v7663_v0, %v3988_v18 }
 0x913   : > { %v3990_v9 = vpop.f32.mrf.mxu1 }
 0x914   : > { %4220 = vmatmul.mubr.bf16.gmra.mxu0 %v4071_v34  ;;  %v4042_v13 = vmax.f32 %v4026_v58, 0.0 }
 0x915   : > { %v3991_v52 = vpop.f32.mrf.mxu1  ;;  %4227 = vmatprep.mubr.bf16.mxu0 %v8222_v56 }
 0x916   : > { %v4027_v54 = vadd.f32 %v7663_v0, %v3991_v52 }
 0x917   : > { %v3995_v19 = vpop.f32.mrf.mxu1 }
 0x918   : > { %v4043_v17 = vmax.f32 %v4027_v54, 0.0 }
 0x919   : > { %v3996_v3 = vpop.f32.mrf.mxu1 }
 0x91a   : > { %v4072_v47 = vpack.c.bf16 %v4043_v17, %v4042_v13  ;;  %v4028_v27 = vadd.f32 %v7663_v0, %v3996_v3 }
 0x91b   : > { %v3998_v35 = vpop.f32.mrf.mxu1 }
 0x91c   : > { %4228 = vmatmul.mubr.bf16.gmra.mxu0 %v4072_v47  ;;  %v4044_v14 = vmax.f32 %v4028_v27, 0.0  ;;  %v5803_v47 = vld [vmem:[#allocation3 + $0x290] ss:$8 sps:$4 sm:$0xff]   ;;  %v5805_v35 = vld [vmem:[#allocation3 + $0x294] ss:$8 sps:$4 sm:$0xff]  }
 0x91d   : > { %v3999_v21 = vpop.f32.mrf.mxu1  ;;  %4235 = vmatprep.mubr.bf16.mxu0 %v8222_v56  ;;  %4457 = vmatprep.subr.bf16.mxu1 %v5805_v35  ;;  %v5808_v27 = vld [vmem:[#allocation3 + $0x284] ss:$8 sps:$4 sm:$0xff]  }
 0x91e   : > { %v4029_v1 = vadd.f32 %v7663_v0, %v3999_v21  ;;  %4458 = vmatpush1.bf16.msra.mxu1 %v5803_v47  ;;  %v5806_v21 = vld [vmem:[#allocation3 + $0x280] ss:$8 sps:$4 sm:$0xff]  }
 0x91f   : > { %v4003_v37 = vpop.f32.mrf.mxu1  ;;  %4459 = vmatprep.subr.bf16.mxu1 %v5808_v27 }
 0x920   : > { %v4045_v18 = vmax.f32 %v4029_v1, 0.0  ;;  %v5809_v1 = vld [vmem:[#allocation6 + $0x2f0] ss:$8 sps:$4 sm:$0xff]   ;;  %v5811_v37 = vld [vmem:[#allocation6 + $0x2f4] ss:$8 sps:$4 sm:$0xff]  }
 0x921   : > { %v4004_v34 = vpop.f32.mrf.mxu1  ;;  %4687 = vmatprep.subr.bf16.mxu0 %v5811_v37 }
 0x922   : > { %v4073_v9 = vpack.c.bf16 %v4045_v18, %v4044_v14  ;;  %v4030_v58 = vadd.f32 %v7663_v0, %v4004_v34  ;;  %4460 = vmatpush1.bf16.msra.mxu1 %v5806_v21  ;;  %v5814_v14 = vld [vmem:[#allocation6 + $0x2e4] ss:$8 sps:$4 sm:$0xff]   ;;  %4688 = vmatpush1.bf16.msra.mxu0 %v5809_v1  ;;  %v5817_v18 = vld [vmem:[#allocation6 + $0x2d4] ss:$8 sps:$4 sm:$0xff]   ;;  %v7689_v34 = vld [vmem:[#allocation6 + $0x2d0] ss:$8 sps:$4 sm:$0xff]  }
 0x923   : > { %v4006_v52 = vpop.f32.mrf.mxu1  ;;  %5456 = vmatprep.subr.bf16.mxu1 %v5811_v37  ;;  %4689 = vmatprep.subr.bf16.mxu0 %v5814_v14 }
 0x924   : > { %4236 = vmatmul.mubr.bf16.gmra.mxu0 %v4073_v9  ;;  %v4046_v13 = vmax.f32 %v4030_v58, 0.0  ;;  %v7691_v9 = vld [vmem:[#allocation6 + $0x2c4] ss:$8 sps:$4 sm:$0xff]   ;;  %v7694_v52 = vld [vmem:[#allocation6 + $0x2c0] ss:$8 sps:$4 sm:$0xff]  }
 0x925   : > { %v4007_v54 = vpop.f32.mrf.mxu1  ;;  %4243 = vmatprep.mubr.bf16.mxu0 %v8222_v56  ;;  %v7697_v58 = vld [vmem:[#allocation6 + $0x2b4] ss:$8 sps:$4 sm:$0xff]  }
 0x926   : > { %v4031_v19 = vadd.f32 %v7663_v0, %v4007_v54  ;;  %v5812_v0 = vld [vmem:[#allocation6 + $0x2e0] ss:$8 sps:$4 sm:$0xff]   ;;  %v7700_v54 = vld [vmem:[#allocation6 + $0x2b0] ss:$8 sps:$4 sm:$0xff]  }
 0x927   : > { %4690 = vmatpush1.bf16.msra.mxu0 %v5812_v0 }
 0x928   : > { %v4047_v17 = vmax.f32 %v4031_v19, 0.0  ;;  %4691 = vmatprep.subr.bf16.mxu0 %v5817_v18  ;;  %v7703_v19 = vld [vmem:[#allocation6 + $0x2a4] ss:$8 sps:$4 sm:$0xff]  }
 0x92a   : > { %v4074_v3 = vpack.c.bf16 %v4047_v17, %v4046_v13  ;;  %v7706_v13 = vld [vmem:[#allocation6 + $0x2a0] ss:$8 sps:$4 sm:$0xff]  }
 0x92b   : > { %4692 = vmatpush1.bf16.msra.mxu0 %v7689_v34 }
 0x92c   : > { %4244 = vmatmul.mubr.bf16.gmra.mxu0 %v4074_v3  ;;  %4693 = vmatprep.subr.bf16.mxu0 %v7691_v9  ;;  %v7713_v3 = vld [vmem:[%s8104_s10 + $0x4] ss:$0 sm:$0xff] }
 0x92d   : > { %4719 = vmatprep.mubr.bf16.mxu0 %v8222_v56 }
 0x92f   : > { %4694 = vmatpush1.bf16.msra.mxu0 %v7694_v52 }
 0x930   : > { %4695 = vmatprep.subr.bf16.mxu0 %v7697_v58 }
 0x933   : > { %4696 = vmatpush1.bf16.msra.mxu0 %v7700_v54 }
 0x934   : > { %4697 = vmatprep.subr.bf16.mxu0 %v7703_v19 }
 0x937   : > { %4698 = vmatpush1.bf16.msra.mxu0 %v7706_v13 }
 0x9b4   : > { %v4189_v17 = vpop.f32.mrf.mxu0 }
 0x9b6   : > { %v4190_v47 = vpop.f32.mrf.mxu0 }
 0x9b7   : > { %v4258_v35 = vadd.f32 %v7713_v3, %v4190_v47 }
 0x9b8   : > { %v4192_v27 = vpop.f32.mrf.mxu0 }
 0x9b9   : > { %v4274_v21 = vmax.f32 %v4258_v35, 0.0 }
 0x9ba   : > { %v4193_v37 = vpop.f32.mrf.mxu0 }
 0x9bb   : > { %v7717_v24 = vadd.f32 %v4274_v21, %v7478_v50  ;;  %v4259_v16 = vadd.f32 %v7713_v3, %v4193_v37  ;;  %v7722_v17 = vadd.f32 %v4274_v21, %v3790_v61 }
 0x9bc   : > { %v4197_v28 = vpop.f32.mrf.mxu0 }
 0x9bd   : > { %v4275_v51 = vmax.f32 %v4259_v16, 0.0  ;;  %v4322_v27 = vmax.f32 %v7722_v17, 0.0 }
 0x9be   : > { %v4198_v49 = vpop.f32.mrf.mxu0 }
 0x9bf   : > { %v7725_v39 = vadd.f32 %v4275_v51, %v7491_v33  ;;  %v7729_v47 = vadd.f32 %v4275_v51, %v3791_v55  ;;  %v4260_v35 = vadd.f32 %v7713_v3, %v4198_v49 }
 0x9c0   : > { %v4200_v50 = vpop.f32.mrf.mxu0 }
 0x9c1   : > { %v4323_v28 = vmax.f32 %v7729_v47, 0.0  ;;  %v4276_v37 = vmax.f32 %v4260_v35, 0.0 }
 0x9c2   : > { %v4201_v63 = vpop.f32.mrf.mxu0 }
 0x9c3   : > { %v4357_v61 = vpack.c.bf16 %v4323_v28, %v4322_v27  ;;  %v7739_v33 = vadd.f32 %v4276_v37, %v7496_v40  ;;  %v4261_v15 = vadd.f32 %v7713_v3, %v4201_v63  ;;  %v7744_v49 = vadd.f32 %v4276_v37, %v3792_v60 }
 0x9c4   : > { %v4205_v55 = vpop.f32.mrf.mxu0 }
 0x9c5   : > { %v4277_v51 = vmax.f32 %v4261_v15, 0.0  ;;  %4478 = vmatmul.mubr.bf16.vlgmr.msra.gmra.mxu1 %v4357_v61  ;;  %v4324_v62 = vmax.f32 %v7744_v49, 0.0 }
 0x9c6   : > { %v4206_v16 = vpop.f32.mrf.mxu0  ;;  %4485 = vmatprep.mubr.bf16.mxu1 %v8222_v56  ;;  %5464 = vmatpush1.bf16.msra.mxu1 %v5809_v1 }
 0x9c7   : > { %v7748_v21 = vadd.f32 %v4277_v51, %v7514_v25  ;;  %v7752_v40 = vadd.f32 %v4277_v51, %v3793_v43  ;;  %v4262_v35 = vadd.f32 %v7713_v3, %v4206_v16  ;;  %5457 = vmatprep.subr.bf16.mxu1 %v5814_v14 }
 0x9c8   : > { %v4208_v50 = vpop.f32.mrf.mxu0 }
 0x9c9   : > { %v4325_v60 = vmax.f32 %v7752_v40, 0.0  ;;  %v4278_v37 = vmax.f32 %v4262_v35, 0.0 }
 0x9ca   : > { %v4209_v63 = vpop.f32.mrf.mxu0  ;;  %5465 = vmatpush1.bf16.msra.mxu1 %v5812_v0 }
 0x9cb   : > { %v4358_v25 = vpack.c.bf16 %v4325_v60, %v4324_v62  ;;  %v7762_v31 = vadd.f32 %v4278_v37, %v7519_v4  ;;  %v4263_v43 = vadd.f32 %v7713_v3, %v4209_v63  ;;  %5458 = vmatprep.subr.bf16.mxu1 %v5817_v18  ;;  %v7767_v14 = vadd.f32 %v4278_v37, %v3794_v46 }
 0x9cc   : > { %v4213_v1 = vpop.f32.mrf.mxu0 }
 0x9cd   : > { %v4279_v61 = vmax.f32 %v4263_v43, 0.0  ;;  %4486 = vmatmul.mubr.bf16.gmra.mxu1 %v4358_v25  ;;  %v4326_v46 = vmax.f32 %v7767_v14, 0.0 }
 0x9ce   : > { %v4214_v15 = vpop.f32.mrf.mxu0  ;;  %4493 = vmatprep.mubr.bf16.mxu1 %v8222_v56  ;;  %5466 = vmatpush1.bf16.msra.mxu1 %v7689_v34 }
 0x9cf   : > { %v7772_v0 = vadd.f32 %v4279_v61, %v7537_v29  ;;  %v7776_v4 = vadd.f32 %v4279_v61, %v3795_v23  ;;  %v4264_v18 = vadd.f32 %v7713_v3, %v4214_v15  ;;  %5459 = vmatprep.subr.bf16.mxu1 %v7691_v9  ;;  %v8289_v9 = vmax.f32 %v7551_v12, 0.0 }
 0x9d0   : > { %v4216_v53 = vpop.f32.mrf.mxu0  ;;  %v8291_v15 = vmax.f32 %v7574_v26, 0.0 }
 0x9d1   : > { %v4327_v55 = vmax.f32 %v7776_v4, 0.0  ;;  %v4280_v51 = vmax.f32 %v4264_v18, 0.0 }
 0x9d2   : > { %v4217_v16 = vpop.f32.mrf.mxu0  ;;  %5467 = vmatpush1.bf16.msra.mxu1 %v7694_v52 }
 0x9d3   : > { %v4359_v10 = vpack.c.bf16 %v4327_v55, %v4326_v46  ;;  %v7788_v29 = vadd.f32 %v4280_v51, %v7542_v38  ;;  %v4265_v23 = vadd.f32 %v7713_v3, %v4217_v16  ;;  %5460 = vmatprep.subr.bf16.mxu1 %v7697_v58  ;;  %v7794_v35 = vadd.f32 %v4280_v51, %v8289_v9 }
 0x9d4   : > { %v4221_v34 = vpop.f32.mrf.mxu0  ;;  %v8290_v38 = vmax.f32 %v7557_v45, 0.0  ;;  %v8292_v16 = vmax.f32 %v7580_v8, 0.0 }
 0x9d5   : > { %v4281_v50 = vmax.f32 %v4265_v23, 0.0  ;;  %4494 = vmatmul.mubr.bf16.gmra.mxu1 %v4359_v10  ;;  %v4328_v25 = vmax.f32 %v7794_v35, 0.0 }
 0x9d6   : > { %v4222_v52 = vpop.f32.mrf.mxu0  ;;  %4501 = vmatprep.mubr.bf16.mxu1 %v8222_v56  ;;  %5468 = vmatpush1.bf16.msra.mxu1 %v7700_v54 }
 0x9d7   : > { %v7799_v37 = vadd.f32 %v4281_v50, %v7560_v7  ;;  %v7803_v63 = vadd.f32 %v4281_v50, %v8290_v38  ;;  %v4266_v58 = vadd.f32 %v7713_v3, %v4222_v52  ;;  %5461 = vmatprep.subr.bf16.mxu1 %v7703_v19 }
 0x9d8   : > { %v4224_v12 = vpop.f32.mrf.mxu0 }
 0x9d9   : > { %v4329_v43 = vmax.f32 %v7803_v63, 0.0  ;;  %v4282_v1 = vmax.f32 %v4266_v58, 0.0  ;;  %v8293_v58 = vmax.f32 %v7597_v59, 0.0 }
 0x9da   : > { %v4225_v61 = vpop.f32.mrf.mxu0  ;;  %5469 = vmatpush1.bf16.msra.mxu1 %v7706_v13 }
 0x9db   : > { %v4360_v45 = vpack.c.bf16 %v4329_v43, %v4328_v25  ;;  %v7815_v7 = vadd.f32 %v4282_v1, %v7565_v11  ;;  %v4267_v54 = vadd.f32 %v7713_v3, %v4225_v61  ;;  %v7820_v18 = vadd.f32 %v4282_v1, %v8291_v15 }
 0x9dc   : > { %v4229_v19 = vpop.f32.mrf.mxu0 }
 0x9dd   : > { %v4283_v53 = vmax.f32 %v4267_v54, 0.0  ;;  %4502 = vmatmul.mubr.bf16.gmra.mxu1 %v4360_v45  ;;  %v4330_v34 = vmax.f32 %v7820_v18, 0.0  ;;  %v8294_v54 = vmax.f32 %v7603_v42, 0.0 }
 0x9de   : > { %v4230_v51 = vpop.f32.mrf.mxu0  ;;  %4509 = vmatprep.mubr.bf16.mxu1 %v8222_v56 }
 0x9df   : > { %v7824_v13 = vadd.f32 %v4283_v53, %v7583_v41  ;;  %v7828_v10 = vadd.f32 %v4283_v53, %v8292_v16  ;;  %v4268_v11 = vadd.f32 %v7713_v3, %v4230_v51 }
 0x9e0   : > { %v4232_v23 = vpop.f32.mrf.mxu0 }
 0x9e1   : > { %v4331_v26 = vmax.f32 %v7828_v10, 0.0  ;;  %v4284_v9 = vmax.f32 %v4268_v11, 0.0 }
 0x9e2   : > { %v4233_v50 = vpop.f32.mrf.mxu0 }
 0x9e3   : > { %v4361_v52 = vpack.c.bf16 %v4331_v26, %v4330_v34  ;;  %v7838_v41 = vadd.f32 %v4284_v9, %v7588_v32  ;;  %v4269_v8 = vadd.f32 %v7713_v3, %v4233_v50  ;;  %v7843_v12 = vadd.f32 %v4284_v9, %v8293_v58 }
 0x9e4   : > { %v4237_v38 = vpop.f32.mrf.mxu0  ;;  %v8295_v9 = vmax.f32 %v7620_v48, 0.0  ;;  %v8296_v58 = vmax.f32 %v7626_v6, 0.0 }
 0x9e5   : > { %v4285_v1 = vmax.f32 %v4269_v8, 0.0  ;;  %4510 = vmatmul.mubr.bf16.gmra.mxu1 %v4361_v52  ;;  %v4332_v53 = vmax.f32 %v7843_v12, 0.0 }
 0x9e6   : > { %v4238_v61 = vpop.f32.mrf.mxu0  ;;  %4517 = vmatprep.mubr.bf16.mxu1 %v8222_v56 }
 0x9e7   : > { %v7847_v45 = vadd.f32 %v4285_v1, %v7606_v36  ;;  %v7851_v19 = vadd.f32 %v4285_v1, %v8294_v54  ;;  %v4270_v32 = vadd.f32 %v7713_v3, %v4238_v61 }
 0x9e8   : > { %v4240_v15 = vpop.f32.mrf.mxu0 }
 0x9e9   : > { %v8199_v59 = vmax.f32 %v7851_v19, 0.0  ;;  %v4286_v51 = vmax.f32 %v4270_v32, 0.0 }
 0x9ea   : > { %v4241_v16 = vpop.f32.mrf.mxu0 }
 0x9eb   : > { %v4362_v11 = vpack.c.bf16 %v8199_v59, %v4332_v53  ;;  %v7861_v36 = vadd.f32 %v4286_v51, %v7611_v20  ;;  %v4271_v42 = vadd.f32 %v7713_v3, %v4241_v16  ;;  %v7866_v50 = vadd.f32 %v4286_v51, %v8295_v9 }
 0x9ec   : > { %v4245_v23 = vpop.f32.mrf.mxu0  ;;  %v8297_v16 = vmax.f32 %v7643_v30, 0.0  ;;  %v8298_v9 = vmax.f32 %v7648_v5, 0.0  ;;  %v5832_v5 = vld [vmem:[#allocation6 + $0x284] ss:$8 sps:$4 sm:$0xff]  }
 0x9ed   : > { %v4287_v52 = vmax.f32 %v4271_v42, 0.0  ;;  %4518 = vmatmul.mubr.bf16.gmra.mxu1 %v4362_v11  ;;  %v8198_v54 = vmax.f32 %v7866_v50, 0.0 }
 0x9ee   : > { %v4246_v8 = vpop.f32.mrf.mxu0  ;;  %4525 = vmatprep.mubr.bf16.mxu1 %v8222_v56 }
 0x9ef   : > { %v7870_v38 = vadd.f32 %v4287_v52, %v7629_v44  ;;  %v7874_v1 = vadd.f32 %v4287_v52, %v8296_v58  ;;  %v4272_v20 = vadd.f32 %v7713_v3, %v4246_v8  ;;  %v5827_v58 = vld [vmem:[#allocation6 + $0x290] ss:$8 sps:$4 sm:$0xff]  }
 0x9f0   : > { %v4248_v61 = vpop.f32.mrf.mxu0 }
 0x9f1   : > { %v8197_v48 = vmax.f32 %v7874_v1, 0.0  ;;  %v4288_v32 = vmax.f32 %v4272_v20, 0.0  ;;  %v7909_v61 = vld [vmem:[%s8102_s8 + $0x5] ss:$0 sm:$0xff] }
 0x9f2   : > { %v4249_v15 = vpop.f32.mrf.mxu0 }
 0x9f3   : > { %v4363_v51 = vpack.c.bf16 %v8197_v48, %v8198_v54  ;;  %v7884_v44 = vadd.f32 %v4288_v32, %v7634_v2  ;;  %v4273_v6 = vadd.f32 %v7713_v3, %v4249_v15  ;;  %v7889_v11 = vadd.f32 %v4288_v32, %v8297_v16  ;;  %v5829_v3 = vld [vmem:[#allocation6 + $0x294] ss:$8 sps:$4 sm:$0xff]  }
 0x9f4   : > { %4699 = vmatprep.subr.bf16.mxu0 %v5829_v3  ;;  %5462 = vmatprep.subr.bf16.mxu1 %v5829_v3 }
 0x9f5   : > { %v4289_v42 = vmax.f32 %v4273_v6, 0.0  ;;  %4526 = vmatmul.mubr.bf16.gmra.mxu1 %v4363_v51  ;;  %v8196_v2 = vmax.f32 %v7889_v11, 0.0  ;;  %4700 = vmatpush1.bf16.msra.mxu0 %v5827_v58 }
 0x9f6   : > { %4533 = vmatprep.mubr.bf16.mxu1 %v8222_v56  ;;  %5470 = vmatpush1.bf16.msra.mxu1 %v5827_v58 }
 0x9f7   : > { %v7893_v23 = vadd.f32 %v4289_v42, %v7651_v22  ;;  %v7897_v52 = vadd.f32 %v4289_v42, %v8298_v9  ;;  %v5830_v22 = vld [vmem:[#allocation6 + $0x280] ss:$8 sps:$4 sm:$0xff]   ;;  %4701 = vmatprep.subr.bf16.mxu0 %v5832_v5  ;;  %5463 = vmatprep.subr.bf16.mxu1 %v5832_v5 }
 0x9f9   : > { %v8195_v8 = vmax.f32 %v7897_v52, 0.0  ;;  %4702 = vmatpush1.bf16.msra.mxu0 %v5830_v22 }
 0x9fa   : > { %5471 = vmatpush1.bf16.msra.mxu1 %v5830_v22 }
 0x9fb   : > { %v4364_v30 = vpack.c.bf16 %v8195_v8, %v8196_v2 }
 0x9fd   : > { %4534 = vmatmul.mubr.bf16.gmra.mxu1 %v4364_v30 }
 0x9fe   : > { %4767 = vmatprep.mubr.bf16.mxu1 %v8222_v56 }
 0xa85   : > { %v4479_v20 = vpop.f32.mrf.mxu1 }
 0xa87   : > { %v4480_v32 = vpop.f32.mrf.mxu1 }
 0xa88   : > { %v4548_v51 = vadd.f32 %v7909_v61, %v4480_v32 }
 0xa89   : > { %v4482_v15 = vpop.f32.mrf.mxu1 }
 0xa8a   : > { %v4564_v9 = vmax.f32 %v4548_v51, 0.0 }
 0xa8b   : > { %v4483_v6 = vpop.f32.mrf.mxu1 }
 0xa8c   : > { %v4549_v16 = vadd.f32 %v7909_v61, %v4483_v6 }
 0xa8d   : > { %v4487_v42 = vpop.f32.mrf.mxu1 }
 0xa8e   : > { %v4565_v30 = vmax.f32 %v4549_v16, 0.0 }
 0xa8f   : > { %v4488_v3 = vpop.f32.mrf.mxu1 }
 0xa90   : > { %v4599_v58 = vpack.c.bf16 %v4565_v30, %v4564_v9  ;;  %v4550_v22 = vadd.f32 %v7909_v61, %v4488_v3 }
 0xa91   : > { %v4490_v5 = vpop.f32.mrf.mxu1 }
 0xa92   : > { %4720 = vmatmul.mubr.bf16.vlgmr.msra.gmra.mxu0 %v4599_v58  ;;  %v4566_v2 = vmax.f32 %v4550_v22, 0.0 }
 0xa93   : > { %v4491_v20 = vpop.f32.mrf.mxu1  ;;  %4727 = vmatprep.mubr.bf16.mxu0 %v8222_v56 }
 0xa94   : > { %v4551_v8 = vadd.f32 %v7909_v61, %v4491_v20 }
 0xa95   : > { %v4495_v15 = vpop.f32.mrf.mxu1 }
 0xa96   : > { %v4567_v32 = vmax.f32 %v4551_v8, 0.0 }
 0xa97   : > { %v4496_v48 = vpop.f32.mrf.mxu1 }
 0xa98   : > { %v4600_v54 = vpack.c.bf16 %v4567_v32, %v4566_v2  ;;  %v4552_v51 = vadd.f32 %v7909_v61, %v4496_v48 }
 0xa99   : > { %v4498_v6 = vpop.f32.mrf.mxu1 }
 0xa9a   : > { %4728 = vmatmul.mubr.bf16.gmra.mxu0 %v4600_v54  ;;  %v4568_v30 = vmax.f32 %v4552_v51, 0.0 }
 0xa9b   : > { %v4499_v16 = vpop.f32.mrf.mxu1  ;;  %4735 = vmatprep.mubr.bf16.mxu0 %v8222_v56 }
 0xa9c   : > { %v4553_v42 = vadd.f32 %v7909_v61, %v4499_v16 }
 0xa9d   : > { %v4503_v9 = vpop.f32.mrf.mxu1 }
 0xa9e   : > { %v4569_v3 = vmax.f32 %v4553_v42, 0.0 }
 0xa9f   : > { %v4504_v58 = vpop.f32.mrf.mxu1 }
 0xaa0   : > { %v4601_v5 = vpack.c.bf16 %v4569_v3, %v4568_v30  ;;  %v4554_v22 = vadd.f32 %v7909_v61, %v4504_v58 }
 0xaa1   : > { %v4506_v20 = vpop.f32.mrf.mxu1 }
 0xaa2   : > { %4736 = vmatmul.mubr.bf16.gmra.mxu0 %v4601_v5  ;;  %v4570_v2 = vmax.f32 %v4554_v22, 0.0 }
 0xaa3   : > { %v4507_v8 = vpop.f32.mrf.mxu1  ;;  %4743 = vmatprep.mubr.bf16.mxu0 %v8222_v56 }
 0xaa4   : > { %v4555_v48 = vadd.f32 %v7909_v61, %v4507_v8 }
 0xaa5   : > { %v4511_v54 = vpop.f32.mrf.mxu1 }
 0xaa6   : > { %v4571_v15 = vmax.f32 %v4555_v48, 0.0 }
 0xaa7   : > { %v4512_v32 = vpop.f32.mrf.mxu1 }
 0xaa8   : > { %v4602_v6 = vpack.c.bf16 %v4571_v15, %v4570_v2  ;;  %v4556_v51 = vadd.f32 %v7909_v61, %v4512_v32 }
 0xaa9   : > { %v4514_v16 = vpop.f32.mrf.mxu1 }
 0xaaa   : > { %4744 = vmatmul.mubr.bf16.gmra.mxu0 %v4602_v6  ;;  %v4572_v3 = vmax.f32 %v4556_v51, 0.0 }
 0xaab   : > { %v4515_v42 = vpop.f32.mrf.mxu1  ;;  %4751 = vmatprep.mubr.bf16.mxu0 %v8222_v56 }
 0xaac   : > { %v4557_v9 = vadd.f32 %v7909_v61, %v4515_v42 }
 0xaad   : > { %v4519_v30 = vpop.f32.mrf.mxu1 }
 0xaae   : > { %v4573_v58 = vmax.f32 %v4557_v9, 0.0 }
 0xaaf   : > { %v4520_v5 = vpop.f32.mrf.mxu1 }
 0xab0   : > { %v4603_v20 = vpack.c.bf16 %v4573_v58, %v4572_v3  ;;  %v4558_v22 = vadd.f32 %v7909_v61, %v4520_v5 }
 0xab1   : > { %v4522_v8 = vpop.f32.mrf.mxu1 }
 0xab2   : > { %4752 = vmatmul.mubr.bf16.gmra.mxu0 %v4603_v20  ;;  %v4574_v15 = vmax.f32 %v4558_v22, 0.0 }
 0xab3   : > { %v4523_v48 = vpop.f32.mrf.mxu1  ;;  %4759 = vmatprep.mubr.bf16.mxu0 %v8222_v56 }
 0xab4   : > { %v4559_v54 = vadd.f32 %v7909_v61, %v4523_v48 }
 0xab5   : > { %v4527_v2 = vpop.f32.mrf.mxu1 }
 0xab6   : > { %v4575_v32 = vmax.f32 %v4559_v54, 0.0 }
 0xab7   : > { %v4528_v6 = vpop.f32.mrf.mxu1 }
 0xab8   : > { %v4604_v16 = vpack.c.bf16 %v4575_v32, %v4574_v15  ;;  %v4560_v51 = vadd.f32 %v7909_v61, %v4528_v6 }
 0xab9   : > { %v4530_v42 = vpop.f32.mrf.mxu1 }
 0xaba   : > { %4760 = vmatmul.mubr.bf16.gmra.mxu0 %v4604_v16  ;;  %v4576_v58 = vmax.f32 %v4560_v51, 0.0  ;;  %v7936_v16 = vld [vmem:[%s8104_s10 + $0x5] ss:$0 sm:$0xff] }
 0xabb   : > { %v4531_v9 = vpop.f32.mrf.mxu1 }
 0xabc   : > { %v4561_v30 = vadd.f32 %v7909_v61, %v4531_v9 }
 0xabd   : > { %v4535_v3 = vpop.f32.mrf.mxu1 }
 0xabe   : > { %v4577_v5 = vmax.f32 %v4561_v30, 0.0 }
 0xabf   : > { %v4536_v20 = vpop.f32.mrf.mxu1 }
 0xac0   : > { %v4605_v8 = vpack.c.bf16 %v4577_v5, %v4576_v58  ;;  %v4562_v48 = vadd.f32 %v7909_v61, %v4536_v20 }
 0xac1   : > { %v4538_v59 = vpop.f32.mrf.mxu1 }
 0xac2   : > { %4768 = vmatmul.mubr.bf16.vlgmr.msra.gmra.mxu1 %v4605_v8  ;;  %v4578_v2 = vmax.f32 %v4562_v48, 0.0  ;;  %v7946_v48 = vld [vmem:[%s8105_s11] ss:$0 sm:$0xff] }
 0xac3   : > { %v4539_v22 = vpop.f32.mrf.mxu1  ;;  %4775 = vmatprep.mubr.bf16.mxu1 %v8222_v56 }
 0xac4   : > { %v4563_v54 = vadd.f32 %v7909_v61, %v4539_v22 }
 0xac6   : > { %v4579_v15 = vmax.f32 %v4563_v54, 0.0 }
 0xac8   : > { %v4606_v32 = vpack.c.bf16 %v4579_v15, %v4578_v2 }
 0xaca   : > { %4776 = vmatmul.mubr.bf16.gmra.mxu1 %v4606_v32 }
 0xb52   : > { %v4721_v6 = vpop.f32.mrf.mxu0 }
 0xb54   : > { %v4722_v42 = vpop.f32.mrf.mxu0 }
 0xb55   : > { %v4790_v59 = vadd.f32 %v7936_v16, %v4722_v42 }
 0xb56   : > { %v4724_v51 = vpop.f32.mrf.mxu0 }
 0xb57   : > { %v4806_v9 = vmax.f32 %v4790_v59, 0.0 }
 0xb58   : > { %v4725_v30 = vpop.f32.mrf.mxu0 }
 0xb59   : > { %v4838_v56 = vadd.f32 %v4806_v9, %v4322_v27  ;;  %v4791_v61 = vadd.f32 %v7936_v16, %v4725_v30  ;;  %v4822_v58 = vadd.f32 %v4806_v9, %v7717_v24 }
 0xb5a   : > { %v4729_v3 = vpop.f32.mrf.mxu0 }
 0xb5b   : > { %v4854_v5 = vmax.f32 %v4838_v56, 0.0  ;;  %v4807_v20 = vmax.f32 %v4791_v61, 0.0 }
 0xb5c   : > { %v4730_v8 = vpop.f32.mrf.mxu0 }
 0xb5d   : > { %v4839_v22 = vadd.f32 %v4807_v20, %v4323_v28  ;;  %v4792_v54 = vadd.f32 %v7936_v16, %v4730_v8  ;;  %v4870_v17 = vadd.f32 %v4854_v5, %v4822_v58  ;;  %v4823_v2 = vadd.f32 %v4807_v20, %v7725_v39 }
 0xb5e   : > { %v4732_v27 = vpop.f32.mrf.mxu0 }
 0xb5f   : > { %v4855_v15 = vmax.f32 %v4839_v22, 0.0  ;;  %v4808_v32 = vmax.f32 %v4792_v54, 0.0  ;;  %v4893_v24 = vmul.f32 %v7946_v48, %v4870_v17 }
 0xb60   : > { %v4733_v6 = vpop.f32.mrf.mxu0 }
 0xb61   : > { %v4840_v42 = vadd.f32 %v4808_v32, %v4324_v62  ;;  %v4793_v59 = vadd.f32 %v7936_v16, %v4733_v6  ;;  %4909 = vadd.xlane.f32.xlu0 %v4893_v24  ;;  %v4871_v51 = vadd.f32 %v4855_v15, %v4823_v2  ;;  %v4824_v28 = vadd.f32 %v4808_v32, %v7739_v33 }
 0xb62   : > { %v4737_v47 = vpop.f32.mrf.mxu0 }
 0xb63   : > { %v4856_v9 = vmax.f32 %v4840_v42, 0.0  ;;  %v4809_v30 = vmax.f32 %v4793_v59, 0.0  ;;  %v4894_v56 = vmul.f32 %v7946_v48, %v4871_v51 }
 0xb64   : > { %v4738_v39 = vpop.f32.mrf.mxu0 }
 0xb65   : > { %v4841_v61 = vadd.f32 %v4809_v30, %v4325_v60  ;;  %v4794_v3 = vadd.f32 %v7936_v16, %v4738_v39  ;;  %4911 = vadd.xlane.f32.xlu1 %v4894_v56  ;;  %v4872_v49 = vadd.f32 %v4856_v9, %v4824_v28  ;;  %v4825_v58 = vadd.f32 %v4809_v30, %v7748_v21 }
 0xb66   : > { %v4740_v62 = vpop.f32.mrf.mxu0 }
 0xb67   : > { %v4857_v5 = vmax.f32 %v4841_v61, 0.0  ;;  %v4810_v20 = vmax.f32 %v4794_v3, 0.0  ;;  %v4895_v8 = vmul.f32 %v7946_v48, %v4872_v49 }
 0xb68   : > { %v4741_v33 = vpop.f32.mrf.mxu0 }
 0xb69   : > { %v4842_v22 = vadd.f32 %v4810_v20, %v4326_v46  ;;  %v4795_v54 = vadd.f32 %v7936_v16, %v4741_v33  ;;  %4913 = vadd.xlane.f32.xlu0 %v4895_v8  ;;  %v4873_v40 = vadd.f32 %v4857_v5, %v4825_v58  ;;  %v4826_v17 = vadd.f32 %v4810_v20, %v7762_v31 }
 0xb6a   : > { %v4745_v60 = vpop.f32.mrf.mxu0 }
 0xb6b   : > { %v4858_v27 = vmax.f32 %v4842_v22, 0.0  ;;  %v4811_v2 = vmax.f32 %v4795_v54, 0.0  ;;  %v4896_v15 = vmul.f32 %v7946_v48, %v4873_v40 }
 0xb6c   : > { %v4746_v21 = vpop.f32.mrf.mxu0 }
 0xb6d   : > { %v4843_v32 = vadd.f32 %v4811_v2, %v4327_v55  ;;  %v4796_v24 = vadd.f32 %v7936_v16, %v4746_v21  ;;  %4915 = vadd.xlane.f32.xlu0 %v4896_v15  ;;  %v4874_v14 = vadd.f32 %v4858_v27, %v4826_v17  ;;  %v4827_v6 = vadd.f32 %v4811_v2, %v7772_v0 }
 0xb6e   : > { %v4748_v46 = vpop.f32.mrf.mxu0 }
 0xb6f   : > { %v4859_v42 = vmax.f32 %v4843_v32, 0.0  ;;  %v4812_v59 = vmax.f32 %v4796_v24, 0.0  ;;  %v4897_v51 = vmul.f32 %v7946_v48, %v4874_v14 }
 0xb70   : > { %v4749_v31 = vpop.f32.mrf.mxu0 }
 0xb71   : > { %v4844_v47 = vadd.f32 %v4812_v59, %v4328_v25  ;;  %v4797_v28 = vadd.f32 %v7936_v16, %v4749_v31  ;;  %4917 = vadd.xlane.f32.xlu1 %v4897_v51  ;;  %v4875_v4 = vadd.f32 %v4859_v42, %v4827_v6  ;;  %v4828_v9 = vadd.f32 %v4812_v59, %v7788_v29 }
 0xb72   : > { %v4753_v55 = vpop.f32.mrf.mxu0  ;;  %v8299_v59 = vmax.f32 %v7851_v19, 0.0 }
 0xb73   : > { %v4860_v30 = vmax.f32 %v4844_v47, 0.0  ;;  %v4813_v56 = vmax.f32 %v4797_v28, 0.0  ;;  %v4898_v39 = vmul.f32 %v7946_v48, %v4875_v4 }
 0xb74   : > { %v4754_v0 = vpop.f32.mrf.mxu0 }
 0xb75   : > { %v4845_v61 = vadd.f32 %v4813_v56, %v4329_v43  ;;  %v4798_v3 = vadd.f32 %v7936_v16, %v4754_v0  ;;  %4919 = vadd.xlane.f32.xlu0 %v4898_v39  ;;  %v4876_v35 = vadd.f32 %v4860_v30, %v4828_v9  ;;  %v4829_v49 = vadd.f32 %v4813_v56, %v7799_v37 }
 0xb76   : > { %v4756_v25 = vpop.f32.mrf.mxu0  ;;  %v8300_v9 = vmax.f32 %v7866_v50, 0.0 }
 0xb77   : > { %v4861_v62 = vmax.f32 %v4845_v61, 0.0  ;;  %v4814_v58 = vmax.f32 %v4798_v3, 0.0  ;;  %v4899_v5 = vmul.f32 %v7946_v48, %v4876_v35  ;;  %v8301_v25 = vmax.f32 %v7874_v1, 0.0 }
 0xb78   : > { %v4757_v29 = vpop.f32.mrf.mxu0 }
 0xb79   : > { %v4846_v20 = vadd.f32 %v4814_v58, %v4330_v34  ;;  %v4799_v8 = vadd.f32 %v7936_v16, %v4757_v29  ;;  %4921 = vadd.xlane.f32.xlu1 %v4899_v5  ;;  %v4877_v63 = vadd.f32 %v4861_v62, %v4829_v49  ;;  %v4830_v33 = vadd.f32 %v4814_v58, %v7815_v7 }
 0xb7a   : > { %v4761_v43 = vpop.f32.mrf.mxu0 }
 0xb7b   : > { %v4862_v22 = vmax.f32 %v4846_v20, 0.0  ;;  %v4815_v54 = vmax.f32 %v4799_v8, 0.0  ;;  %v4900_v40 = vmul.f32 %v7946_v48, %v4877_v63  ;;  %v8302_v63 = vmax.f32 %v7889_v11, 0.0 }
 0xb7c   : > { %v4762_v37 = vpop.f32.mrf.mxu0 }
 0xb7d   : > { %v4847_v60 = vadd.f32 %v4815_v54, %v4331_v26  ;;  %v4800_v17 = vadd.f32 %v7936_v16, %v4762_v37  ;;  %4923 = vadd.xlane.f32.xlu0 %v4900_v40  ;;  %v4878_v18 = vadd.f32 %v4862_v22, %v4830_v33  ;;  %v4831_v27 = vadd.f32 %v4815_v54, %v7824_v13 }
 0xb7e   : > { %v4764_v34 = vpop.f32.mrf.mxu0 }
 0xb7f   : > { %v4863_v2 = vmax.f32 %v4847_v60, 0.0  ;;  %v4816_v15 = vmax.f32 %v4800_v17, 0.0  ;;  %v4901_v21 = vmul.f32 %v7946_v48, %v4878_v18 }
 0xb80   : > { %v4765_v7 = vpop.f32.mrf.mxu0 }
 0xb81   : > { %v4848_v32 = vadd.f32 %v4816_v15, %v4332_v53  ;;  %v4801_v24 = vadd.f32 %v7936_v16, %v4765_v7  ;;  %4925 = vadd.xlane.f32.xlu1 %v4901_v21  ;;  %v4879_v10 = vadd.f32 %v4863_v2, %v4831_v27  ;;  %v4832_v14 = vadd.f32 %v4816_v15, %v7838_v41 }
 0xb82   : > { %v4769_v26 = vpop.f32.mrf.mxu1 }
 0xb83   : > { %v4864_v46 = vmax.f32 %v4848_v32, 0.0  ;;  %v4817_v6 = vmax.f32 %v4801_v24, 0.0  ;;  %v4902_v42 = vmul.f32 %v7946_v48, %v4879_v10 }
 0xb84   : > { %v4770_v13 = vpop.f32.mrf.mxu1 }
 0xb85   : > { %v4849_v51 = vadd.f32 %v4817_v6, %v8299_v59  ;;  %v4802_v31 = vadd.f32 %v7936_v16, %v4770_v13  ;;  %4927 = vadd.xlane.f32.xlu0 %v4902_v42  ;;  %v4880_v12 = vadd.f32 %v4864_v46, %v4832_v14  ;;  %v4833_v47 = vadd.f32 %v4817_v6, %v7847_v45 }
 0xb86   : > { %v4772_v53 = vpop.f32.mrf.mxu1  ;;  %v4942_v6 = vstv %s4941_s21  ;;  %s5889_s21 = sshll.u32 %s5960_s29, 4  ;;  %s5890_s21 = int_to_ptr.vmem [resolvable:$false] %s5889_s21 }
 0xb87   : > { %v4865_v28 = vmax.f32 %v4849_v51, 0.0  ;;  %v4818_v4 = vmax.f32 %v4802_v31, 0.0  ;;  %v4903_v55 = vmul.f32 %v7946_v48, %v4880_v12  ;;  %s5891_s26 = scalar_lea.vmem %s5890_s21, 256  ;;  %p5892_p11 = scmp.lt.s32.totalorder %s5083_s22, %s5890_s21 }
 0xb88   : > { %v4773_v41 = vpop.f32.mrf.mxu1  ;;  %p5893_p0 = scmp.lt.s32.totalorder %s5891_s26, %s5885_s18 }
 0xb89   : > { %v4850_v30 = vadd.f32 %v4818_v4, %v8300_v9  ;;  %v4803_v56 = vadd.f32 %v7936_v16, %v4773_v41  ;;  %4929 = vadd.xlane.f32.xlu1 %v4903_v55  ;;  %v4881_v19 = vadd.f32 %v4865_v28, %v4833_v47  ;;  %v4834_v0 = vadd.f32 %v4818_v4, %v7861_v36 }
 0xb8a   : > { %v4777_v39 = vpop.f32.mrf.mxu1  ;;  %p5894_p1 = por %p5893_p0, %p5892_p11 }
 0xb8b   : > { %v4866_v61 = vmax.f32 %v4850_v30, 0.0  ;;  %v4819_v3 = vmax.f32 %v4803_v56, 0.0  ;;  %v4904_v35 = vmul.f32 %v7946_v48, %v4881_v19 }
 0xb8c   : > { %v4778_v45 = vpop.f32.mrf.mxu1  ;;  %p5895_p3 = pnand %p5894_p1, %p5888_p8 }
 0xb8d   : > { %v4851_v49 = vadd.f32 %v4819_v3, %v8301_v25  ;;  %v4804_v62 = vadd.f32 %v7936_v16, %v4778_v45  ;;  %4931 = vadd.xlane.f32.xlu0 %v4904_v35  ;;  %v4882_v50 = vadd.f32 %v4866_v61, %v4834_v0  ;;  %v4835_v5 = vadd.f32 %v4819_v3, %v7870_v38 }
 0xb8e   : > { %v4780_v58 = vpop.f32.mrf.mxu1  ;;  %v8303_v38 = vmax.f32 %v7897_v52, 0.0 }
 0xb8f   : > { %v4867_v29 = vmax.f32 %v4851_v49, 0.0  ;;  %v4820_v20 = vmax.f32 %v4804_v62, 0.0  ;;  %v4905_v8 = vmul.f32 %v7946_v48, %v4882_v50 }
 0xb90   : > { %v4781_v36 = vpop.f32.mrf.mxu1 }
 0xb91   : > { %v4852_v43 = vadd.f32 %v4820_v20, %v8302_v63  ;;  %v4805_v33 = vadd.f32 %v7936_v16, %v4781_v36  ;;  %4933 = vadd.xlane.f32.xlu1 %v4905_v8  ;;  %v4883_v1 = vadd.f32 %v4867_v29, %v4835_v5  ;;  %v4836_v22 = vadd.f32 %v4820_v20, %v7884_v44 }
 0xb93   : > { %v4868_v54 = vmax.f32 %v4852_v43, 0.0  ;;  %v4821_v40 = vmax.f32 %v4805_v33, 0.0  ;;  %v4906_v37 = vmul.f32 %v7946_v48, %v4883_v1 }
 0xb95   : > { %v4853_v60 = vadd.f32 %v4821_v40, %v8303_v38  ;;  %4935 = vadd.xlane.f32.xlu0 %v4906_v37  ;;  %v4884_v17 = vadd.f32 %v4868_v54, %v4836_v22  ;;  %v4837_v18 = vadd.f32 %v4821_v40, %v7893_v23  ;;  %v8304_v23 = vlaneseq }
 0xb97   : > { %v4869_v34 = vmax.f32 %v4853_v60, 0.0  ;;  %v4907_v11 = vmul.f32 %v7946_v48, %v4884_v17  ;;  %v4976_v14 = vand.u32 127, %v8304_v23 }
 0xb99   : > { %4937 = vadd.xlane.f32.xlu1 %v4907_v11  ;;  %v4885_v16 = vadd.f32 %v4869_v34, %v4837_v18  ;;  %v4981_v46 = vadd.s32 4294967288, %v4976_v14  ;;  %v4979_v47 = vsub.s32 %v4976_v14, %v6511_v57 }
 0xb9b   : > { %v4908_v27 = vmul.f32 %v7946_v48, %v4885_v16  ;;  %v8025_v51 = vsub.s32 %v4981_v46, %v6511_v57 }
 0xb9d   : > { %4939 = vadd.xlane.f32.xlu0 %v4908_v27 }
 0xbea   : > { %v4910_v44 = vpop.xlane.xlu0 %4909 }
 0xbeb   : > { %v4943_v9 = vadd.f32 %v4942_v6, %v4910_v44 }
 0xbed   : > { %v4980_v58 = vrot.slane %v4943_v9, %v4979_v47 }
 0xbee   : > { %v4912_v15 = vpop.xlane.xlu1 %4911 }
 0xbef   : > { %v4944_v31 = vadd.f32 %v4942_v6, %v4912_v15 }
 0xbf1   : > { %v4985_v3 = vrot.slane %v4944_v31, %v8025_v51 }
 0xbf2   : > { %v4914_v2 = vpop.xlane.xlu0 %4913 }
 0xbf3   : > { %v4945_v12 = vadd.f32 %v4942_v6, %v4914_v2  ;;  %v4987_v43 = vsel %vm4986_vm6, %v4985_v3, %v4980_v58 }
 0xbf5   : > { %v4991_v57 = vrot.slane %v4945_v12, %v4979_v47 }
 0xbf6   : > { %v4916_v21 = vpop.xlane.xlu0 %4915 }
 0xbf7   : > { %v4946_v59 = vadd.f32 %v4942_v6, %v4916_v21 }
 0xbf9   : > { %v4995_v30 = vrot.slane %v4946_v59, %v8025_v51 }
 0xbfa   : > { %v4918_v7 = vpop.xlane.xlu1 %4917 }
 0xbfb   : > { %v4947_v28 = vadd.f32 %v4942_v6, %v4918_v7  ;;  %v4996_v5 = vsel %vm4986_vm6, %v4995_v30, %v4991_v57 }
 0xbfc   : > { %v5052_v54 = vsel %vm5051_vm7, %v4996_v5, %v4987_v43 }
 0xbfd   : > { %v5000_v25 = vrot.slane %v4947_v28, %v4979_v47 }
 0xbfe   : > { %v4920_v32 = vpop.xlane.xlu0 %4919 }
 0xbff   : > { %v4948_v48 = vadd.f32 %v4942_v6, %v4920_v32 }
 0xc01   : > { %v5004_v39 = vrot.slane %v4948_v48, %v8025_v51 }
 0xc02   : > { %v4922_v52 = vpop.xlane.xlu1 %4921 }
 0xc03   : > { %v4949_v56 = vadd.f32 %v4942_v6, %v4922_v52  ;;  %v5005_v8 = vsel %vm4986_vm6, %v5004_v39, %v5000_v25 }
 0xc04   : > { %v5054_v60 = vsel %vm5053_vm8, %v5005_v8, %v5052_v54 }
 0xc05   : > { %v5009_v29 = vrot.slane %v4949_v56, %v4979_v47 }
 0xc06   : > { %v4924_v24 = vpop.xlane.xlu0 %4923 }
 0xc07   : > { %v4950_v53 = vadd.f32 %v4942_v6, %v4924_v24 }
 0xc09   : > { %v5013_v35 = vrot.slane %v4950_v53, %v8025_v51 }
 0xc0a   : > { %v4926_v10 = vpop.xlane.xlu1 %4925 }
 0xc0b   : > { %v4951_v0 = vadd.f32 %v4942_v6, %v4926_v10  ;;  %v5014_v33 = vsel %vm4986_vm6, %v5013_v35, %v5009_v29 }
 0xc0c   : > { %v5056_v34 = vsel %vm5055_vm9, %v5014_v33, %v5054_v60 }
 0xc0d   : > { %v5018_v36 = vrot.slane %v4951_v0, %v4979_v47 }
 0xc0e   : > { %v4928_v26 = vpop.xlane.xlu0 %4927 }
 0xc0f   : > { %v4952_v4 = vadd.f32 %v4942_v6, %v4928_v26 }
 0xc11   : > { %v5022_v49 = vrot.slane %v4952_v4, %v8025_v51 }
 0xc12   : > { %v4930_v42 = vpop.xlane.xlu1 %4929 }
 0xc13   : > { %v4953_v45 = vadd.f32 %v4942_v6, %v4930_v42  ;;  %v5023_v40 = vsel %vm4986_vm6, %v5022_v49, %v5018_v36 }
 0xc14   : > { %v5058_v16 = vsel %vm5057_vm10, %v5023_v40, %v5056_v34 }
 0xc15   : > { %v5027_v1 = vrot.slane %v4953_v45, %v4979_v47 }
 0xc16   : > { %v4932_v13 = vpop.xlane.xlu0 %4931 }
 0xc17   : > { %v4954_v19 = vadd.f32 %v4942_v6, %v4932_v13 }
 0xc19   : > { %v5031_v20 = vrot.slane %v4954_v19, %v8025_v51 }
 0xc1a   : > { %v4934_v55 = vpop.xlane.xlu1 %4933 }
 0xc1b   : > { %v4955_v62 = vadd.f32 %v4942_v6, %v4934_v55  ;;  %v5032_v17 = vsel %vm4986_vm6, %v5031_v20, %v5027_v1 }
 0xc1c   : > { %v5060_v2 = vsel %vm5059_vm11, %v5032_v17, %v5058_v16 }
 0xc1d   : > { %v5036_v37 = vrot.slane %v4955_v62, %v4979_v47 }
 0xc1e   : > { %v4936_v41 = vpop.xlane.xlu0 %4935 }
 0xc1f   : > { %v4956_v61 = vadd.f32 %v4942_v6, %v4936_v41 }
 0xc21   : > { %v5040_v63 = vrot.slane %v4956_v61, %v8025_v51 }
 0xc22   : > { %v4938_v50 = vpop.xlane.xlu1 %4937 }
 0xc23   : > { %v4957_v22 = vadd.f32 %v4942_v6, %v4938_v50  ;;  %v5041_v11 = vsel %vm4986_vm6, %v5040_v63, %v5036_v37 }
 0xc24   : > { %v5062_v15 = vsel %vm5061_vm12, %v5041_v11, %v5060_v2 }
 0xc25   : > { %v5045_v27 = vrot.slane %v4957_v22, %v4979_v47 }
 0xc26   : > { %v4940_v38 = vpop.xlane.xlu0 %4939 }
 0xc27   : > { %v4958_v18 = vadd.f32 %v4942_v6, %v4940_v38 }
 0xc29   : > { %v5049_v44 = vrot.slane %v4958_v18, %v8025_v51 }
 0xc2b   : > { %v5050_v21 = vsel %vm4986_vm6, %v5049_v44, %v5045_v27 }
 0xc2c   : > { %v5064_v7 = vsel %vm5063_vm13, %v5050_v21, %v5062_v15 }
 0xc2d   : > { %5067 = vst.msk [vmem:[%s467_s17] sm:$0xff] %vm5066_vm14, %v5064_v7 }
 0xc2e   : > { %5898 = shalt.err (!%p5895_p3)
}
 0xc2f   : > { %s5899_s16 = scalar_lea.hbm %s8057_s24, 128  ;;  %s5903_s25 = scalar_lea.hbm %s8107_s13, 256 }
 0xc30   : > { %p5900_p2 = scmp.ne.s32.totalorder %s8057_s24, %s5899_s16  ;;  %p5904_p7 = scmp.lt.s32.totalorder %s8057_s24, %s8107_s13 }
 0xc31   : > { %p5905_p6 = scmp.lt.s32.totalorder %s5903_s25, %s5899_s16 }
 0xc32   : > { %p5901_p4 = pnand %p5900_p2, %p6072_p5 }
 0xc33   : > { %p5906_p9 = por %p5905_p6, %p5904_p7 }
 0xc34   : > { %p5902_p13 = pneg %p5901_p4 }
 0xc36   : > { %p5907_p10 = pnand %p5906_p9, %p5902_p13 }
 0xc38   : > { %5910 = shalt.err (!%p5907_p10)
}
 0xc39   : > { %5480 = dma.vmem_to_hbm [thread:$0]  (%p6072_p5), %s5083_s22, 128, %s8057_s24, %s5069_s12  }
 0xc3a PF: > { %p5497_p12 = scmp.ge.s32.totalorder %s5953_s30, 2  ;;  %s5094_s18 = sand.u32 1, %s5941_s27  }
 0xc3b   : > { %p8305_p8 = scmp.ne.s32.totalorder %s8203_s20, 0  ;;  %s5095_s21 = scalar_lea.sflag [#allocation5], %s5094_s18 }
 0xc3d   : > { %p5490_p11 = pnand %p5497_p12, %p8305_p8 }
 0xc3f   : > { %p5491_p0 = pneg %p5490_p11 }
 0xc41   : > { %5936 = dma.done.wait (%p5491_p0), %s5095_s21, 128  }
 0xc42   : > { %5938 = vsyncadd (%p5491_p0), %s5095_s21, 4294967168  ;;  %s8306_s26 = sld [smem:[#allocation12_spill]]  ;;  %p26_p1 = scmp.ge.s32.totalorder %s6059_s15, 4  }
 0xc43   : > { %s8307_s29 = sld [smem:[#allocation13_spill]]  ;;  %s8308_s27 = smov %s5945_s28 }
 0xc44   : > { %s8310_s30 = smov %s6059_s15  ;;  %28 = sbr.rel (!%p26_p1) target bundleno = 7 (0x7), region = 136 }
 0xc48   : > { %s8309_s28 = smov %s8306_s26 }
 0xc49   :  { %5100 = vsyncpa [#allocation4], 1 }
 0xc4a   :  { %5102 = vsyncpa [#allocation4 + $0x1], 1 }
 0xc4b   :  { %5103 = vsyncpa [#allocation7], 1 }
 0xc4c   :  { %5104 = vsyncpa [#allocation5], 1 }
 0xc4d   :  { %5106 = vsyncpa [#allocation5 + $0x1], 1 }

</bundles_post_ra>
